<compile_context>
chip_gen: v6e
topology: v6e:2x2x1
jax: 0.10.0
libtpu: 0.0.40
codegen_flags: <defaults>
</compile_context>

<pallas_src>
import functools

import jax
import jax.numpy as jnp
from jax import lax
from jax.experimental import pallas as pl
from jax.experimental.pallas import tpu as pltpu

BN_EPS = 1e-5


def _round_up(v, m):
    return ((v + m - 1) // m) * m


def _choose_tile_s(hw, n_pad, c):
    """Spatial tile: multiple of 8, <=512, <= ~4 MiB per pipeline buffer."""
    per_buf_bytes = 4 * 1024 * 1024
    budget = max(8, per_buf_bytes // (n_pad * c * 4))
    tile = min(512, budget, _round_up(hw, 8))
    return max(8, (tile // 8) * 8)


def _e2e_kernel(x_ref, enc_w_ref, enc_b_ref,
                w1_ref, b1_ref, gamma_ref, beta_ref,
                w2_ref, b2_ref, out_ref, pooled_ref, *,
                n_real, hw_real):
    step = pl.program_id(0)

    # ---- init accumulator ---------------------------------------------
    @pl.when(step == 0)
    def _init():
        pooled_ref[...] = jnp.zeros_like(pooled_ref)

    # ---- streamed spatial pooling (sublane reduce, C stays on lanes) ---
    # x block: (N_pad, TILE_S, C) -> partial sum (N_pad, C)
    pooled_ref[...] += jnp.sum(x_ref[...], axis=1)

    # ---- finalize: encoder linear + ProjectionMLP head -----------------
    @pl.when(step == pl.num_programs(0) - 1)
    def _finalize():
        pooled = pooled_ref[...] * (1.0 / float(hw_real))      # true spatial mean

        # frozen synthetic encoder linear: (N_pad, C) @ (C, D_in_p)
        feat = jnp.dot(pooled, enc_w_ref[...],
                       preferred_element_type=jnp.float32) + enc_b_ref[...]

        # ProjectionMLP.layer1: Linear -> BatchNorm1d (train mode) -> ReLU
        h = jnp.dot(feat, w1_ref[...],
                    preferred_element_type=jnp.float32) + b1_ref[...]

        n_pad, hid_p = h.shape
        # mask out padded batch rows so they do not corrupt batch statistics
        row_ids = lax.broadcasted_iota(jnp.int32, (n_pad, hid_p), 0)
        mask = (row_ids < n_real).astype(jnp.float32)
        inv_n = 1.0 / float(n_real)

        hm = h * mask
        mu = jnp.sum(hm, axis=0, keepdims=True) * inv_n
        ex2 = jnp.sum(hm * h, axis=0, keepdims=True) * inv_n
        var = jnp.maximum(ex2 - mu * mu, 0.0)                  # biased batch var
        h_bn = (h - mu) * lax.rsqrt(var + BN_EPS) * gamma_ref[...] + beta_ref[...]
        h_relu = jnp.maximum(h_bn, 0.0)

        # ProjectionMLP.layer3: Linear (lane-dense padded output)
        z = jnp.dot(h_relu, w2_ref[...],
                    preferred_element_type=jnp.float32) + b2_ref[...]
        out_ref[...] = z.astype(out_ref.dtype)
        # TODO(synk): BatchNorm1d running_mean/running_var are not updated
        # (forward-only kernel; module state update has no output here).


def e2e3d_pretrained_forward(x, params):
    """x: (N, C, H, W) float32 (NCHW, matching the PyTorch conv input)."""
    N, C, H, W = x.shape
    HW = H * W
    D_in = params["enc_w"].shape[1]
    hidden = params["w1"].shape[1]
    d_out = params["w2"].shape[1]

    # TPU-friendly padded sizes (layout plumbing only).
    N_pad = _round_up(N, 8)
    D_in_p = _round_up(D_in, 128)
    hid_p = _round_up(hidden, 128)
    d_out_p = _round_up(d_out, 128)

    tile_s = _choose_tile_s(HW, N_pad, C)
    HW_pad = _round_up(HW, tile_s)
    grid = (HW_pad // tile_s,)

    # layout: NCHW -> (N, HW, C); zero-pad batch + spatial.
    x_t = jnp.transpose(x.reshape(N, C, HW), (0, 2, 1))
    x_p = jnp.pad(x_t, ((0, N_pad - N), (0, HW_pad - HW), (0, 0)))

    # zero-pad parameters; padded rows/cols contribute exactly 0 downstream.
    enc_w_p = jnp.pad(params["enc_w"], ((0, 0), (0, D_in_p - D_in)))
    enc_b_p = jnp.pad(params["enc_b"], ((0, 0), (0, D_in_p - D_in)))
    w1_p = jnp.pad(params["w1"], ((0, D_in_p - D_in), (0, hid_p - hidden)))
    b1_p = jnp.pad(params["b1"], ((0, 0), (0, hid_p - hidden)))
    gamma_p = jnp.pad(params["gamma"], ((0, 0), (0, hid_p - hidden)),
                      constant_values=1.0)
    beta_p = jnp.pad(params["beta"], ((0, 0), (0, hid_p - hidden)))
    w2_p = jnp.pad(params["w2"], ((0, D_in_p := hid_p) - hid_p, 0)) if False else \
        jnp.pad(params["w2"], ((0, hid_p - hidden), (0, d_out_p - d_out)))
    b2_p = jnp.pad(params["b2"], ((0, 0), (0, d_out_p - d_out)))

    # VMEM budget: double-buffered x tile + resident params + output + scratch.
    x_blk_bytes = N_pad * tile_s * C * 4
    param_bytes = sum(int(a.size) * 4 for a in
                      (enc_w_p, enc_b_p, w1_p, b1_p, gamma_p, beta_p, w2_p, b2_p))
    out_bytes = N_pad * d_out_p * 4
    vmem_est = 2 * (x_blk_bytes + param_bytes + out_bytes) + N_pad * C * 4 + (2 << 20)
    vmem_limit = int(min(max(vmem_est, 16 << 20), 64 << 20))

    flops = int(N * HW * C                                   # pooling adds
                + 2 * N * (C * D_in + D_in * hidden + hidden * d_out)
                + 10 * N * hidden)                           # BN + ReLU
    bytes_accessed = int(x_p.size * 4 + param_bytes + out_bytes)

    kernel = functools.partial(_e2e_kernel, n_real=N, hw_real=HW)

    out_p = pl.pallas_call(
        kernel,
        out_shape=jax.ShapeDtypeStruct((N_pad, d_out_p), jnp.float32),
        grid_spec=pltpu.PrefetchScalarGridSpec(
            num_scalar_prefetch=0,
            grid=grid,
            in_specs=[
                pl.BlockSpec((N_pad, tile_s, C), lambda s: (0, s, 0)),   # x tile
                pl.BlockSpec((C, D_in_p), lambda s: (0, 0)),             # enc_w
                pl.BlockSpec((1, D_in_p), lambda s: (0, 0)),             # enc_b
                pl.BlockSpec((D_in_p, hid_p), lambda s: (0, 0)),         # w1
                pl.BlockSpec((1, hid_p), lambda s: (0, 0)),              # b1
                pl.BlockSpec((1, hid_p), lambda s: (0, 0)),              # gamma
                pl.BlockSpec((1, hid_p), lambda s: (0, 0)),              # beta
                pl.BlockSpec((hid_p, d_out_p), lambda s: (0, 0)),        # w2
                pl.BlockSpec((1, d_out_p), lambda s: (0, 0)),            # b2
            ],
            out_specs=pl.BlockSpec((N_pad, d_out_p), lambda s: (0, 0)),
            scratch_shapes=[pltpu.VMEM((N_pad, C), jnp.float32)],
        ),
        compiler_params=pltpu.CompilerParams(
            dimension_semantics=("arbitrary",),      # spatial axis is a reduction
            vmem_limit_bytes=vmem_limit,
        ),
        cost_estimate=pl.CostEstimate(
            flops=flops, transcendentals=int(hid_p),
            bytes_accessed=bytes_accessed),
    )(x_p, enc_w_p, enc_b_p, w1_p, b1_p, gamma_p, beta_p, w2_p, b2_p)

    return out_p[:N, :d_out]


def init_params(key, C, in_features, out_features):
    """Deterministic synthetic parameters (shapes follow the module __init__).

    Linear weights are stored transposed as (in, out) so the kernel computes
    y = x @ W + b (PyTorch stores (out, in))."""
    hidden = out_features  # ProjectionMLP: hidden_dim = out_dim
    k = jax.random.split(key, 6)
    scale = 0.05
    return {
        "enc_w": scale * jax.random.normal(k[0], (C, in_features), jnp.float32),
        "enc_b": scale * jax.random.normal(k[1], (1, in_features), jnp.float32),
        "w1":    scale * jax.random.normal(k[2], (in_features, hidden), jnp.float32),
        "b1":    scale * jax.random.normal(k[3], (1, hidden), jnp.float32),
        "gamma": jnp.ones((1, hidden), jnp.float32),   # BatchNorm1d weight init
        "beta":  jnp.zeros((1, hidden), jnp.float32),  # BatchNorm1d bias init
        "w2":    scale * jax.random.normal(k[4], (hidden, out_features), jnp.float32),
        "b2":    scale * jax.random.normal(k[5], (1, out_features), jnp.float32),
    }


def _reference_forward(x, p):
    """Pure-JAX reference (two-pass BN variance) for a sanity check."""
    N, C, H, W = x.shape
    pooled = jnp.mean(x.reshape(N, C, H * W), axis=-1)
    feat = pooled @ p["enc_w"] + p["enc_b"]
    h = feat @ p["w1"] + p["b1"]
    mu = jnp.mean(h, axis=0, keepdims=True)
    var = jnp.mean((h - mu) ** 2, axis=0, keepdims=True)
    h = (h - mu) / jnp.sqrt(var + BN_EPS) * p["gamma"] + p["beta"]
    h = jnp.maximum(h, 0.0)
    return h @ p["w2"] + p["b2"]


if __name__ == "__main__":
    key = jax.random.PRNGKey(0)

    # case 1: divisible shapes, multi-step spatial grid (exercises pipeline)
    # case 2: awkward shapes (exercise batch/feature/spatial padding + masking)
    cases = [
        dict(N=2, C=4, H=32, W=32, d_in=32, d_out=32),
        dict(N=3, C=5, H=18, W=18, d_in=48, d_out=40),
    ]

    for i, cfg in enumerate(cases):
        kx, kp, key = jax.random.split(key, 3)
        x = jax.random.normal(kx, (cfg["N"], cfg["C"], cfg["H"], cfg["W"]),
                              jnp.float32)
        params = init_params(kp, cfg["C"], cfg["d_in"], cfg["d_out"])

        z = e2e3d_pretrained_forward(x, params)
        jax.block_until_ready(z)

        z_ref = _reference_forward(x, params)
        assert z.shape == (cfg["N"], cfg["d_out"]), (z.shape, cfg)
        assert jnp.allclose(z, z_ref, atol=2e-4, rtol=2e-3), (
            f"case {i}: max abs err {jnp.max(jnp.abs(z - z_ref))}")

    print("KERNEL_OK")
</pallas_src>

<mosaic_0001>
module attributes {stable_mosaic.version = 11 : i64} {
  func.func @_e2e_kernel(%arg0: i32, %arg1: memref<8x512x4xf32, #tpu.memory_space<vmem>>, %arg2: memref<4x128xf32, #tpu.memory_space<vmem>>, %arg3: memref<1x128xf32, #tpu.memory_space<vmem>>, %arg4: memref<128x128xf32, #tpu.memory_space<vmem>>, %arg5: memref<1x128xf32, #tpu.memory_space<vmem>>, %arg6: memref<1x128xf32, #tpu.memory_space<vmem>>, %arg7: memref<1x128xf32, #tpu.memory_space<vmem>>, %arg8: memref<128x128xf32, #tpu.memory_space<vmem>>, %arg9: memref<1x128xf32, #tpu.memory_space<vmem>>, %arg10: memref<8x128xf32, #tpu.memory_space<vmem>>, %arg11: memref<8x4xf32, #tpu.memory_space<vmem>>) attributes {dimension_semantics = [#tpu.dimension_semantics<arbitrary>], iteration_bounds = array<i64: 2>, scalar_prefetch = 0 : i64, scratch_operands = 1 : i64, tpu.core_type = #tpu.core_type<tc>, window_params = [{transform_indices = @transform_0, window_bounds = array<i64: 8, 512, 4>}, {pipeline_mode = #tpu.pipeline_mode<synchronous>, transform_indices = @transform_1, window_bounds = array<i64: 4, 128>}, {pipeline_mode = #tpu.pipeline_mode<synchronous>, transform_indices = @transform_2, window_bounds = array<i64: 1, 128>}, {pipeline_mode = #tpu.pipeline_mode<synchronous>, transform_indices = @transform_3, window_bounds = array<i64: 128, 128>}, {pipeline_mode = #tpu.pipeline_mode<synchronous>, transform_indices = @transform_4, window_bounds = array<i64: 1, 128>}, {pipeline_mode = #tpu.pipeline_mode<synchronous>, transform_indices = @transform_5, window_bounds = array<i64: 1, 128>}, {pipeline_mode = #tpu.pipeline_mode<synchronous>, transform_indices = @transform_6, window_bounds = array<i64: 1, 128>}, {pipeline_mode = #tpu.pipeline_mode<synchronous>, transform_indices = @transform_7, window_bounds = array<i64: 128, 128>}, {pipeline_mode = #tpu.pipeline_mode<synchronous>, transform_indices = @transform_8, window_bounds = array<i64: 1, 128>}, {pipeline_mode = #tpu.pipeline_mode<synchronous>, transform_indices = @transform_9, window_bounds = array<i64: 8, 128>}]} {
    %c0_i32 = arith.constant 0 : i32
    %0 = arith.cmpi eq, %arg0, %c0_i32 : i32
    %1 = arith.extui %0 : i1 to i32
    %c0_i32_0 = arith.constant 0 : i32
    %2 = arith.cmpi ne, %1, %c0_i32_0 : i32
    scf.if %2 {
      %cst_8 = arith.constant 0.000000e+00 : f32
      %11 = vector.broadcast %cst_8 : f32 to vector<8x4xf32>
      %c0_9 = arith.constant 0 : index
      %c0_10 = arith.constant 0 : index
      %12 = vector.load %arg11[%c0_9, %c0_10] : memref<8x4xf32, #tpu.memory_space<vmem>>, vector<8x4xf32>
      tpu.vector_store %arg11[%c0_9, %c0_10], %11 {strides = array<i32>} : memref<8x4xf32, #tpu.memory_space<vmem>>, vector<8x4xf32>,
    } else {
    }
    %c0 = arith.constant 0 : index
    %c0_1 = arith.constant 0 : index
    %3 = vector.load %arg11[%c0, %c0_1] : memref<8x4xf32, #tpu.memory_space<vmem>>, vector<8x4xf32>
    %c0_2 = arith.constant 0 : index
    %c0_3 = arith.constant 0 : index
    %c0_4 = arith.constant 0 : index
    %4 = vector.load %arg1[%c0_2, %c0_3, %c0_4] : memref<8x512x4xf32, #tpu.memory_space<vmem>>, vector<8x512x4xf32>
    %cst = arith.constant dense<0.000000e+00> : vector<8x4xf32>
    %5 = vector.multi_reduction <add>, %4, %cst [1] : vector<8x512x4xf32> to vector<8x4xf32>
    %6 = arith.addf %3, %5 : vector<8x4xf32>
    %c0_5 = arith.constant 0 : index
    %c0_6 = arith.constant 0 : index
    %7 = vector.load %arg11[%c0_5, %c0_6] : memref<8x4xf32, #tpu.memory_space<vmem>>, vector<8x4xf32>
    tpu.vector_store %arg11[%c0_5, %c0_6], %6 {strides = array<i32>} : memref<8x4xf32, #tpu.memory_space<vmem>>, vector<8x4xf32>,
    %c1_i32 = arith.constant 1 : i32
    %8 = arith.cmpi eq, %arg0, %c1_i32 : i32
    %9 = arith.extui %8 : i1 to i32
    %c0_i32_7 = arith.constant 0 : i32
    %10 = arith.cmpi ne, %9, %c0_i32_7 : i32
    scf.if %10 {
      %c0_8 = arith.constant 0 : index
      %c0_9 = arith.constant 0 : index
      %11 = vector.load %arg11[%c0_8, %c0_9] : memref<8x4xf32, #tpu.memory_space<vmem>>, vector<8x4xf32>
      %cst_10 = arith.constant 9.765625E-4 : f32
      %12 = vector.broadcast %cst_10 : f32 to vector<8x4xf32>
      %13 = arith.mulf %11, %12 : vector<8x4xf32>
      %c0_11 = arith.constant 0 : index
      %c0_12 = arith.constant 0 : index
      %14 = vector.load %arg2[%c0_11, %c0_12] : memref<4x128xf32, #tpu.memory_space<vmem>>, vector<4x128xf32>
      %cst_13 = arith.constant dense<0.000000e+00> : vector<8x128xf32>
      %15 = tpu.matmul %13, %14, %cst_13 {dimension_numbers = #tpu.dot_dimension_numbers<[1], [0], [0], [1], [0, 0, 1, 1], [], []>} : vector<8x4xf32>, vector<4x128xf32>, vector<8x128xf32> -> vector<8x128xf32>
      %c0_14 = arith.constant 0 : index
      %c0_15 = arith.constant 0 : index
      %16 = vector.load %arg3[%c0_14, %c0_15] : memref<1x128xf32, #tpu.memory_space<vmem>>, vector<1x128xf32>
      %17 = vector.broadcast %16 : vector<1x128xf32> to vector<8x128xf32>
      %18 = arith.addf %15, %17 : vector<8x128xf32>
      %c0_16 = arith.constant 0 : index
      %c0_17 = arith.constant 0 : index
      %19 = vector.load %arg4[%c0_16, %c0_17] : memref<128x128xf32, #tpu.memory_space<vmem>>, vector<128x128xf32>
      %cst_18 = arith.constant dense<0.000000e+00> : vector<8x128xf32>
      %20 = tpu.matmul %18, %19, %cst_18 {dimension_numbers = #tpu.dot_dimension_numbers<[1], [0], [0], [1], [0, 0, 1, 1], [], []>} : vector<8x128xf32>, vector<128x128xf32>, vector<8x128xf32> -> vector<8x128xf32>
      %c0_19 = arith.constant 0 : index
      %c0_20 = arith.constant 0 : index
      %21 = vector.load %arg5[%c0_19, %c0_20] : memref<1x128xf32, #tpu.memory_space<vmem>>, vector<1x128xf32>
      %22 = vector.broadcast %21 : vector<1x128xf32> to vector<8x128xf32>
      %23 = arith.addf %20, %22 : vector<8x128xf32>
      %24 = tpu.iota {dimensions = array<i32: 0>} : vector<8x128xi32>
      %c2_i32 = arith.constant 2 : i32
      %25 = vector.broadcast %c2_i32 : i32 to vector<8x128xi32>
      %26 = arith.cmpi slt, %24, %25 : vector<8x128xi32>
      %27 = arith.extui %26 : vector<8x128xi1> to vector<8x128xi32>
      %28 = arith.sitofp %27 : vector<8x128xi32> to vector<8x128xf32>
      %29 = arith.mulf %23, %28 : vector<8x128xf32>
      %cst_21 = arith.constant dense<0.000000e+00> : vector<128xf32>
      %30 = vector.multi_reduction <add>, %29, %cst_21 [0] : vector<8x128xf32> to vector<128xf32>
      %31 = vector.shape_cast %30 : vector<128xf32> to vector<1x128xf32>
      %cst_22 = arith.constant 5.000000e-01 : f32
      %32 = vector.broadcast %cst_22 : f32 to vector<1x128xf32>
      %33 = arith.mulf %31, %32 : vector<1x128xf32>
      %34 = arith.mulf %29, %23 : vector<8x128xf32>
      %cst_23 = arith.constant dense<0.000000e+00> : vector<128xf32>
      %35 = vector.multi_reduction <add>, %34, %cst_23 [0] : vector<8x128xf32> to vector<128xf32>
      %36 = vector.shape_cast %35 : vector<128xf32> to vector<1x128xf32>
      %cst_24 = arith.constant 5.000000e-01 : f32
      %37 = vector.broadcast %cst_24 : f32 to vector<1x128xf32>
      %38 = arith.mulf %36, %37 : vector<1x128xf32>
      %39 = arith.mulf %33, %33 : vector<1x128xf32>
      %40 = arith.subf %38, %39 : vector<1x128xf32>
      %cst_25 = arith.constant 0.000000e+00 : f32
      %41 = vector.broadcast %cst_25 : f32 to vector<1x128xf32>
      %42 = arith.maximumf %40, %41 : vector<1x128xf32>
      %43 = vector.broadcast %33 : vector<1x128xf32> to vector<8x128xf32>
      %44 = arith.subf %23, %43 : vector<8x128xf32>
      %cst_26 = arith.constant 9.99999974E-6 : f32
      %45 = vector.broadcast %cst_26 : f32 to vector<1x128xf32>
      %46 = arith.addf %42, %45 : vector<1x128xf32>
      %47 = math.rsqrt %46 : vector<1x128xf32>
      %48 = vector.broadcast %47 : vector<1x128xf32> to vector<8x128xf32>
      %49 = arith.mulf %44, %48 : vector<8x128xf32>
      %c0_27 = arith.constant 0 : index
      %c0_28 = arith.constant 0 : index
      %50 = vector.load %arg6[%c0_27, %c0_28] : memref<1x128xf32, #tpu.memory_space<vmem>>, vector<1x128xf32>
      %51 = vector.broadcast %50 : vector<1x128xf32> to vector<8x128xf32>
      %52 = arith.mulf %49, %51 : vector<8x128xf32>
      %c0_29 = arith.constant 0 : index
      %c0_30 = arith.constant 0 : index
      %53 = vector.load %arg7[%c0_29, %c0_30] : memref<1x128xf32, #tpu.memory_space<vmem>>, vector<1x128xf32>
      %54 = vector.broadcast %53 : vector<1x128xf32> to vector<8x128xf32>
      %55 = arith.addf %52, %54 : vector<8x128xf32>
      %cst_31 = arith.constant 0.000000e+00 : f32
      %56 = vector.broadcast %cst_31 : f32 to vector<8x128xf32>
      %57 = arith.maximumf %55, %56 : vector<8x128xf32>
      %c0_32 = arith.constant 0 : index
      %c0_33 = arith.constant 0 : index
      %58 = vector.load %arg8[%c0_32, %c0_33] : memref<128x128xf32, #tpu.memory_space<vmem>>, vector<128x128xf32>
      %cst_34 = arith.constant dense<0.000000e+00> : vector<8x128xf32>
      %59 = tpu.matmul %57, %58, %cst_34 {dimension_numbers = #tpu.dot_dimension_numbers<[1], [0], [0], [1], [0, 0, 1, 1], [], []>} : vector<8x128xf32>, vector<128x128xf32>, vector<8x128xf32> -> vector<8x128xf32>
      %c0_35 = arith.constant 0 : index
      %c0_36 = arith.constant 0 : index
      %60 = vector.load %arg9[%c0_35, %c0_36] : memref<1x128xf32, #tpu.memory_space<vmem>>, vector<1x128xf32>
      %61 = vector.broadcast %60 : vector<1x128xf32> to vector<8x128xf32>
      %62 = arith.addf %59, %61 : vector<8x128xf32>
      %c0_37 = arith.constant 0 : index
      %c0_38 = arith.constant 0 : index
      %63 = vector.load %arg10[%c0_37, %c0_38] : memref<8x128xf32, #tpu.memory_space<vmem>>, vector<8x128xf32>
      tpu.vector_store %arg10[%c0_37, %c0_38], %62 {strides = array<i32>} : memref<8x128xf32, #tpu.memory_space<vmem>>, vector<8x128xf32>,
    } else {
    }
    return
  }
  func.func @transform_0(%arg0: i32) -> (i32, i32, i32) {
    %c0_i32 = arith.constant 0 : i32
    %c0_i32_0 = arith.constant 0 : i32
    %c0_i32_1 = arith.constant 0 : i32
    return %c0_i32, %arg0, %c0_i32_0 : i32, i32, i32
  }
  func.func @transform_1(%arg0: i32) -> (i32, i32) {
    %c0_i32 = arith.constant 0 : i32
    %c0_i32_0 = arith.constant 0 : i32
    %c0_i32_1 = arith.constant 0 : i32
    return %c0_i32, %c0_i32_0 : i32, i32
  }
  func.func @transform_2(%arg0: i32) -> (i32, i32) {
    %c0_i32 = arith.constant 0 : i32
    %c0_i32_0 = arith.constant 0 : i32
    %c0_i32_1 = arith.constant 0 : i32
    return %c0_i32, %c0_i32_0 : i32, i32
  }
  func.func @transform_3(%arg0: i32) -> (i32, i32) {
    %c0_i32 = arith.constant 0 : i32
    %c0_i32_0 = arith.constant 0 : i32
    %c0_i32_1 = arith.constant 0 : i32
    return %c0_i32, %c0_i32_0 : i32, i32
  }
  func.func @transform_4(%arg0: i32) -> (i32, i32) {
    %c0_i32 = arith.constant 0 : i32
    %c0_i32_0 = arith.constant 0 : i32
    %c0_i32_1 = arith.constant 0 : i32
    return %c0_i32, %c0_i32_0 : i32, i32
  }
  func.func @transform_5(%arg0: i32) -> (i32, i32) {
    %c0_i32 = arith.constant 0 : i32
    %c0_i32_0 = arith.constant 0 : i32
    %c0_i32_1 = arith.constant 0 : i32
    return %c0_i32, %c0_i32_0 : i32, i32
  }
  func.func @transform_6(%arg0: i32) -> (i32, i32) {
    %c0_i32 = arith.constant 0 : i32
    %c0_i32_0 = arith.constant 0 : i32
    %c0_i32_1 = arith.constant 0 : i32
    return %c0_i32, %c0_i32_0 : i32, i32
  }
  func.func @transform_7(%arg0: i32) -> (i32, i32) {
    %c0_i32 = arith.constant 0 : i32
    %c0_i32_0 = arith.constant 0 : i32
    %c0_i32_1 = arith.constant 0 : i32
    return %c0_i32, %c0_i32_0 : i32, i32
  }
  func.func @transform_8(%arg0: i32) -> (i32, i32) {
    %c0_i32 = arith.constant 0 : i32
    %c0_i32_0 = arith.constant 0 : i32
    %c0_i32_1 = arith.constant 0 : i32
    return %c0_i32, %c0_i32_0 : i32, i32
  }
  func.func @transform_9(%arg0: i32) -> (i32, i32) {
    %c0_i32 = arith.constant 0 : i32
    %c0_i32_0 = arith.constant 0 : i32
    %c0_i32_1 = arith.constant 0 : i32
    return %c0_i32, %c0_i32_0 : i32, i32
  }
}

</mosaic_0001>

<bundles_post_ra>
// kernel: tpu_custom_call.1
= control target key start
LH: loop header
LB: loop body
LE: loop exit
PB: predicated region body
PF: predicated region fallthrough
CT: control target
= control target key end

     0   :  { %14 = vsyncpa [#allocation5], 0  ;;  %s6757_s30 = smov 0   ;;  %s6759_s10 = smov 0   ;;  %s9393_s0 = inlined_call_operand.vmem [shape: f32[8,1024,4], index: 0, kind: input, shape index: {}]   ;;  %s9394_s1 = inlined_call_operand.vmem [shape: f32[4,128], index: 1, kind: input, shape index: {}]   ;;  %s9395_s2 = inlined_call_operand.vmem [shape: f32[1,128], index: 2, kind: input, shape index: {}]   ;;  %s9396_s3 = inlined_call_operand.vmem [shape: f32[128,128], index: 3, kind: input, shape index: {}]   ;;  %s9397_s4 = inlined_call_operand.vmem [shape: f32[1,128], index: 4, kind: input, shape index: {}]   ;;  %s9398_s5 = inlined_call_operand.vmem [shape: f32[1,128], index: 5, kind: input, shape index: {}]   ;;  %s9399_s6 = inlined_call_operand.vmem [shape: f32[1,128], index: 6, kind: input, shape index: {}]   ;;  %s9400_s7 = inlined_call_operand.vmem [shape: f32[128,128], index: 7, kind: input, shape index: {}]   ;;  %s9401_s8 = inlined_call_operand.vmem [shape: f32[1,128], index: 8, kind: input, shape index: {}]   ;;  %s9402_s9 = inlined_call_operand.hbm [shape: f32[8,128], index: 9, kind: output, shape index: {}]  }
   0x1   :  { %s6761_s11 = smov 0  }
   0x2 LB: > { %s6773_s12 = sadd.s32 4294967295, %s6701_s11   ;;  %s6776_s13 = sadd.s32 1, %s6701_s11   ;;  %s6701_s11 = sphi %s6761_s11, %s9469_s11   ;;  %s6697_s10 = sphi %s6759_s10, %s9468_s10   ;;  %s6693_s30 = sphi %s6757_s30, %s9467_s30  }
   0x3   : > { %s24_s14 = ssub.s32 %s6701_s11, %s6776_s13  ;;  %s27_s15 = sadd.s32 1, %s6697_s10 }
   0x4   : > { %p25_p0 = scmp.eq.s32.totalorder %s24_s14, 0  ;;  %p34_p1 = scmp.ne.s32.totalorder %s6697_s10, %s6693_s30 }
   0x5   : > { %p35_p2 = scmp.eq.s32.totalorder %s6701_s11, 0  ;;  %p6483_p4 = scmp.ge.s32.totalorder %s6701_s11, 2 }
   0x6   : > { %s6785_s16 = scalar_select %p25_p0, %s6697_s10, %s27_s15  }
   0x7   : > { %p36_p3 = por %p35_p2, %p34_p1  ;;  %273 = sbr.rel (%p6483_p4) target bundleno = 272 (0x110), region = 48 }
   0xc   : > { %276 = sbr.rel (!%p36_p3) target bundleno = 272 (0x110), region = 52  ;;  %s278_s17 = sand.u32 (%p36_p3), 1, %s6697_s10  }
   0xd   : > { %s6503_s18 = sshll.u32 (%p36_p3), %s6701_s11, 9  ;;  %s6484_s19 = sshll.u32 (%p36_p3), %s278_s17, 12 }
   0xe   : > { %s6793_s22 = scalar_lea.vmem (%p36_p3), %s9393_s0, %s6503_s18  ;;  %s6798_s23 = scalar_lea.vmem (%p36_p3), [#allocation3], %s6484_s19 }
   0xf   : > { %v1337_v0 = vld [vmem:[%s6793_s22] sm:$0xff] (%p36_p3)  ;;  %v1339_v1 = vld [vmem:[%s6793_s22 + $0x8] sm:$0xff] (%p36_p3)  ;;  %v1341_v2 = vld [vmem:[%s6793_s22 + $0x10] sm:$0xff] (%p36_p3) }
  0x10   : > { %1338 = vst [vmem:[%s6798_s23] sm:$0xff] (%p36_p3), %v1337_v0  ;;  %1340 = vst [vmem:[%s6798_s23 + $0x8] sm:$0xff] (%p36_p3), %v1339_v1  ;;  %v1343_v3 = vld [vmem:[%s6793_s22 + $0x18] sm:$0xff] (%p36_p3)  ;;  %v1345_v4 = vld [vmem:[%s6793_s22 + $0x20] sm:$0xff] (%p36_p3) }
  0x11   : > { %1342 = vst [vmem:[%s6798_s23 + $0x10] sm:$0xff] %v1341_v2  ;;  %v1347_v5 = vld [vmem:[%s6793_s22 + $0x28] sm:$0xff]  ;;  %1344 = vst [vmem:[%s6798_s23 + $0x18] sm:$0xff] %v1343_v3  ;;  %v1349_v6 = vld [vmem:[%s6793_s22 + $0x30] sm:$0xff] }
  0x12   : > { %1346 = vst [vmem:[%s6798_s23 + $0x20] sm:$0xff] %v1345_v4  ;;  %1348 = vst [vmem:[%s6798_s23 + $0x28] sm:$0xff] %v1347_v5  ;;  %v1351_v7 = vld [vmem:[%s6793_s22 + $0x38] sm:$0xff]  ;;  %v1353_v8 = vld [vmem:[%s6793_s22 + $0x40] sm:$0xff] }
  0x13   : > { %1350 = vst [vmem:[%s6798_s23 + $0x30] sm:$0xff] %v1349_v6  ;;  %1352 = vst [vmem:[%s6798_s23 + $0x38] sm:$0xff] %v1351_v7  ;;  %v1355_v9 = vld [vmem:[%s6793_s22 + $0x48] sm:$0xff]  ;;  %v1357_v10 = vld [vmem:[%s6793_s22 + $0x50] sm:$0xff] }
  0x14   : > { %1354 = vst [vmem:[%s6798_s23 + $0x40] sm:$0xff] %v1353_v8  ;;  %v1359_v11 = vld [vmem:[%s6793_s22 + $0x58] sm:$0xff]  ;;  %1356 = vst [vmem:[%s6798_s23 + $0x48] sm:$0xff] %v1355_v9  ;;  %v1361_v12 = vld [vmem:[%s6793_s22 + $0x60] sm:$0xff] }
  0x15   : > { %1358 = vst [vmem:[%s6798_s23 + $0x50] sm:$0xff] %v1357_v10  ;;  %1360 = vst [vmem:[%s6798_s23 + $0x58] sm:$0xff] %v1359_v11  ;;  %v1363_v13 = vld [vmem:[%s6793_s22 + $0x68] sm:$0xff]  ;;  %v1365_v14 = vld [vmem:[%s6793_s22 + $0x70] sm:$0xff] }
  0x16   : > { %1362 = vst [vmem:[%s6798_s23 + $0x60] sm:$0xff] %v1361_v12  ;;  %1364 = vst [vmem:[%s6798_s23 + $0x68] sm:$0xff] %v1363_v13  ;;  %v1367_v15 = vld [vmem:[%s6793_s22 + $0x78] sm:$0xff]  ;;  %v1369_v16 = vld [vmem:[%s6793_s22 + $0x80] sm:$0xff] }
  0x17   : > { %1366 = vst [vmem:[%s6798_s23 + $0x70] sm:$0xff] %v1365_v14  ;;  %v1371_v17 = vld [vmem:[%s6793_s22 + $0x88] sm:$0xff]  ;;  %1368 = vst [vmem:[%s6798_s23 + $0x78] sm:$0xff] %v1367_v15  ;;  %v1373_v18 = vld [vmem:[%s6793_s22 + $0x90] sm:$0xff] }
  0x18   : > { %1370 = vst [vmem:[%s6798_s23 + $0x80] sm:$0xff] %v1369_v16  ;;  %1372 = vst [vmem:[%s6798_s23 + $0x88] sm:$0xff] %v1371_v17  ;;  %v1375_v19 = vld [vmem:[%s6793_s22 + $0x98] sm:$0xff]  ;;  %v1377_v20 = vld [vmem:[%s6793_s22 + $0xa0] sm:$0xff] }
  0x19   : > { %1374 = vst [vmem:[%s6798_s23 + $0x90] sm:$0xff] %v1373_v18  ;;  %1376 = vst [vmem:[%s6798_s23 + $0x98] sm:$0xff] %v1375_v19  ;;  %v1379_v21 = vld [vmem:[%s6793_s22 + $0xa8] sm:$0xff]  ;;  %v1381_v22 = vld [vmem:[%s6793_s22 + $0xb0] sm:$0xff] }
  0x1a   : > { %1378 = vst [vmem:[%s6798_s23 + $0xa0] sm:$0xff] %v1377_v20  ;;  %v1383_v23 = vld [vmem:[%s6793_s22 + $0xb8] sm:$0xff]  ;;  %1380 = vst [vmem:[%s6798_s23 + $0xa8] sm:$0xff] %v1379_v21  ;;  %v1385_v24 = vld [vmem:[%s6793_s22 + $0xc0] sm:$0xff] }
  0x1b   : > { %1382 = vst [vmem:[%s6798_s23 + $0xb0] sm:$0xff] %v1381_v22  ;;  %1384 = vst [vmem:[%s6798_s23 + $0xb8] sm:$0xff] %v1383_v23  ;;  %v1387_v25 = vld [vmem:[%s6793_s22 + $0xc8] sm:$0xff]  ;;  %v1389_v26 = vld [vmem:[%s6793_s22 + $0xd0] sm:$0xff] }
  0x1c   : > { %1386 = vst [vmem:[%s6798_s23 + $0xc0] sm:$0xff] %v1385_v24  ;;  %1388 = vst [vmem:[%s6798_s23 + $0xc8] sm:$0xff] %v1387_v25  ;;  %v1391_v27 = vld [vmem:[%s6793_s22 + $0xd8] sm:$0xff]  ;;  %v1393_v28 = vld [vmem:[%s6793_s22 + $0xe0] sm:$0xff] }
  0x1d   : > { %1390 = vst [vmem:[%s6798_s23 + $0xd0] sm:$0xff] %v1389_v26  ;;  %v1395_v29 = vld [vmem:[%s6793_s22 + $0xe8] sm:$0xff]  ;;  %1392 = vst [vmem:[%s6798_s23 + $0xd8] sm:$0xff] %v1391_v27  ;;  %v1397_v30 = vld [vmem:[%s6793_s22 + $0xf0] sm:$0xff] }
  0x1e   : > { %1394 = vst [vmem:[%s6798_s23 + $0xe0] sm:$0xff] %v1393_v28  ;;  %1396 = vst [vmem:[%s6798_s23 + $0xe8] sm:$0xff] %v1395_v29  ;;  %v1399_v31 = vld [vmem:[%s6793_s22 + $0xf8] sm:$0xff]  ;;  %v1401_v32 = vld [vmem:[%s6793_s22 + $0x100] sm:$0xff] }
  0x1f   : > { %1398 = vst [vmem:[%s6798_s23 + $0xf0] sm:$0xff] %v1397_v30  ;;  %1400 = vst [vmem:[%s6798_s23 + $0xf8] sm:$0xff] %v1399_v31  ;;  %v1403_v33 = vld [vmem:[%s6793_s22 + $0x108] sm:$0xff]  ;;  %v1405_v34 = vld [vmem:[%s6793_s22 + $0x110] sm:$0xff] }
  0x20   : > { %1402 = vst [vmem:[%s6798_s23 + $0x100] sm:$0xff] %v1401_v32  ;;  %v1407_v35 = vld [vmem:[%s6793_s22 + $0x118] sm:$0xff]  ;;  %1404 = vst [vmem:[%s6798_s23 + $0x108] sm:$0xff] %v1403_v33  ;;  %v1409_v36 = vld [vmem:[%s6793_s22 + $0x120] sm:$0xff] }
  0x21   : > { %1406 = vst [vmem:[%s6798_s23 + $0x110] sm:$0xff] %v1405_v34  ;;  %1408 = vst [vmem:[%s6798_s23 + $0x118] sm:$0xff] %v1407_v35  ;;  %v1411_v37 = vld [vmem:[%s6793_s22 + $0x128] sm:$0xff]  ;;  %v1413_v38 = vld [vmem:[%s6793_s22 + $0x130] sm:$0xff] }
  0x22   : > { %1410 = vst [vmem:[%s6798_s23 + $0x120] sm:$0xff] %v1409_v36  ;;  %1412 = vst [vmem:[%s6798_s23 + $0x128] sm:$0xff] %v1411_v37  ;;  %v1415_v39 = vld [vmem:[%s6793_s22 + $0x138] sm:$0xff]  ;;  %v1417_v40 = vld [vmem:[%s6793_s22 + $0x140] sm:$0xff] }
  0x23   : > { %1414 = vst [vmem:[%s6798_s23 + $0x130] sm:$0xff] %v1413_v38  ;;  %v1419_v41 = vld [vmem:[%s6793_s22 + $0x148] sm:$0xff]  ;;  %1416 = vst [vmem:[%s6798_s23 + $0x138] sm:$0xff] %v1415_v39  ;;  %v1421_v42 = vld [vmem:[%s6793_s22 + $0x150] sm:$0xff] }
  0x24   : > { %1418 = vst [vmem:[%s6798_s23 + $0x140] sm:$0xff] %v1417_v40  ;;  %1420 = vst [vmem:[%s6798_s23 + $0x148] sm:$0xff] %v1419_v41  ;;  %v1423_v43 = vld [vmem:[%s6793_s22 + $0x158] sm:$0xff]  ;;  %v1425_v44 = vld [vmem:[%s6793_s22 + $0x160] sm:$0xff] }
  0x25   : > { %1422 = vst [vmem:[%s6798_s23 + $0x150] sm:$0xff] %v1421_v42  ;;  %1424 = vst [vmem:[%s6798_s23 + $0x158] sm:$0xff] %v1423_v43  ;;  %v1427_v45 = vld [vmem:[%s6793_s22 + $0x168] sm:$0xff]  ;;  %v1429_v46 = vld [vmem:[%s6793_s22 + $0x170] sm:$0xff] }
  0x26   : > { %1426 = vst [vmem:[%s6798_s23 + $0x160] sm:$0xff] %v1425_v44  ;;  %v1431_v47 = vld [vmem:[%s6793_s22 + $0x178] sm:$0xff]  ;;  %1428 = vst [vmem:[%s6798_s23 + $0x168] sm:$0xff] %v1427_v45  ;;  %v1433_v48 = vld [vmem:[%s6793_s22 + $0x180] sm:$0xff] }
  0x27   : > { %1430 = vst [vmem:[%s6798_s23 + $0x170] sm:$0xff] %v1429_v46  ;;  %1432 = vst [vmem:[%s6798_s23 + $0x178] sm:$0xff] %v1431_v47  ;;  %v1435_v49 = vld [vmem:[%s6793_s22 + $0x188] sm:$0xff]  ;;  %v1437_v50 = vld [vmem:[%s6793_s22 + $0x190] sm:$0xff] }
  0x28   : > { %1434 = vst [vmem:[%s6798_s23 + $0x180] sm:$0xff] %v1433_v48  ;;  %1436 = vst [vmem:[%s6798_s23 + $0x188] sm:$0xff] %v1435_v49  ;;  %v1439_v51 = vld [vmem:[%s6793_s22 + $0x198] sm:$0xff]  ;;  %v1441_v52 = vld [vmem:[%s6793_s22 + $0x1a0] sm:$0xff] }
  0x29   : > { %1438 = vst [vmem:[%s6798_s23 + $0x190] sm:$0xff] %v1437_v50  ;;  %v1443_v53 = vld [vmem:[%s6793_s22 + $0x1a8] sm:$0xff]  ;;  %1440 = vst [vmem:[%s6798_s23 + $0x198] sm:$0xff] %v1439_v51  ;;  %v1445_v54 = vld [vmem:[%s6793_s22 + $0x1b0] sm:$0xff] }
  0x2a   : > { %1442 = vst [vmem:[%s6798_s23 + $0x1a0] sm:$0xff] %v1441_v52  ;;  %1444 = vst [vmem:[%s6798_s23 + $0x1a8] sm:$0xff] %v1443_v53  ;;  %v1447_v55 = vld [vmem:[%s6793_s22 + $0x1b8] sm:$0xff]  ;;  %v1449_v56 = vld [vmem:[%s6793_s22 + $0x1c0] sm:$0xff] }
  0x2b   : > { %1446 = vst [vmem:[%s6798_s23 + $0x1b0] sm:$0xff] %v1445_v54  ;;  %1448 = vst [vmem:[%s6798_s23 + $0x1b8] sm:$0xff] %v1447_v55  ;;  %v1451_v57 = vld [vmem:[%s6793_s22 + $0x1c8] sm:$0xff]  ;;  %v1453_v58 = vld [vmem:[%s6793_s22 + $0x1d0] sm:$0xff] }
  0x2c   : > { %1450 = vst [vmem:[%s6798_s23 + $0x1c0] sm:$0xff] %v1449_v56  ;;  %v1455_v59 = vld [vmem:[%s6793_s22 + $0x1d8] sm:$0xff]  ;;  %1452 = vst [vmem:[%s6798_s23 + $0x1c8] sm:$0xff] %v1451_v57  ;;  %v1457_v60 = vld [vmem:[%s6793_s22 + $0x1e0] sm:$0xff] }
  0x2d   : > { %1454 = vst [vmem:[%s6798_s23 + $0x1d0] sm:$0xff] %v1453_v58  ;;  %1456 = vst [vmem:[%s6798_s23 + $0x1d8] sm:$0xff] %v1455_v59  ;;  %v1459_v61 = vld [vmem:[%s6793_s22 + $0x1e8] sm:$0xff]  ;;  %v1461_v62 = vld [vmem:[%s6793_s22 + $0x1f0] sm:$0xff] }
  0x2e   : > { %1458 = vst [vmem:[%s6798_s23 + $0x1e0] sm:$0xff] %v1457_v60  ;;  %1460 = vst [vmem:[%s6798_s23 + $0x1e8] sm:$0xff] %v1459_v61  ;;  %v1463_v63 = vld [vmem:[%s6793_s22 + $0x1f8] sm:$0xff]  ;;  %v1465_v0 = vld [vmem:[%s6793_s22 + $0x400] sm:$0xff] }
  0x2f   : > { %1462 = vst [vmem:[%s6798_s23 + $0x1f0] sm:$0xff] %v1461_v62  ;;  %v1467_v1 = vld [vmem:[%s6793_s22 + $0x408] sm:$0xff]  ;;  %1464 = vst [vmem:[%s6798_s23 + $0x1f8] sm:$0xff] %v1463_v63  ;;  %v1469_v2 = vld [vmem:[%s6793_s22 + $0x410] sm:$0xff] }
  0x30   : > { %1466 = vst [vmem:[%s6798_s23 + $0x200] sm:$0xff] %v1465_v0  ;;  %1468 = vst [vmem:[%s6798_s23 + $0x208] sm:$0xff] %v1467_v1  ;;  %v1471_v3 = vld [vmem:[%s6793_s22 + $0x418] sm:$0xff]  ;;  %v1473_v4 = vld [vmem:[%s6793_s22 + $0x420] sm:$0xff] }
  0x31   : > { %1470 = vst [vmem:[%s6798_s23 + $0x210] sm:$0xff] %v1469_v2  ;;  %1472 = vst [vmem:[%s6798_s23 + $0x218] sm:$0xff] %v1471_v3  ;;  %v1475_v5 = vld [vmem:[%s6793_s22 + $0x428] sm:$0xff]  ;;  %v1477_v6 = vld [vmem:[%s6793_s22 + $0x430] sm:$0xff] }
  0x32   : > { %1474 = vst [vmem:[%s6798_s23 + $0x220] sm:$0xff] %v1473_v4  ;;  %v1479_v7 = vld [vmem:[%s6793_s22 + $0x438] sm:$0xff]  ;;  %1476 = vst [vmem:[%s6798_s23 + $0x228] sm:$0xff] %v1475_v5  ;;  %v1481_v8 = vld [vmem:[%s6793_s22 + $0x440] sm:$0xff] }
  0x33   : > { %1478 = vst [vmem:[%s6798_s23 + $0x230] sm:$0xff] %v1477_v6  ;;  %1480 = vst [vmem:[%s6798_s23 + $0x238] sm:$0xff] %v1479_v7  ;;  %v1483_v9 = vld [vmem:[%s6793_s22 + $0x448] sm:$0xff]  ;;  %v1485_v10 = vld [vmem:[%s6793_s22 + $0x450] sm:$0xff] }
  0x34   : > { %1482 = vst [vmem:[%s6798_s23 + $0x240] sm:$0xff] %v1481_v8  ;;  %1484 = vst [vmem:[%s6798_s23 + $0x248] sm:$0xff] %v1483_v9  ;;  %v1487_v11 = vld [vmem:[%s6793_s22 + $0x458] sm:$0xff]  ;;  %v1489_v12 = vld [vmem:[%s6793_s22 + $0x460] sm:$0xff] }
  0x35   : > { %1486 = vst [vmem:[%s6798_s23 + $0x250] sm:$0xff] %v1485_v10  ;;  %v1491_v13 = vld [vmem:[%s6793_s22 + $0x468] sm:$0xff]  ;;  %1488 = vst [vmem:[%s6798_s23 + $0x258] sm:$0xff] %v1487_v11  ;;  %v1493_v14 = vld [vmem:[%s6793_s22 + $0x470] sm:$0xff] }
  0x36   : > { %1490 = vst [vmem:[%s6798_s23 + $0x260] sm:$0xff] %v1489_v12  ;;  %1492 = vst [vmem:[%s6798_s23 + $0x268] sm:$0xff] %v1491_v13  ;;  %v1495_v15 = vld [vmem:[%s6793_s22 + $0x478] sm:$0xff]  ;;  %v1497_v16 = vld [vmem:[%s6793_s22 + $0x480] sm:$0xff] }
  0x37   : > { %1494 = vst [vmem:[%s6798_s23 + $0x270] sm:$0xff] %v1493_v14  ;;  %1496 = vst [vmem:[%s6798_s23 + $0x278] sm:$0xff] %v1495_v15  ;;  %v1499_v17 = vld [vmem:[%s6793_s22 + $0x488] sm:$0xff]  ;;  %v1501_v18 = vld [vmem:[%s6793_s22 + $0x490] sm:$0xff] }
  0x38   : > { %1498 = vst [vmem:[%s6798_s23 + $0x280] sm:$0xff] %v1497_v16  ;;  %v1503_v19 = vld [vmem:[%s6793_s22 + $0x498] sm:$0xff]  ;;  %1500 = vst [vmem:[%s6798_s23 + $0x288] sm:$0xff] %v1499_v17  ;;  %v1505_v20 = vld [vmem:[%s6793_s22 + $0x4a0] sm:$0xff] }
  0x39   : > { %1502 = vst [vmem:[%s6798_s23 + $0x290] sm:$0xff] %v1501_v18  ;;  %1504 = vst [vmem:[%s6798_s23 + $0x298] sm:$0xff] %v1503_v19  ;;  %v1507_v21 = vld [vmem:[%s6793_s22 + $0x4a8] sm:$0xff]  ;;  %v1509_v22 = vld [vmem:[%s6793_s22 + $0x4b0] sm:$0xff] }
  0x3a   : > { %1506 = vst [vmem:[%s6798_s23 + $0x2a0] sm:$0xff] %v1505_v20  ;;  %1508 = vst [vmem:[%s6798_s23 + $0x2a8] sm:$0xff] %v1507_v21  ;;  %v1511_v23 = vld [vmem:[%s6793_s22 + $0x4b8] sm:$0xff]  ;;  %v1513_v24 = vld [vmem:[%s6793_s22 + $0x4c0] sm:$0xff] }
  0x3b   : > { %1510 = vst [vmem:[%s6798_s23 + $0x2b0] sm:$0xff] %v1509_v22  ;;  %v1515_v25 = vld [vmem:[%s6793_s22 + $0x4c8] sm:$0xff]  ;;  %1512 = vst [vmem:[%s6798_s23 + $0x2b8] sm:$0xff] %v1511_v23  ;;  %v1517_v26 = vld [vmem:[%s6793_s22 + $0x4d0] sm:$0xff] }
  0x3c   : > { %1514 = vst [vmem:[%s6798_s23 + $0x2c0] sm:$0xff] %v1513_v24  ;;  %1516 = vst [vmem:[%s6798_s23 + $0x2c8] sm:$0xff] %v1515_v25  ;;  %v1519_v27 = vld [vmem:[%s6793_s22 + $0x4d8] sm:$0xff]  ;;  %v1521_v28 = vld [vmem:[%s6793_s22 + $0x4e0] sm:$0xff] }
  0x3d   : > { %1518 = vst [vmem:[%s6798_s23 + $0x2d0] sm:$0xff] %v1517_v26  ;;  %1520 = vst [vmem:[%s6798_s23 + $0x2d8] sm:$0xff] %v1519_v27  ;;  %v1523_v29 = vld [vmem:[%s6793_s22 + $0x4e8] sm:$0xff]  ;;  %v1525_v30 = vld [vmem:[%s6793_s22 + $0x4f0] sm:$0xff] }
  0x3e   : > { %1522 = vst [vmem:[%s6798_s23 + $0x2e0] sm:$0xff] %v1521_v28  ;;  %v1527_v31 = vld [vmem:[%s6793_s22 + $0x4f8] sm:$0xff]  ;;  %1524 = vst [vmem:[%s6798_s23 + $0x2e8] sm:$0xff] %v1523_v29  ;;  %v1529_v32 = vld [vmem:[%s6793_s22 + $0x500] sm:$0xff] }
  0x3f   : > { %1526 = vst [vmem:[%s6798_s23 + $0x2f0] sm:$0xff] %v1525_v30  ;;  %1528 = vst [vmem:[%s6798_s23 + $0x2f8] sm:$0xff] %v1527_v31  ;;  %v1531_v33 = vld [vmem:[%s6793_s22 + $0x508] sm:$0xff]  ;;  %v1533_v34 = vld [vmem:[%s6793_s22 + $0x510] sm:$0xff] }
  0x40   : > { %1530 = vst [vmem:[%s6798_s23 + $0x300] sm:$0xff] %v1529_v32  ;;  %1532 = vst [vmem:[%s6798_s23 + $0x308] sm:$0xff] %v1531_v33  ;;  %v1535_v35 = vld [vmem:[%s6793_s22 + $0x518] sm:$0xff]  ;;  %v1537_v36 = vld [vmem:[%s6793_s22 + $0x520] sm:$0xff] }
  0x41   : > { %1534 = vst [vmem:[%s6798_s23 + $0x310] sm:$0xff] %v1533_v34  ;;  %v1539_v37 = vld [vmem:[%s6793_s22 + $0x528] sm:$0xff]  ;;  %1536 = vst [vmem:[%s6798_s23 + $0x318] sm:$0xff] %v1535_v35  ;;  %v1541_v38 = vld [vmem:[%s6793_s22 + $0x530] sm:$0xff] }
  0x42   : > { %1538 = vst [vmem:[%s6798_s23 + $0x320] sm:$0xff] %v1537_v36  ;;  %1540 = vst [vmem:[%s6798_s23 + $0x328] sm:$0xff] %v1539_v37  ;;  %v1543_v39 = vld [vmem:[%s6793_s22 + $0x538] sm:$0xff]  ;;  %v1545_v40 = vld [vmem:[%s6793_s22 + $0x540] sm:$0xff] }
  0x43   : > { %1542 = vst [vmem:[%s6798_s23 + $0x330] sm:$0xff] %v1541_v38  ;;  %1544 = vst [vmem:[%s6798_s23 + $0x338] sm:$0xff] %v1543_v39  ;;  %v1547_v41 = vld [vmem:[%s6793_s22 + $0x548] sm:$0xff]  ;;  %v1549_v42 = vld [vmem:[%s6793_s22 + $0x550] sm:$0xff] }
  0x44   : > { %1546 = vst [vmem:[%s6798_s23 + $0x340] sm:$0xff] %v1545_v40  ;;  %v1551_v43 = vld [vmem:[%s6793_s22 + $0x558] sm:$0xff]  ;;  %1548 = vst [vmem:[%s6798_s23 + $0x348] sm:$0xff] %v1547_v41  ;;  %v1553_v44 = vld [vmem:[%s6793_s22 + $0x560] sm:$0xff] }
  0x45   : > { %1550 = vst [vmem:[%s6798_s23 + $0x350] sm:$0xff] %v1549_v42  ;;  %1552 = vst [vmem:[%s6798_s23 + $0x358] sm:$0xff] %v1551_v43  ;;  %v1555_v45 = vld [vmem:[%s6793_s22 + $0x568] sm:$0xff]  ;;  %v1557_v46 = vld [vmem:[%s6793_s22 + $0x570] sm:$0xff] }
  0x46   : > { %1554 = vst [vmem:[%s6798_s23 + $0x360] sm:$0xff] %v1553_v44  ;;  %1556 = vst [vmem:[%s6798_s23 + $0x368] sm:$0xff] %v1555_v45  ;;  %v1559_v47 = vld [vmem:[%s6793_s22 + $0x578] sm:$0xff]  ;;  %v1561_v48 = vld [vmem:[%s6793_s22 + $0x580] sm:$0xff] }
  0x47   : > { %1558 = vst [vmem:[%s6798_s23 + $0x370] sm:$0xff] %v1557_v46  ;;  %v1563_v49 = vld [vmem:[%s6793_s22 + $0x588] sm:$0xff]  ;;  %1560 = vst [vmem:[%s6798_s23 + $0x378] sm:$0xff] %v1559_v47  ;;  %v1565_v50 = vld [vmem:[%s6793_s22 + $0x590] sm:$0xff] }
  0x48   : > { %1562 = vst [vmem:[%s6798_s23 + $0x380] sm:$0xff] %v1561_v48  ;;  %1564 = vst [vmem:[%s6798_s23 + $0x388] sm:$0xff] %v1563_v49  ;;  %v1567_v51 = vld [vmem:[%s6793_s22 + $0x598] sm:$0xff]  ;;  %v1569_v52 = vld [vmem:[%s6793_s22 + $0x5a0] sm:$0xff] }
  0x49   : > { %1566 = vst [vmem:[%s6798_s23 + $0x390] sm:$0xff] %v1565_v50  ;;  %1568 = vst [vmem:[%s6798_s23 + $0x398] sm:$0xff] %v1567_v51  ;;  %v1571_v53 = vld [vmem:[%s6793_s22 + $0x5a8] sm:$0xff]  ;;  %v1573_v54 = vld [vmem:[%s6793_s22 + $0x5b0] sm:$0xff] }
  0x4a   : > { %1570 = vst [vmem:[%s6798_s23 + $0x3a0] sm:$0xff] %v1569_v52  ;;  %v1575_v55 = vld [vmem:[%s6793_s22 + $0x5b8] sm:$0xff]  ;;  %1572 = vst [vmem:[%s6798_s23 + $0x3a8] sm:$0xff] %v1571_v53  ;;  %v1577_v56 = vld [vmem:[%s6793_s22 + $0x5c0] sm:$0xff] }
  0x4b   : > { %1574 = vst [vmem:[%s6798_s23 + $0x3b0] sm:$0xff] %v1573_v54  ;;  %1576 = vst [vmem:[%s6798_s23 + $0x3b8] sm:$0xff] %v1575_v55  ;;  %v1579_v57 = vld [vmem:[%s6793_s22 + $0x5c8] sm:$0xff]  ;;  %v1581_v58 = vld [vmem:[%s6793_s22 + $0x5d0] sm:$0xff] }
  0x4c   : > { %1578 = vst [vmem:[%s6798_s23 + $0x3c0] sm:$0xff] %v1577_v56  ;;  %1580 = vst [vmem:[%s6798_s23 + $0x3c8] sm:$0xff] %v1579_v57  ;;  %v1583_v59 = vld [vmem:[%s6793_s22 + $0x5d8] sm:$0xff]  ;;  %v1585_v60 = vld [vmem:[%s6793_s22 + $0x5e0] sm:$0xff] }
  0x4d   : > { %1582 = vst [vmem:[%s6798_s23 + $0x3d0] sm:$0xff] %v1581_v58  ;;  %v1587_v61 = vld [vmem:[%s6793_s22 + $0x5e8] sm:$0xff]  ;;  %1584 = vst [vmem:[%s6798_s23 + $0x3d8] sm:$0xff] %v1583_v59  ;;  %v1589_v62 = vld [vmem:[%s6793_s22 + $0x5f0] sm:$0xff] }
  0x4e   : > { %1586 = vst [vmem:[%s6798_s23 + $0x3e0] sm:$0xff] %v1585_v60  ;;  %1588 = vst [vmem:[%s6798_s23 + $0x3e8] sm:$0xff] %v1587_v61  ;;  %v1591_v63 = vld [vmem:[%s6793_s22 + $0x5f8] sm:$0xff]  ;;  %v1593_v0 = vld [vmem:[%s6793_s22 + $0x800] sm:$0xff] }
  0x4f   : > { %1590 = vst [vmem:[%s6798_s23 + $0x3f0] sm:$0xff] %v1589_v62  ;;  %1592 = vst [vmem:[%s6798_s23 + $0x3f8] sm:$0xff] %v1591_v63  ;;  %v1595_v1 = vld [vmem:[%s6793_s22 + $0x808] sm:$0xff]  ;;  %v1597_v2 = vld [vmem:[%s6793_s22 + $0x810] sm:$0xff] }
  0x50   : > { %1594 = vst [vmem:[%s6798_s23 + $0x400] sm:$0xff] %v1593_v0  ;;  %v1599_v3 = vld [vmem:[%s6793_s22 + $0x818] sm:$0xff]  ;;  %1596 = vst [vmem:[%s6798_s23 + $0x408] sm:$0xff] %v1595_v1  ;;  %v1601_v4 = vld [vmem:[%s6793_s22 + $0x820] sm:$0xff] }
  0x51   : > { %1598 = vst [vmem:[%s6798_s23 + $0x410] sm:$0xff] %v1597_v2  ;;  %1600 = vst [vmem:[%s6798_s23 + $0x418] sm:$0xff] %v1599_v3  ;;  %v1603_v5 = vld [vmem:[%s6793_s22 + $0x828] sm:$0xff]  ;;  %v1605_v6 = vld [vmem:[%s6793_s22 + $0x830] sm:$0xff] }
  0x52   : > { %1602 = vst [vmem:[%s6798_s23 + $0x420] sm:$0xff] %v1601_v4  ;;  %1604 = vst [vmem:[%s6798_s23 + $0x428] sm:$0xff] %v1603_v5  ;;  %v1607_v7 = vld [vmem:[%s6793_s22 + $0x838] sm:$0xff]  ;;  %v1609_v8 = vld [vmem:[%s6793_s22 + $0x840] sm:$0xff] }
  0x53   : > { %1606 = vst [vmem:[%s6798_s23 + $0x430] sm:$0xff] %v1605_v6  ;;  %v1611_v9 = vld [vmem:[%s6793_s22 + $0x848] sm:$0xff]  ;;  %1608 = vst [vmem:[%s6798_s23 + $0x438] sm:$0xff] %v1607_v7  ;;  %v1613_v10 = vld [vmem:[%s6793_s22 + $0x850] sm:$0xff] }
  0x54   : > { %1610 = vst [vmem:[%s6798_s23 + $0x440] sm:$0xff] %v1609_v8  ;;  %1612 = vst [vmem:[%s6798_s23 + $0x448] sm:$0xff] %v1611_v9  ;;  %v1615_v11 = vld [vmem:[%s6793_s22 + $0x858] sm:$0xff]  ;;  %v1617_v12 = vld [vmem:[%s6793_s22 + $0x860] sm:$0xff] }
  0x55   : > { %1614 = vst [vmem:[%s6798_s23 + $0x450] sm:$0xff] %v1613_v10  ;;  %1616 = vst [vmem:[%s6798_s23 + $0x458] sm:$0xff] %v1615_v11  ;;  %v1619_v13 = vld [vmem:[%s6793_s22 + $0x868] sm:$0xff]  ;;  %v1621_v14 = vld [vmem:[%s6793_s22 + $0x870] sm:$0xff] }
  0x56   : > { %1618 = vst [vmem:[%s6798_s23 + $0x460] sm:$0xff] %v1617_v12  ;;  %v1623_v15 = vld [vmem:[%s6793_s22 + $0x878] sm:$0xff]  ;;  %1620 = vst [vmem:[%s6798_s23 + $0x468] sm:$0xff] %v1619_v13  ;;  %v1625_v16 = vld [vmem:[%s6793_s22 + $0x880] sm:$0xff] }
  0x57   : > { %1622 = vst [vmem:[%s6798_s23 + $0x470] sm:$0xff] %v1621_v14  ;;  %1624 = vst [vmem:[%s6798_s23 + $0x478] sm:$0xff] %v1623_v15  ;;  %v1627_v17 = vld [vmem:[%s6793_s22 + $0x888] sm:$0xff]  ;;  %v1629_v18 = vld [vmem:[%s6793_s22 + $0x890] sm:$0xff] }
  0x58   : > { %1626 = vst [vmem:[%s6798_s23 + $0x480] sm:$0xff] %v1625_v16  ;;  %1628 = vst [vmem:[%s6798_s23 + $0x488] sm:$0xff] %v1627_v17  ;;  %v1631_v19 = vld [vmem:[%s6793_s22 + $0x898] sm:$0xff]  ;;  %v1633_v20 = vld [vmem:[%s6793_s22 + $0x8a0] sm:$0xff] }
  0x59   : > { %1630 = vst [vmem:[%s6798_s23 + $0x490] sm:$0xff] %v1629_v18  ;;  %v1635_v21 = vld [vmem:[%s6793_s22 + $0x8a8] sm:$0xff]  ;;  %1632 = vst [vmem:[%s6798_s23 + $0x498] sm:$0xff] %v1631_v19  ;;  %v1637_v22 = vld [vmem:[%s6793_s22 + $0x8b0] sm:$0xff] }
  0x5a   : > { %1634 = vst [vmem:[%s6798_s23 + $0x4a0] sm:$0xff] %v1633_v20  ;;  %1636 = vst [vmem:[%s6798_s23 + $0x4a8] sm:$0xff] %v1635_v21  ;;  %v1639_v23 = vld [vmem:[%s6793_s22 + $0x8b8] sm:$0xff]  ;;  %v1641_v24 = vld [vmem:[%s6793_s22 + $0x8c0] sm:$0xff] }
  0x5b   : > { %1638 = vst [vmem:[%s6798_s23 + $0x4b0] sm:$0xff] %v1637_v22  ;;  %1640 = vst [vmem:[%s6798_s23 + $0x4b8] sm:$0xff] %v1639_v23  ;;  %v1643_v25 = vld [vmem:[%s6793_s22 + $0x8c8] sm:$0xff]  ;;  %v1645_v26 = vld [vmem:[%s6793_s22 + $0x8d0] sm:$0xff] }
  0x5c   : > { %1642 = vst [vmem:[%s6798_s23 + $0x4c0] sm:$0xff] %v1641_v24  ;;  %v1647_v27 = vld [vmem:[%s6793_s22 + $0x8d8] sm:$0xff]  ;;  %1644 = vst [vmem:[%s6798_s23 + $0x4c8] sm:$0xff] %v1643_v25  ;;  %v1649_v28 = vld [vmem:[%s6793_s22 + $0x8e0] sm:$0xff] }
  0x5d   : > { %1646 = vst [vmem:[%s6798_s23 + $0x4d0] sm:$0xff] %v1645_v26  ;;  %1648 = vst [vmem:[%s6798_s23 + $0x4d8] sm:$0xff] %v1647_v27  ;;  %v1651_v29 = vld [vmem:[%s6793_s22 + $0x8e8] sm:$0xff]  ;;  %v1653_v30 = vld [vmem:[%s6793_s22 + $0x8f0] sm:$0xff] }
  0x5e   : > { %1650 = vst [vmem:[%s6798_s23 + $0x4e0] sm:$0xff] %v1649_v28  ;;  %1652 = vst [vmem:[%s6798_s23 + $0x4e8] sm:$0xff] %v1651_v29  ;;  %v1655_v31 = vld [vmem:[%s6793_s22 + $0x8f8] sm:$0xff]  ;;  %v1657_v32 = vld [vmem:[%s6793_s22 + $0x900] sm:$0xff] }
  0x5f   : > { %1654 = vst [vmem:[%s6798_s23 + $0x4f0] sm:$0xff] %v1653_v30  ;;  %v1659_v33 = vld [vmem:[%s6793_s22 + $0x908] sm:$0xff]  ;;  %1656 = vst [vmem:[%s6798_s23 + $0x4f8] sm:$0xff] %v1655_v31  ;;  %v1661_v34 = vld [vmem:[%s6793_s22 + $0x910] sm:$0xff] }
  0x60   : > { %1658 = vst [vmem:[%s6798_s23 + $0x500] sm:$0xff] %v1657_v32  ;;  %1660 = vst [vmem:[%s6798_s23 + $0x508] sm:$0xff] %v1659_v33  ;;  %v1663_v35 = vld [vmem:[%s6793_s22 + $0x918] sm:$0xff]  ;;  %v1665_v36 = vld [vmem:[%s6793_s22 + $0x920] sm:$0xff] }
  0x61   : > { %1662 = vst [vmem:[%s6798_s23 + $0x510] sm:$0xff] %v1661_v34  ;;  %1664 = vst [vmem:[%s6798_s23 + $0x518] sm:$0xff] %v1663_v35  ;;  %v1667_v37 = vld [vmem:[%s6793_s22 + $0x928] sm:$0xff]  ;;  %v1669_v38 = vld [vmem:[%s6793_s22 + $0x930] sm:$0xff] }
  0x62   : > { %1666 = vst [vmem:[%s6798_s23 + $0x520] sm:$0xff] %v1665_v36  ;;  %v1671_v39 = vld [vmem:[%s6793_s22 + $0x938] sm:$0xff]  ;;  %1668 = vst [vmem:[%s6798_s23 + $0x528] sm:$0xff] %v1667_v37  ;;  %v1673_v40 = vld [vmem:[%s6793_s22 + $0x940] sm:$0xff] }
  0x63   : > { %1670 = vst [vmem:[%s6798_s23 + $0x530] sm:$0xff] %v1669_v38  ;;  %1672 = vst [vmem:[%s6798_s23 + $0x538] sm:$0xff] %v1671_v39  ;;  %v1675_v41 = vld [vmem:[%s6793_s22 + $0x948] sm:$0xff]  ;;  %v1677_v42 = vld [vmem:[%s6793_s22 + $0x950] sm:$0xff] }
  0x64   : > { %1674 = vst [vmem:[%s6798_s23 + $0x540] sm:$0xff] %v1673_v40  ;;  %1676 = vst [vmem:[%s6798_s23 + $0x548] sm:$0xff] %v1675_v41  ;;  %v1679_v43 = vld [vmem:[%s6793_s22 + $0x958] sm:$0xff]  ;;  %v1681_v44 = vld [vmem:[%s6793_s22 + $0x960] sm:$0xff] }
  0x65   : > { %1678 = vst [vmem:[%s6798_s23 + $0x550] sm:$0xff] %v1677_v42  ;;  %v1683_v45 = vld [vmem:[%s6793_s22 + $0x968] sm:$0xff]  ;;  %1680 = vst [vmem:[%s6798_s23 + $0x558] sm:$0xff] %v1679_v43  ;;  %v1685_v46 = vld [vmem:[%s6793_s22 + $0x970] sm:$0xff] }
  0x66   : > { %1682 = vst [vmem:[%s6798_s23 + $0x560] sm:$0xff] %v1681_v44  ;;  %1684 = vst [vmem:[%s6798_s23 + $0x568] sm:$0xff] %v1683_v45  ;;  %v1687_v47 = vld [vmem:[%s6793_s22 + $0x978] sm:$0xff]  ;;  %v1689_v48 = vld [vmem:[%s6793_s22 + $0x980] sm:$0xff] }
  0x67   : > { %1686 = vst [vmem:[%s6798_s23 + $0x570] sm:$0xff] %v1685_v46  ;;  %1688 = vst [vmem:[%s6798_s23 + $0x578] sm:$0xff] %v1687_v47  ;;  %v1691_v49 = vld [vmem:[%s6793_s22 + $0x988] sm:$0xff]  ;;  %v1693_v50 = vld [vmem:[%s6793_s22 + $0x990] sm:$0xff] }
  0x68   : > { %1690 = vst [vmem:[%s6798_s23 + $0x580] sm:$0xff] %v1689_v48  ;;  %v1695_v51 = vld [vmem:[%s6793_s22 + $0x998] sm:$0xff]  ;;  %1692 = vst [vmem:[%s6798_s23 + $0x588] sm:$0xff] %v1691_v49  ;;  %v1697_v52 = vld [vmem:[%s6793_s22 + $0x9a0] sm:$0xff] }
  0x69   : > { %1694 = vst [vmem:[%s6798_s23 + $0x590] sm:$0xff] %v1693_v50  ;;  %1696 = vst [vmem:[%s6798_s23 + $0x598] sm:$0xff] %v1695_v51  ;;  %v1699_v53 = vld [vmem:[%s6793_s22 + $0x9a8] sm:$0xff]  ;;  %v1701_v54 = vld [vmem:[%s6793_s22 + $0x9b0] sm:$0xff] }
  0x6a   : > { %1698 = vst [vmem:[%s6798_s23 + $0x5a0] sm:$0xff] %v1697_v52  ;;  %1700 = vst [vmem:[%s6798_s23 + $0x5a8] sm:$0xff] %v1699_v53  ;;  %v1703_v55 = vld [vmem:[%s6793_s22 + $0x9b8] sm:$0xff]  ;;  %v1705_v56 = vld [vmem:[%s6793_s22 + $0x9c0] sm:$0xff] }
  0x6b   : > { %1702 = vst [vmem:[%s6798_s23 + $0x5b0] sm:$0xff] %v1701_v54  ;;  %v1707_v57 = vld [vmem:[%s6793_s22 + $0x9c8] sm:$0xff]  ;;  %1704 = vst [vmem:[%s6798_s23 + $0x5b8] sm:$0xff] %v1703_v55  ;;  %v1709_v58 = vld [vmem:[%s6793_s22 + $0x9d0] sm:$0xff] }
  0x6c   : > { %1706 = vst [vmem:[%s6798_s23 + $0x5c0] sm:$0xff] %v1705_v56  ;;  %1708 = vst [vmem:[%s6798_s23 + $0x5c8] sm:$0xff] %v1707_v57  ;;  %v1711_v59 = vld [vmem:[%s6793_s22 + $0x9d8] sm:$0xff]  ;;  %v1713_v60 = vld [vmem:[%s6793_s22 + $0x9e0] sm:$0xff] }
  0x6d   : > { %1710 = vst [vmem:[%s6798_s23 + $0x5d0] sm:$0xff] %v1709_v58  ;;  %1712 = vst [vmem:[%s6798_s23 + $0x5d8] sm:$0xff] %v1711_v59  ;;  %v1715_v61 = vld [vmem:[%s6793_s22 + $0x9e8] sm:$0xff]  ;;  %v1717_v62 = vld [vmem:[%s6793_s22 + $0x9f0] sm:$0xff] }
  0x6e   : > { %1714 = vst [vmem:[%s6798_s23 + $0x5e0] sm:$0xff] %v1713_v60  ;;  %v1719_v63 = vld [vmem:[%s6793_s22 + $0x9f8] sm:$0xff]  ;;  %1716 = vst [vmem:[%s6798_s23 + $0x5e8] sm:$0xff] %v1715_v61  ;;  %v1721_v0 = vld [vmem:[%s6793_s22 + $0xc00] sm:$0xff] }
  0x6f   : > { %1718 = vst [vmem:[%s6798_s23 + $0x5f0] sm:$0xff] %v1717_v62  ;;  %1720 = vst [vmem:[%s6798_s23 + $0x5f8] sm:$0xff] %v1719_v63  ;;  %v1723_v1 = vld [vmem:[%s6793_s22 + $0xc08] sm:$0xff]  ;;  %v1725_v2 = vld [vmem:[%s6793_s22 + $0xc10] sm:$0xff] }
  0x70   : > { %1722 = vst [vmem:[%s6798_s23 + $0x600] sm:$0xff] %v1721_v0  ;;  %1724 = vst [vmem:[%s6798_s23 + $0x608] sm:$0xff] %v1723_v1  ;;  %v1727_v3 = vld [vmem:[%s6793_s22 + $0xc18] sm:$0xff]  ;;  %v1729_v4 = vld [vmem:[%s6793_s22 + $0xc20] sm:$0xff] }
  0x71   : > { %1726 = vst [vmem:[%s6798_s23 + $0x610] sm:$0xff] %v1725_v2  ;;  %v1731_v5 = vld [vmem:[%s6793_s22 + $0xc28] sm:$0xff]  ;;  %1728 = vst [vmem:[%s6798_s23 + $0x618] sm:$0xff] %v1727_v3  ;;  %v1733_v6 = vld [vmem:[%s6793_s22 + $0xc30] sm:$0xff] }
  0x72   : > { %1730 = vst [vmem:[%s6798_s23 + $0x620] sm:$0xff] %v1729_v4  ;;  %1732 = vst [vmem:[%s6798_s23 + $0x628] sm:$0xff] %v1731_v5  ;;  %v1735_v7 = vld [vmem:[%s6793_s22 + $0xc38] sm:$0xff]  ;;  %v1737_v8 = vld [vmem:[%s6793_s22 + $0xc40] sm:$0xff] }
  0x73   : > { %1734 = vst [vmem:[%s6798_s23 + $0x630] sm:$0xff] %v1733_v6  ;;  %1736 = vst [vmem:[%s6798_s23 + $0x638] sm:$0xff] %v1735_v7  ;;  %v1739_v9 = vld [vmem:[%s6793_s22 + $0xc48] sm:$0xff]  ;;  %v1741_v10 = vld [vmem:[%s6793_s22 + $0xc50] sm:$0xff] }
  0x74   : > { %1738 = vst [vmem:[%s6798_s23 + $0x640] sm:$0xff] %v1737_v8  ;;  %v1743_v11 = vld [vmem:[%s6793_s22 + $0xc58] sm:$0xff]  ;;  %1740 = vst [vmem:[%s6798_s23 + $0x648] sm:$0xff] %v1739_v9  ;;  %v1745_v12 = vld [vmem:[%s6793_s22 + $0xc60] sm:$0xff] }
  0x75   : > { %1742 = vst [vmem:[%s6798_s23 + $0x650] sm:$0xff] %v1741_v10  ;;  %1744 = vst [vmem:[%s6798_s23 + $0x658] sm:$0xff] %v1743_v11  ;;  %v1747_v13 = vld [vmem:[%s6793_s22 + $0xc68] sm:$0xff]  ;;  %v1749_v14 = vld [vmem:[%s6793_s22 + $0xc70] sm:$0xff] }
  0x76   : > { %1746 = vst [vmem:[%s6798_s23 + $0x660] sm:$0xff] %v1745_v12  ;;  %1748 = vst [vmem:[%s6798_s23 + $0x668] sm:$0xff] %v1747_v13  ;;  %v1751_v15 = vld [vmem:[%s6793_s22 + $0xc78] sm:$0xff]  ;;  %v1753_v16 = vld [vmem:[%s6793_s22 + $0xc80] sm:$0xff] }
  0x77   : > { %1750 = vst [vmem:[%s6798_s23 + $0x670] sm:$0xff] %v1749_v14  ;;  %v1755_v17 = vld [vmem:[%s6793_s22 + $0xc88] sm:$0xff]  ;;  %1752 = vst [vmem:[%s6798_s23 + $0x678] sm:$0xff] %v1751_v15  ;;  %v1757_v18 = vld [vmem:[%s6793_s22 + $0xc90] sm:$0xff] }
  0x78   : > { %1754 = vst [vmem:[%s6798_s23 + $0x680] sm:$0xff] %v1753_v16  ;;  %1756 = vst [vmem:[%s6798_s23 + $0x688] sm:$0xff] %v1755_v17  ;;  %v1759_v19 = vld [vmem:[%s6793_s22 + $0xc98] sm:$0xff]  ;;  %v1761_v20 = vld [vmem:[%s6793_s22 + $0xca0] sm:$0xff] }
  0x79   : > { %1758 = vst [vmem:[%s6798_s23 + $0x690] sm:$0xff] %v1757_v18  ;;  %1760 = vst [vmem:[%s6798_s23 + $0x698] sm:$0xff] %v1759_v19  ;;  %v1763_v21 = vld [vmem:[%s6793_s22 + $0xca8] sm:$0xff]  ;;  %v1765_v22 = vld [vmem:[%s6793_s22 + $0xcb0] sm:$0xff] }
  0x7a   : > { %1762 = vst [vmem:[%s6798_s23 + $0x6a0] sm:$0xff] %v1761_v20  ;;  %v1767_v23 = vld [vmem:[%s6793_s22 + $0xcb8] sm:$0xff]  ;;  %1764 = vst [vmem:[%s6798_s23 + $0x6a8] sm:$0xff] %v1763_v21  ;;  %v1769_v24 = vld [vmem:[%s6793_s22 + $0xcc0] sm:$0xff] }
  0x7b   : > { %1766 = vst [vmem:[%s6798_s23 + $0x6b0] sm:$0xff] %v1765_v22  ;;  %1768 = vst [vmem:[%s6798_s23 + $0x6b8] sm:$0xff] %v1767_v23  ;;  %v1771_v25 = vld [vmem:[%s6793_s22 + $0xcc8] sm:$0xff]  ;;  %v1773_v26 = vld [vmem:[%s6793_s22 + $0xcd0] sm:$0xff] }
  0x7c   : > { %1770 = vst [vmem:[%s6798_s23 + $0x6c0] sm:$0xff] %v1769_v24  ;;  %1772 = vst [vmem:[%s6798_s23 + $0x6c8] sm:$0xff] %v1771_v25  ;;  %v1775_v27 = vld [vmem:[%s6793_s22 + $0xcd8] sm:$0xff]  ;;  %v1777_v28 = vld [vmem:[%s6793_s22 + $0xce0] sm:$0xff] }
  0x7d   : > { %1774 = vst [vmem:[%s6798_s23 + $0x6d0] sm:$0xff] %v1773_v26  ;;  %v1779_v29 = vld [vmem:[%s6793_s22 + $0xce8] sm:$0xff]  ;;  %1776 = vst [vmem:[%s6798_s23 + $0x6d8] sm:$0xff] %v1775_v27  ;;  %v1781_v30 = vld [vmem:[%s6793_s22 + $0xcf0] sm:$0xff] }
  0x7e   : > { %1778 = vst [vmem:[%s6798_s23 + $0x6e0] sm:$0xff] %v1777_v28  ;;  %1780 = vst [vmem:[%s6798_s23 + $0x6e8] sm:$0xff] %v1779_v29  ;;  %v1783_v31 = vld [vmem:[%s6793_s22 + $0xcf8] sm:$0xff]  ;;  %v1785_v32 = vld [vmem:[%s6793_s22 + $0xd00] sm:$0xff] }
  0x7f   : > { %1782 = vst [vmem:[%s6798_s23 + $0x6f0] sm:$0xff] %v1781_v30  ;;  %1784 = vst [vmem:[%s6798_s23 + $0x6f8] sm:$0xff] %v1783_v31  ;;  %v1787_v33 = vld [vmem:[%s6793_s22 + $0xd08] sm:$0xff]  ;;  %v1789_v34 = vld [vmem:[%s6793_s22 + $0xd10] sm:$0xff] }
  0x80   : > { %1786 = vst [vmem:[%s6798_s23 + $0x700] sm:$0xff] %v1785_v32  ;;  %v1791_v35 = vld [vmem:[%s6793_s22 + $0xd18] sm:$0xff]  ;;  %1788 = vst [vmem:[%s6798_s23 + $0x708] sm:$0xff] %v1787_v33  ;;  %v1793_v36 = vld [vmem:[%s6793_s22 + $0xd20] sm:$0xff] }
  0x81   : > { %1790 = vst [vmem:[%s6798_s23 + $0x710] sm:$0xff] %v1789_v34  ;;  %1792 = vst [vmem:[%s6798_s23 + $0x718] sm:$0xff] %v1791_v35  ;;  %v1795_v37 = vld [vmem:[%s6793_s22 + $0xd28] sm:$0xff]  ;;  %v1797_v38 = vld [vmem:[%s6793_s22 + $0xd30] sm:$0xff] }
  0x82   : > { %1794 = vst [vmem:[%s6798_s23 + $0x720] sm:$0xff] %v1793_v36  ;;  %1796 = vst [vmem:[%s6798_s23 + $0x728] sm:$0xff] %v1795_v37  ;;  %v1799_v39 = vld [vmem:[%s6793_s22 + $0xd38] sm:$0xff]  ;;  %v1801_v40 = vld [vmem:[%s6793_s22 + $0xd40] sm:$0xff] }
  0x83   : > { %1798 = vst [vmem:[%s6798_s23 + $0x730] sm:$0xff] %v1797_v38  ;;  %v1803_v41 = vld [vmem:[%s6793_s22 + $0xd48] sm:$0xff]  ;;  %1800 = vst [vmem:[%s6798_s23 + $0x738] sm:$0xff] %v1799_v39  ;;  %v1805_v42 = vld [vmem:[%s6793_s22 + $0xd50] sm:$0xff] }
  0x84   : > { %1802 = vst [vmem:[%s6798_s23 + $0x740] sm:$0xff] %v1801_v40  ;;  %1804 = vst [vmem:[%s6798_s23 + $0x748] sm:$0xff] %v1803_v41  ;;  %v1807_v43 = vld [vmem:[%s6793_s22 + $0xd58] sm:$0xff]  ;;  %v1809_v44 = vld [vmem:[%s6793_s22 + $0xd60] sm:$0xff] }
  0x85   : > { %1806 = vst [vmem:[%s6798_s23 + $0x750] sm:$0xff] %v1805_v42  ;;  %1808 = vst [vmem:[%s6798_s23 + $0x758] sm:$0xff] %v1807_v43  ;;  %v1811_v45 = vld [vmem:[%s6793_s22 + $0xd68] sm:$0xff]  ;;  %v1813_v46 = vld [vmem:[%s6793_s22 + $0xd70] sm:$0xff] }
  0x86   : > { %1810 = vst [vmem:[%s6798_s23 + $0x760] sm:$0xff] %v1809_v44  ;;  %v1815_v47 = vld [vmem:[%s6793_s22 + $0xd78] sm:$0xff]  ;;  %1812 = vst [vmem:[%s6798_s23 + $0x768] sm:$0xff] %v1811_v45  ;;  %v1817_v48 = vld [vmem:[%s6793_s22 + $0xd80] sm:$0xff] }
  0x87   : > { %1814 = vst [vmem:[%s6798_s23 + $0x770] sm:$0xff] %v1813_v46  ;;  %1816 = vst [vmem:[%s6798_s23 + $0x778] sm:$0xff] %v1815_v47  ;;  %v1819_v49 = vld [vmem:[%s6793_s22 + $0xd88] sm:$0xff]  ;;  %v1821_v50 = vld [vmem:[%s6793_s22 + $0xd90] sm:$0xff] }
  0x88   : > { %1818 = vst [vmem:[%s6798_s23 + $0x780] sm:$0xff] %v1817_v48  ;;  %1820 = vst [vmem:[%s6798_s23 + $0x788] sm:$0xff] %v1819_v49  ;;  %v1823_v51 = vld [vmem:[%s6793_s22 + $0xd98] sm:$0xff]  ;;  %v1825_v52 = vld [vmem:[%s6793_s22 + $0xda0] sm:$0xff] }
  0x89   : > { %1822 = vst [vmem:[%s6798_s23 + $0x790] sm:$0xff] %v1821_v50  ;;  %v1827_v53 = vld [vmem:[%s6793_s22 + $0xda8] sm:$0xff]  ;;  %1824 = vst [vmem:[%s6798_s23 + $0x798] sm:$0xff] %v1823_v51  ;;  %v1829_v54 = vld [vmem:[%s6793_s22 + $0xdb0] sm:$0xff] }
  0x8a   : > { %1826 = vst [vmem:[%s6798_s23 + $0x7a0] sm:$0xff] %v1825_v52  ;;  %1828 = vst [vmem:[%s6798_s23 + $0x7a8] sm:$0xff] %v1827_v53  ;;  %v1831_v55 = vld [vmem:[%s6793_s22 + $0xdb8] sm:$0xff]  ;;  %v1833_v56 = vld [vmem:[%s6793_s22 + $0xdc0] sm:$0xff] }
  0x8b   : > { %1830 = vst [vmem:[%s6798_s23 + $0x7b0] sm:$0xff] %v1829_v54  ;;  %1832 = vst [vmem:[%s6798_s23 + $0x7b8] sm:$0xff] %v1831_v55  ;;  %v1835_v57 = vld [vmem:[%s6793_s22 + $0xdc8] sm:$0xff]  ;;  %v1837_v58 = vld [vmem:[%s6793_s22 + $0xdd0] sm:$0xff] }
  0x8c   : > { %1834 = vst [vmem:[%s6798_s23 + $0x7c0] sm:$0xff] %v1833_v56  ;;  %v1839_v59 = vld [vmem:[%s6793_s22 + $0xdd8] sm:$0xff]  ;;  %1836 = vst [vmem:[%s6798_s23 + $0x7c8] sm:$0xff] %v1835_v57  ;;  %v1841_v60 = vld [vmem:[%s6793_s22 + $0xde0] sm:$0xff] }
  0x8d   : > { %1838 = vst [vmem:[%s6798_s23 + $0x7d0] sm:$0xff] %v1837_v58  ;;  %1840 = vst [vmem:[%s6798_s23 + $0x7d8] sm:$0xff] %v1839_v59  ;;  %v1843_v61 = vld [vmem:[%s6793_s22 + $0xde8] sm:$0xff]  ;;  %v1845_v62 = vld [vmem:[%s6793_s22 + $0xdf0] sm:$0xff] }
  0x8e   : > { %1842 = vst [vmem:[%s6798_s23 + $0x7e0] sm:$0xff] %v1841_v60  ;;  %1844 = vst [vmem:[%s6798_s23 + $0x7e8] sm:$0xff] %v1843_v61  ;;  %v1847_v63 = vld [vmem:[%s6793_s22 + $0xdf8] sm:$0xff]  ;;  %v1849_v0 = vld [vmem:[%s6793_s22 + $0x1000] sm:$0xff] }
  0x8f   : > { %1846 = vst [vmem:[%s6798_s23 + $0x7f0] sm:$0xff] %v1845_v62  ;;  %v1851_v1 = vld [vmem:[%s6793_s22 + $0x1008] sm:$0xff]  ;;  %1848 = vst [vmem:[%s6798_s23 + $0x7f8] sm:$0xff] %v1847_v63  ;;  %v1853_v2 = vld [vmem:[%s6793_s22 + $0x1010] sm:$0xff] }
  0x90   : > { %1850 = vst [vmem:[%s6798_s23 + $0x800] sm:$0xff] %v1849_v0  ;;  %1852 = vst [vmem:[%s6798_s23 + $0x808] sm:$0xff] %v1851_v1  ;;  %v1855_v3 = vld [vmem:[%s6793_s22 + $0x1018] sm:$0xff]  ;;  %v1857_v4 = vld [vmem:[%s6793_s22 + $0x1020] sm:$0xff] }
  0x91   : > { %1854 = vst [vmem:[%s6798_s23 + $0x810] sm:$0xff] %v1853_v2  ;;  %1856 = vst [vmem:[%s6798_s23 + $0x818] sm:$0xff] %v1855_v3  ;;  %v1859_v5 = vld [vmem:[%s6793_s22 + $0x1028] sm:$0xff]  ;;  %v1861_v6 = vld [vmem:[%s6793_s22 + $0x1030] sm:$0xff] }
  0x92   : > { %1858 = vst [vmem:[%s6798_s23 + $0x820] sm:$0xff] %v1857_v4  ;;  %v1863_v7 = vld [vmem:[%s6793_s22 + $0x1038] sm:$0xff]  ;;  %1860 = vst [vmem:[%s6798_s23 + $0x828] sm:$0xff] %v1859_v5  ;;  %v1865_v8 = vld [vmem:[%s6793_s22 + $0x1040] sm:$0xff] }
  0x93   : > { %1862 = vst [vmem:[%s6798_s23 + $0x830] sm:$0xff] %v1861_v6  ;;  %1864 = vst [vmem:[%s6798_s23 + $0x838] sm:$0xff] %v1863_v7  ;;  %v1867_v9 = vld [vmem:[%s6793_s22 + $0x1048] sm:$0xff]  ;;  %v1869_v10 = vld [vmem:[%s6793_s22 + $0x1050] sm:$0xff] }
  0x94   : > { %1866 = vst [vmem:[%s6798_s23 + $0x840] sm:$0xff] %v1865_v8  ;;  %1868 = vst [vmem:[%s6798_s23 + $0x848] sm:$0xff] %v1867_v9  ;;  %v1871_v11 = vld [vmem:[%s6793_s22 + $0x1058] sm:$0xff]  ;;  %v1873_v12 = vld [vmem:[%s6793_s22 + $0x1060] sm:$0xff] }
  0x95   : > { %1870 = vst [vmem:[%s6798_s23 + $0x850] sm:$0xff] %v1869_v10  ;;  %v1875_v13 = vld [vmem:[%s6793_s22 + $0x1068] sm:$0xff]  ;;  %1872 = vst [vmem:[%s6798_s23 + $0x858] sm:$0xff] %v1871_v11  ;;  %v1877_v14 = vld [vmem:[%s6793_s22 + $0x1070] sm:$0xff] }
  0x96   : > { %1874 = vst [vmem:[%s6798_s23 + $0x860] sm:$0xff] %v1873_v12  ;;  %1876 = vst [vmem:[%s6798_s23 + $0x868] sm:$0xff] %v1875_v13  ;;  %v1879_v15 = vld [vmem:[%s6793_s22 + $0x1078] sm:$0xff]  ;;  %v1881_v16 = vld [vmem:[%s6793_s22 + $0x1080] sm:$0xff] }
  0x97   : > { %1878 = vst [vmem:[%s6798_s23 + $0x870] sm:$0xff] %v1877_v14  ;;  %1880 = vst [vmem:[%s6798_s23 + $0x878] sm:$0xff] %v1879_v15  ;;  %v1883_v17 = vld [vmem:[%s6793_s22 + $0x1088] sm:$0xff]  ;;  %v1885_v18 = vld [vmem:[%s6793_s22 + $0x1090] sm:$0xff] }
  0x98   : > { %1882 = vst [vmem:[%s6798_s23 + $0x880] sm:$0xff] %v1881_v16  ;;  %v1887_v19 = vld [vmem:[%s6793_s22 + $0x1098] sm:$0xff]  ;;  %1884 = vst [vmem:[%s6798_s23 + $0x888] sm:$0xff] %v1883_v17  ;;  %v1889_v20 = vld [vmem:[%s6793_s22 + $0x10a0] sm:$0xff] }
  0x99   : > { %1886 = vst [vmem:[%s6798_s23 + $0x890] sm:$0xff] %v1885_v18  ;;  %1888 = vst [vmem:[%s6798_s23 + $0x898] sm:$0xff] %v1887_v19  ;;  %v1891_v21 = vld [vmem:[%s6793_s22 + $0x10a8] sm:$0xff]  ;;  %v1893_v22 = vld [vmem:[%s6793_s22 + $0x10b0] sm:$0xff] }
  0x9a   : > { %1890 = vst [vmem:[%s6798_s23 + $0x8a0] sm:$0xff] %v1889_v20  ;;  %1892 = vst [vmem:[%s6798_s23 + $0x8a8] sm:$0xff] %v1891_v21  ;;  %v1895_v23 = vld [vmem:[%s6793_s22 + $0x10b8] sm:$0xff]  ;;  %v1897_v24 = vld [vmem:[%s6793_s22 + $0x10c0] sm:$0xff] }
  0x9b   : > { %1894 = vst [vmem:[%s6798_s23 + $0x8b0] sm:$0xff] %v1893_v22  ;;  %v1899_v25 = vld [vmem:[%s6793_s22 + $0x10c8] sm:$0xff]  ;;  %1896 = vst [vmem:[%s6798_s23 + $0x8b8] sm:$0xff] %v1895_v23  ;;  %v1901_v26 = vld [vmem:[%s6793_s22 + $0x10d0] sm:$0xff] }
  0x9c   : > { %1898 = vst [vmem:[%s6798_s23 + $0x8c0] sm:$0xff] %v1897_v24  ;;  %1900 = vst [vmem:[%s6798_s23 + $0x8c8] sm:$0xff] %v1899_v25  ;;  %v1903_v27 = vld [vmem:[%s6793_s22 + $0x10d8] sm:$0xff]  ;;  %v1905_v28 = vld [vmem:[%s6793_s22 + $0x10e0] sm:$0xff] }
  0x9d   : > { %1902 = vst [vmem:[%s6798_s23 + $0x8d0] sm:$0xff] %v1901_v26  ;;  %1904 = vst [vmem:[%s6798_s23 + $0x8d8] sm:$0xff] %v1903_v27  ;;  %v1907_v29 = vld [vmem:[%s6793_s22 + $0x10e8] sm:$0xff]  ;;  %v1909_v30 = vld [vmem:[%s6793_s22 + $0x10f0] sm:$0xff] }
  0x9e   : > { %1906 = vst [vmem:[%s6798_s23 + $0x8e0] sm:$0xff] %v1905_v28  ;;  %v1911_v31 = vld [vmem:[%s6793_s22 + $0x10f8] sm:$0xff]  ;;  %1908 = vst [vmem:[%s6798_s23 + $0x8e8] sm:$0xff] %v1907_v29  ;;  %v1913_v32 = vld [vmem:[%s6793_s22 + $0x1100] sm:$0xff] }
  0x9f   : > { %1910 = vst [vmem:[%s6798_s23 + $0x8f0] sm:$0xff] %v1909_v30  ;;  %1912 = vst [vmem:[%s6798_s23 + $0x8f8] sm:$0xff] %v1911_v31  ;;  %v1915_v33 = vld [vmem:[%s6793_s22 + $0x1108] sm:$0xff]  ;;  %v1917_v34 = vld [vmem:[%s6793_s22 + $0x1110] sm:$0xff] }
  0xa0   : > { %1914 = vst [vmem:[%s6798_s23 + $0x900] sm:$0xff] %v1913_v32  ;;  %1916 = vst [vmem:[%s6798_s23 + $0x908] sm:$0xff] %v1915_v33  ;;  %v1919_v35 = vld [vmem:[%s6793_s22 + $0x1118] sm:$0xff]  ;;  %v1921_v36 = vld [vmem:[%s6793_s22 + $0x1120] sm:$0xff] }
  0xa1   : > { %1918 = vst [vmem:[%s6798_s23 + $0x910] sm:$0xff] %v1917_v34  ;;  %v1923_v37 = vld [vmem:[%s6793_s22 + $0x1128] sm:$0xff]  ;;  %1920 = vst [vmem:[%s6798_s23 + $0x918] sm:$0xff] %v1919_v35  ;;  %v1925_v38 = vld [vmem:[%s6793_s22 + $0x1130] sm:$0xff] }
  0xa2   : > { %1922 = vst [vmem:[%s6798_s23 + $0x920] sm:$0xff] %v1921_v36  ;;  %1924 = vst [vmem:[%s6798_s23 + $0x928] sm:$0xff] %v1923_v37  ;;  %v1927_v39 = vld [vmem:[%s6793_s22 + $0x1138] sm:$0xff]  ;;  %v1929_v40 = vld [vmem:[%s6793_s22 + $0x1140] sm:$0xff] }
  0xa3   : > { %1926 = vst [vmem:[%s6798_s23 + $0x930] sm:$0xff] %v1925_v38  ;;  %1928 = vst [vmem:[%s6798_s23 + $0x938] sm:$0xff] %v1927_v39  ;;  %v1931_v41 = vld [vmem:[%s6793_s22 + $0x1148] sm:$0xff]  ;;  %v1933_v42 = vld [vmem:[%s6793_s22 + $0x1150] sm:$0xff] }
  0xa4   : > { %1930 = vst [vmem:[%s6798_s23 + $0x940] sm:$0xff] %v1929_v40  ;;  %v1935_v43 = vld [vmem:[%s6793_s22 + $0x1158] sm:$0xff]  ;;  %1932 = vst [vmem:[%s6798_s23 + $0x948] sm:$0xff] %v1931_v41  ;;  %v1937_v44 = vld [vmem:[%s6793_s22 + $0x1160] sm:$0xff] }
  0xa5   : > { %1934 = vst [vmem:[%s6798_s23 + $0x950] sm:$0xff] %v1933_v42  ;;  %1936 = vst [vmem:[%s6798_s23 + $0x958] sm:$0xff] %v1935_v43  ;;  %v1939_v45 = vld [vmem:[%s6793_s22 + $0x1168] sm:$0xff]  ;;  %v1941_v46 = vld [vmem:[%s6793_s22 + $0x1170] sm:$0xff] }
  0xa6   : > { %1938 = vst [vmem:[%s6798_s23 + $0x960] sm:$0xff] %v1937_v44  ;;  %1940 = vst [vmem:[%s6798_s23 + $0x968] sm:$0xff] %v1939_v45  ;;  %v1943_v47 = vld [vmem:[%s6793_s22 + $0x1178] sm:$0xff]  ;;  %v1945_v48 = vld [vmem:[%s6793_s22 + $0x1180] sm:$0xff] }
  0xa7   : > { %1942 = vst [vmem:[%s6798_s23 + $0x970] sm:$0xff] %v1941_v46  ;;  %v1947_v49 = vld [vmem:[%s6793_s22 + $0x1188] sm:$0xff]  ;;  %1944 = vst [vmem:[%s6798_s23 + $0x978] sm:$0xff] %v1943_v47  ;;  %v1949_v50 = vld [vmem:[%s6793_s22 + $0x1190] sm:$0xff] }
  0xa8   : > { %1946 = vst [vmem:[%s6798_s23 + $0x980] sm:$0xff] %v1945_v48  ;;  %1948 = vst [vmem:[%s6798_s23 + $0x988] sm:$0xff] %v1947_v49  ;;  %v1951_v51 = vld [vmem:[%s6793_s22 + $0x1198] sm:$0xff]  ;;  %v1953_v52 = vld [vmem:[%s6793_s22 + $0x11a0] sm:$0xff] }
  0xa9   : > { %1950 = vst [vmem:[%s6798_s23 + $0x990] sm:$0xff] %v1949_v50  ;;  %1952 = vst [vmem:[%s6798_s23 + $0x998] sm:$0xff] %v1951_v51  ;;  %v1955_v53 = vld [vmem:[%s6793_s22 + $0x11a8] sm:$0xff]  ;;  %v1957_v54 = vld [vmem:[%s6793_s22 + $0x11b0] sm:$0xff] }
  0xaa   : > { %1954 = vst [vmem:[%s6798_s23 + $0x9a0] sm:$0xff] %v1953_v52  ;;  %v1959_v55 = vld [vmem:[%s6793_s22 + $0x11b8] sm:$0xff]  ;;  %1956 = vst [vmem:[%s6798_s23 + $0x9a8] sm:$0xff] %v1955_v53  ;;  %v1961_v56 = vld [vmem:[%s6793_s22 + $0x11c0] sm:$0xff] }
  0xab   : > { %1958 = vst [vmem:[%s6798_s23 + $0x9b0] sm:$0xff] %v1957_v54  ;;  %1960 = vst [vmem:[%s6798_s23 + $0x9b8] sm:$0xff] %v1959_v55  ;;  %v1963_v57 = vld [vmem:[%s6793_s22 + $0x11c8] sm:$0xff]  ;;  %v1965_v58 = vld [vmem:[%s6793_s22 + $0x11d0] sm:$0xff] }
  0xac   : > { %1962 = vst [vmem:[%s6798_s23 + $0x9c0] sm:$0xff] %v1961_v56  ;;  %1964 = vst [vmem:[%s6798_s23 + $0x9c8] sm:$0xff] %v1963_v57  ;;  %v1967_v59 = vld [vmem:[%s6793_s22 + $0x11d8] sm:$0xff]  ;;  %v1969_v60 = vld [vmem:[%s6793_s22 + $0x11e0] sm:$0xff] }
  0xad   : > { %1966 = vst [vmem:[%s6798_s23 + $0x9d0] sm:$0xff] %v1965_v58  ;;  %v1971_v61 = vld [vmem:[%s6793_s22 + $0x11e8] sm:$0xff]  ;;  %1968 = vst [vmem:[%s6798_s23 + $0x9d8] sm:$0xff] %v1967_v59  ;;  %v1973_v62 = vld [vmem:[%s6793_s22 + $0x11f0] sm:$0xff] }
  0xae   : > { %1970 = vst [vmem:[%s6798_s23 + $0x9e0] sm:$0xff] %v1969_v60  ;;  %1972 = vst [vmem:[%s6798_s23 + $0x9e8] sm:$0xff] %v1971_v61  ;;  %v1975_v63 = vld [vmem:[%s6793_s22 + $0x11f8] sm:$0xff]  ;;  %v1977_v0 = vld [vmem:[%s6793_s22 + $0x1400] sm:$0xff] }
  0xaf   : > { %1974 = vst [vmem:[%s6798_s23 + $0x9f0] sm:$0xff] %v1973_v62  ;;  %1976 = vst [vmem:[%s6798_s23 + $0x9f8] sm:$0xff] %v1975_v63  ;;  %v1979_v1 = vld [vmem:[%s6793_s22 + $0x1408] sm:$0xff]  ;;  %v1981_v2 = vld [vmem:[%s6793_s22 + $0x1410] sm:$0xff] }
  0xb0   : > { %1978 = vst [vmem:[%s6798_s23 + $0xa00] sm:$0xff] %v1977_v0  ;;  %v1983_v3 = vld [vmem:[%s6793_s22 + $0x1418] sm:$0xff]  ;;  %1980 = vst [vmem:[%s6798_s23 + $0xa08] sm:$0xff] %v1979_v1  ;;  %v1985_v4 = vld [vmem:[%s6793_s22 + $0x1420] sm:$0xff] }
  0xb1   : > { %1982 = vst [vmem:[%s6798_s23 + $0xa10] sm:$0xff] %v1981_v2  ;;  %1984 = vst [vmem:[%s6798_s23 + $0xa18] sm:$0xff] %v1983_v3  ;;  %v1987_v5 = vld [vmem:[%s6793_s22 + $0x1428] sm:$0xff]  ;;  %v1989_v6 = vld [vmem:[%s6793_s22 + $0x1430] sm:$0xff] }
  0xb2   : > { %1986 = vst [vmem:[%s6798_s23 + $0xa20] sm:$0xff] %v1985_v4  ;;  %1988 = vst [vmem:[%s6798_s23 + $0xa28] sm:$0xff] %v1987_v5  ;;  %v1991_v7 = vld [vmem:[%s6793_s22 + $0x1438] sm:$0xff]  ;;  %v1993_v8 = vld [vmem:[%s6793_s22 + $0x1440] sm:$0xff] }
  0xb3   : > { %1990 = vst [vmem:[%s6798_s23 + $0xa30] sm:$0xff] %v1989_v6  ;;  %v1995_v9 = vld [vmem:[%s6793_s22 + $0x1448] sm:$0xff]  ;;  %1992 = vst [vmem:[%s6798_s23 + $0xa38] sm:$0xff] %v1991_v7  ;;  %v1997_v10 = vld [vmem:[%s6793_s22 + $0x1450] sm:$0xff] }
  0xb4   : > { %1994 = vst [vmem:[%s6798_s23 + $0xa40] sm:$0xff] %v1993_v8  ;;  %1996 = vst [vmem:[%s6798_s23 + $0xa48] sm:$0xff] %v1995_v9  ;;  %v1999_v11 = vld [vmem:[%s6793_s22 + $0x1458] sm:$0xff]  ;;  %v2001_v12 = vld [vmem:[%s6793_s22 + $0x1460] sm:$0xff] }
  0xb5   : > { %1998 = vst [vmem:[%s6798_s23 + $0xa50] sm:$0xff] %v1997_v10  ;;  %2000 = vst [vmem:[%s6798_s23 + $0xa58] sm:$0xff] %v1999_v11  ;;  %v2003_v13 = vld [vmem:[%s6793_s22 + $0x1468] sm:$0xff]  ;;  %v2005_v14 = vld [vmem:[%s6793_s22 + $0x1470] sm:$0xff] }
  0xb6   : > { %2002 = vst [vmem:[%s6798_s23 + $0xa60] sm:$0xff] %v2001_v12  ;;  %v2007_v15 = vld [vmem:[%s6793_s22 + $0x1478] sm:$0xff]  ;;  %2004 = vst [vmem:[%s6798_s23 + $0xa68] sm:$0xff] %v2003_v13  ;;  %v2009_v16 = vld [vmem:[%s6793_s22 + $0x1480] sm:$0xff] }
  0xb7   : > { %2006 = vst [vmem:[%s6798_s23 + $0xa70] sm:$0xff] %v2005_v14  ;;  %2008 = vst [vmem:[%s6798_s23 + $0xa78] sm:$0xff] %v2007_v15  ;;  %v2011_v17 = vld [vmem:[%s6793_s22 + $0x1488] sm:$0xff]  ;;  %v2013_v18 = vld [vmem:[%s6793_s22 + $0x1490] sm:$0xff] }
  0xb8   : > { %2010 = vst [vmem:[%s6798_s23 + $0xa80] sm:$0xff] %v2009_v16  ;;  %2012 = vst [vmem:[%s6798_s23 + $0xa88] sm:$0xff] %v2011_v17  ;;  %v2015_v19 = vld [vmem:[%s6793_s22 + $0x1498] sm:$0xff]  ;;  %v2017_v20 = vld [vmem:[%s6793_s22 + $0x14a0] sm:$0xff] }
  0xb9   : > { %2014 = vst [vmem:[%s6798_s23 + $0xa90] sm:$0xff] %v2013_v18  ;;  %v2019_v21 = vld [vmem:[%s6793_s22 + $0x14a8] sm:$0xff]  ;;  %2016 = vst [vmem:[%s6798_s23 + $0xa98] sm:$0xff] %v2015_v19  ;;  %v2021_v22 = vld [vmem:[%s6793_s22 + $0x14b0] sm:$0xff] }
  0xba   : > { %2018 = vst [vmem:[%s6798_s23 + $0xaa0] sm:$0xff] %v2017_v20  ;;  %2020 = vst [vmem:[%s6798_s23 + $0xaa8] sm:$0xff] %v2019_v21  ;;  %v2023_v23 = vld [vmem:[%s6793_s22 + $0x14b8] sm:$0xff]  ;;  %v2025_v24 = vld [vmem:[%s6793_s22 + $0x14c0] sm:$0xff] }
  0xbb   : > { %2022 = vst [vmem:[%s6798_s23 + $0xab0] sm:$0xff] %v2021_v22  ;;  %2024 = vst [vmem:[%s6798_s23 + $0xab8] sm:$0xff] %v2023_v23  ;;  %v2027_v25 = vld [vmem:[%s6793_s22 + $0x14c8] sm:$0xff]  ;;  %v2029_v26 = vld [vmem:[%s6793_s22 + $0x14d0] sm:$0xff] }
  0xbc   : > { %2026 = vst [vmem:[%s6798_s23 + $0xac0] sm:$0xff] %v2025_v24  ;;  %v2031_v27 = vld [vmem:[%s6793_s22 + $0x14d8] sm:$0xff]  ;;  %2028 = vst [vmem:[%s6798_s23 + $0xac8] sm:$0xff] %v2027_v25  ;;  %v2033_v28 = vld [vmem:[%s6793_s22 + $0x14e0] sm:$0xff] }
  0xbd   : > { %2030 = vst [vmem:[%s6798_s23 + $0xad0] sm:$0xff] %v2029_v26  ;;  %2032 = vst [vmem:[%s6798_s23 + $0xad8] sm:$0xff] %v2031_v27  ;;  %v2035_v29 = vld [vmem:[%s6793_s22 + $0x14e8] sm:$0xff]  ;;  %v2037_v30 = vld [vmem:[%s6793_s22 + $0x14f0] sm:$0xff] }
  0xbe   : > { %2034 = vst [vmem:[%s6798_s23 + $0xae0] sm:$0xff] %v2033_v28  ;;  %2036 = vst [vmem:[%s6798_s23 + $0xae8] sm:$0xff] %v2035_v29  ;;  %v2039_v31 = vld [vmem:[%s6793_s22 + $0x14f8] sm:$0xff]  ;;  %v2041_v32 = vld [vmem:[%s6793_s22 + $0x1500] sm:$0xff] }
  0xbf   : > { %2038 = vst [vmem:[%s6798_s23 + $0xaf0] sm:$0xff] %v2037_v30  ;;  %v2043_v33 = vld [vmem:[%s6793_s22 + $0x1508] sm:$0xff]  ;;  %2040 = vst [vmem:[%s6798_s23 + $0xaf8] sm:$0xff] %v2039_v31  ;;  %v2045_v34 = vld [vmem:[%s6793_s22 + $0x1510] sm:$0xff] }
  0xc0   : > { %2042 = vst [vmem:[%s6798_s23 + $0xb00] sm:$0xff] %v2041_v32  ;;  %2044 = vst [vmem:[%s6798_s23 + $0xb08] sm:$0xff] %v2043_v33  ;;  %v2047_v35 = vld [vmem:[%s6793_s22 + $0x1518] sm:$0xff]  ;;  %v2049_v36 = vld [vmem:[%s6793_s22 + $0x1520] sm:$0xff] }
  0xc1   : > { %2046 = vst [vmem:[%s6798_s23 + $0xb10] sm:$0xff] %v2045_v34  ;;  %2048 = vst [vmem:[%s6798_s23 + $0xb18] sm:$0xff] %v2047_v35  ;;  %v2051_v37 = vld [vmem:[%s6793_s22 + $0x1528] sm:$0xff]  ;;  %v2053_v38 = vld [vmem:[%s6793_s22 + $0x1530] sm:$0xff] }
  0xc2   : > { %2050 = vst [vmem:[%s6798_s23 + $0xb20] sm:$0xff] %v2049_v36  ;;  %v2055_v39 = vld [vmem:[%s6793_s22 + $0x1538] sm:$0xff]  ;;  %2052 = vst [vmem:[%s6798_s23 + $0xb28] sm:$0xff] %v2051_v37  ;;  %v2057_v40 = vld [vmem:[%s6793_s22 + $0x1540] sm:$0xff] }
  0xc3   : > { %2054 = vst [vmem:[%s6798_s23 + $0xb30] sm:$0xff] %v2053_v38  ;;  %2056 = vst [vmem:[%s6798_s23 + $0xb38] sm:$0xff] %v2055_v39  ;;  %v2059_v41 = vld [vmem:[%s6793_s22 + $0x1548] sm:$0xff]  ;;  %v2061_v42 = vld [vmem:[%s6793_s22 + $0x1550] sm:$0xff] }
  0xc4   : > { %2058 = vst [vmem:[%s6798_s23 + $0xb40] sm:$0xff] %v2057_v40  ;;  %2060 = vst [vmem:[%s6798_s23 + $0xb48] sm:$0xff] %v2059_v41  ;;  %v2063_v43 = vld [vmem:[%s6793_s22 + $0x1558] sm:$0xff]  ;;  %v2065_v44 = vld [vmem:[%s6793_s22 + $0x1560] sm:$0xff] }
  0xc5   : > { %2062 = vst [vmem:[%s6798_s23 + $0xb50] sm:$0xff] %v2061_v42  ;;  %v2067_v45 = vld [vmem:[%s6793_s22 + $0x1568] sm:$0xff]  ;;  %2064 = vst [vmem:[%s6798_s23 + $0xb58] sm:$0xff] %v2063_v43  ;;  %v2069_v46 = vld [vmem:[%s6793_s22 + $0x1570] sm:$0xff] }
  0xc6   : > { %2066 = vst [vmem:[%s6798_s23 + $0xb60] sm:$0xff] %v2065_v44  ;;  %2068 = vst [vmem:[%s6798_s23 + $0xb68] sm:$0xff] %v2067_v45  ;;  %v2071_v47 = vld [vmem:[%s6793_s22 + $0x1578] sm:$0xff]  ;;  %v2073_v48 = vld [vmem:[%s6793_s22 + $0x1580] sm:$0xff] }
  0xc7   : > { %2070 = vst [vmem:[%s6798_s23 + $0xb70] sm:$0xff] %v2069_v46  ;;  %2072 = vst [vmem:[%s6798_s23 + $0xb78] sm:$0xff] %v2071_v47  ;;  %v2075_v49 = vld [vmem:[%s6793_s22 + $0x1588] sm:$0xff]  ;;  %v2077_v50 = vld [vmem:[%s6793_s22 + $0x1590] sm:$0xff] }
  0xc8   : > { %2074 = vst [vmem:[%s6798_s23 + $0xb80] sm:$0xff] %v2073_v48  ;;  %v2079_v51 = vld [vmem:[%s6793_s22 + $0x1598] sm:$0xff]  ;;  %2076 = vst [vmem:[%s6798_s23 + $0xb88] sm:$0xff] %v2075_v49  ;;  %v2081_v52 = vld [vmem:[%s6793_s22 + $0x15a0] sm:$0xff] }
  0xc9   : > { %2078 = vst [vmem:[%s6798_s23 + $0xb90] sm:$0xff] %v2077_v50  ;;  %2080 = vst [vmem:[%s6798_s23 + $0xb98] sm:$0xff] %v2079_v51  ;;  %v2083_v53 = vld [vmem:[%s6793_s22 + $0x15a8] sm:$0xff]  ;;  %v2085_v54 = vld [vmem:[%s6793_s22 + $0x15b0] sm:$0xff] }
  0xca   : > { %2082 = vst [vmem:[%s6798_s23 + $0xba0] sm:$0xff] %v2081_v52  ;;  %2084 = vst [vmem:[%s6798_s23 + $0xba8] sm:$0xff] %v2083_v53  ;;  %v2087_v55 = vld [vmem:[%s6793_s22 + $0x15b8] sm:$0xff]  ;;  %v2089_v56 = vld [vmem:[%s6793_s22 + $0x15c0] sm:$0xff] }
  0xcb   : > { %2086 = vst [vmem:[%s6798_s23 + $0xbb0] sm:$0xff] %v2085_v54  ;;  %v2091_v57 = vld [vmem:[%s6793_s22 + $0x15c8] sm:$0xff]  ;;  %2088 = vst [vmem:[%s6798_s23 + $0xbb8] sm:$0xff] %v2087_v55  ;;  %v2093_v58 = vld [vmem:[%s6793_s22 + $0x15d0] sm:$0xff] }
  0xcc   : > { %2090 = vst [vmem:[%s6798_s23 + $0xbc0] sm:$0xff] %v2089_v56  ;;  %2092 = vst [vmem:[%s6798_s23 + $0xbc8] sm:$0xff] %v2091_v57  ;;  %v2095_v59 = vld [vmem:[%s6793_s22 + $0x15d8] sm:$0xff]  ;;  %v2097_v60 = vld [vmem:[%s6793_s22 + $0x15e0] sm:$0xff] }
  0xcd   : > { %2094 = vst [vmem:[%s6798_s23 + $0xbd0] sm:$0xff] %v2093_v58  ;;  %2096 = vst [vmem:[%s6798_s23 + $0xbd8] sm:$0xff] %v2095_v59  ;;  %v2099_v61 = vld [vmem:[%s6793_s22 + $0x15e8] sm:$0xff]  ;;  %v2101_v62 = vld [vmem:[%s6793_s22 + $0x15f0] sm:$0xff] }
  0xce   : > { %2098 = vst [vmem:[%s6798_s23 + $0xbe0] sm:$0xff] %v2097_v60  ;;  %v2103_v63 = vld [vmem:[%s6793_s22 + $0x15f8] sm:$0xff]  ;;  %2100 = vst [vmem:[%s6798_s23 + $0xbe8] sm:$0xff] %v2099_v61  ;;  %v2105_v0 = vld [vmem:[%s6793_s22 + $0x1800] sm:$0xff] }
  0xcf   : > { %2102 = vst [vmem:[%s6798_s23 + $0xbf0] sm:$0xff] %v2101_v62  ;;  %2104 = vst [vmem:[%s6798_s23 + $0xbf8] sm:$0xff] %v2103_v63  ;;  %v2107_v1 = vld [vmem:[%s6793_s22 + $0x1808] sm:$0xff]  ;;  %v2109_v2 = vld [vmem:[%s6793_s22 + $0x1810] sm:$0xff] }
  0xd0   : > { %2106 = vst [vmem:[%s6798_s23 + $0xc00] sm:$0xff] %v2105_v0  ;;  %2108 = vst [vmem:[%s6798_s23 + $0xc08] sm:$0xff] %v2107_v1  ;;  %v2111_v3 = vld [vmem:[%s6793_s22 + $0x1818] sm:$0xff]  ;;  %v2113_v4 = vld [vmem:[%s6793_s22 + $0x1820] sm:$0xff] }
  0xd1   : > { %2110 = vst [vmem:[%s6798_s23 + $0xc10] sm:$0xff] %v2109_v2  ;;  %v2115_v5 = vld [vmem:[%s6793_s22 + $0x1828] sm:$0xff]  ;;  %2112 = vst [vmem:[%s6798_s23 + $0xc18] sm:$0xff] %v2111_v3  ;;  %v2117_v6 = vld [vmem:[%s6793_s22 + $0x1830] sm:$0xff] }
  0xd2   : > { %2114 = vst [vmem:[%s6798_s23 + $0xc20] sm:$0xff] %v2113_v4  ;;  %2116 = vst [vmem:[%s6798_s23 + $0xc28] sm:$0xff] %v2115_v5  ;;  %v2119_v7 = vld [vmem:[%s6793_s22 + $0x1838] sm:$0xff]  ;;  %v2121_v8 = vld [vmem:[%s6793_s22 + $0x1840] sm:$0xff] }
  0xd3   : > { %2118 = vst [vmem:[%s6798_s23 + $0xc30] sm:$0xff] %v2117_v6  ;;  %2120 = vst [vmem:[%s6798_s23 + $0xc38] sm:$0xff] %v2119_v7  ;;  %v2123_v9 = vld [vmem:[%s6793_s22 + $0x1848] sm:$0xff]  ;;  %v2125_v10 = vld [vmem:[%s6793_s22 + $0x1850] sm:$0xff] }
  0xd4   : > { %2122 = vst [vmem:[%s6798_s23 + $0xc40] sm:$0xff] %v2121_v8  ;;  %v2127_v11 = vld [vmem:[%s6793_s22 + $0x1858] sm:$0xff]  ;;  %2124 = vst [vmem:[%s6798_s23 + $0xc48] sm:$0xff] %v2123_v9  ;;  %v2129_v12 = vld [vmem:[%s6793_s22 + $0x1860] sm:$0xff] }
  0xd5   : > { %2126 = vst [vmem:[%s6798_s23 + $0xc50] sm:$0xff] %v2125_v10  ;;  %2128 = vst [vmem:[%s6798_s23 + $0xc58] sm:$0xff] %v2127_v11  ;;  %v2131_v13 = vld [vmem:[%s6793_s22 + $0x1868] sm:$0xff]  ;;  %v2133_v14 = vld [vmem:[%s6793_s22 + $0x1870] sm:$0xff] }
  0xd6   : > { %2130 = vst [vmem:[%s6798_s23 + $0xc60] sm:$0xff] %v2129_v12  ;;  %2132 = vst [vmem:[%s6798_s23 + $0xc68] sm:$0xff] %v2131_v13  ;;  %v2135_v15 = vld [vmem:[%s6793_s22 + $0x1878] sm:$0xff]  ;;  %v2137_v16 = vld [vmem:[%s6793_s22 + $0x1880] sm:$0xff] }
  0xd7   : > { %2134 = vst [vmem:[%s6798_s23 + $0xc70] sm:$0xff] %v2133_v14  ;;  %v2139_v17 = vld [vmem:[%s6793_s22 + $0x1888] sm:$0xff]  ;;  %2136 = vst [vmem:[%s6798_s23 + $0xc78] sm:$0xff] %v2135_v15  ;;  %v2141_v18 = vld [vmem:[%s6793_s22 + $0x1890] sm:$0xff] }
  0xd8   : > { %2138 = vst [vmem:[%s6798_s23 + $0xc80] sm:$0xff] %v2137_v16  ;;  %2140 = vst [vmem:[%s6798_s23 + $0xc88] sm:$0xff] %v2139_v17  ;;  %v2143_v19 = vld [vmem:[%s6793_s22 + $0x1898] sm:$0xff]  ;;  %v2145_v20 = vld [vmem:[%s6793_s22 + $0x18a0] sm:$0xff] }
  0xd9   : > { %2142 = vst [vmem:[%s6798_s23 + $0xc90] sm:$0xff] %v2141_v18  ;;  %2144 = vst [vmem:[%s6798_s23 + $0xc98] sm:$0xff] %v2143_v19  ;;  %v2147_v21 = vld [vmem:[%s6793_s22 + $0x18a8] sm:$0xff]  ;;  %v2149_v22 = vld [vmem:[%s6793_s22 + $0x18b0] sm:$0xff] }
  0xda   : > { %2146 = vst [vmem:[%s6798_s23 + $0xca0] sm:$0xff] %v2145_v20  ;;  %v2151_v23 = vld [vmem:[%s6793_s22 + $0x18b8] sm:$0xff]  ;;  %2148 = vst [vmem:[%s6798_s23 + $0xca8] sm:$0xff] %v2147_v21  ;;  %v2153_v24 = vld [vmem:[%s6793_s22 + $0x18c0] sm:$0xff] }
  0xdb   : > { %2150 = vst [vmem:[%s6798_s23 + $0xcb0] sm:$0xff] %v2149_v22  ;;  %2152 = vst [vmem:[%s6798_s23 + $0xcb8] sm:$0xff] %v2151_v23  ;;  %v2155_v25 = vld [vmem:[%s6793_s22 + $0x18c8] sm:$0xff]  ;;  %v2157_v26 = vld [vmem:[%s6793_s22 + $0x18d0] sm:$0xff] }
  0xdc   : > { %2154 = vst [vmem:[%s6798_s23 + $0xcc0] sm:$0xff] %v2153_v24  ;;  %2156 = vst [vmem:[%s6798_s23 + $0xcc8] sm:$0xff] %v2155_v25  ;;  %v2159_v27 = vld [vmem:[%s6793_s22 + $0x18d8] sm:$0xff]  ;;  %v2161_v28 = vld [vmem:[%s6793_s22 + $0x18e0] sm:$0xff] }
  0xdd   : > { %2158 = vst [vmem:[%s6798_s23 + $0xcd0] sm:$0xff] %v2157_v26  ;;  %v2163_v29 = vld [vmem:[%s6793_s22 + $0x18e8] sm:$0xff]  ;;  %2160 = vst [vmem:[%s6798_s23 + $0xcd8] sm:$0xff] %v2159_v27  ;;  %v2165_v30 = vld [vmem:[%s6793_s22 + $0x18f0] sm:$0xff] }
  0xde   : > { %2162 = vst [vmem:[%s6798_s23 + $0xce0] sm:$0xff] %v2161_v28  ;;  %2164 = vst [vmem:[%s6798_s23 + $0xce8] sm:$0xff] %v2163_v29  ;;  %v2167_v31 = vld [vmem:[%s6793_s22 + $0x18f8] sm:$0xff]  ;;  %v2169_v32 = vld [vmem:[%s6793_s22 + $0x1900] sm:$0xff] }
  0xdf   : > { %2166 = vst [vmem:[%s6798_s23 + $0xcf0] sm:$0xff] %v2165_v30  ;;  %2168 = vst [vmem:[%s6798_s23 + $0xcf8] sm:$0xff] %v2167_v31  ;;  %v2171_v33 = vld [vmem:[%s6793_s22 + $0x1908] sm:$0xff]  ;;  %v2173_v34 = vld [vmem:[%s6793_s22 + $0x1910] sm:$0xff] }
  0xe0   : > { %2170 = vst [vmem:[%s6798_s23 + $0xd00] sm:$0xff] %v2169_v32  ;;  %v2175_v35 = vld [vmem:[%s6793_s22 + $0x1918] sm:$0xff]  ;;  %2172 = vst [vmem:[%s6798_s23 + $0xd08] sm:$0xff] %v2171_v33  ;;  %v2177_v36 = vld [vmem:[%s6793_s22 + $0x1920] sm:$0xff] }
  0xe1   : > { %2174 = vst [vmem:[%s6798_s23 + $0xd10] sm:$0xff] %v2173_v34  ;;  %2176 = vst [vmem:[%s6798_s23 + $0xd18] sm:$0xff] %v2175_v35  ;;  %v2179_v37 = vld [vmem:[%s6793_s22 + $0x1928] sm:$0xff]  ;;  %v2181_v38 = vld [vmem:[%s6793_s22 + $0x1930] sm:$0xff] }
  0xe2   : > { %2178 = vst [vmem:[%s6798_s23 + $0xd20] sm:$0xff] %v2177_v36  ;;  %2180 = vst [vmem:[%s6798_s23 + $0xd28] sm:$0xff] %v2179_v37  ;;  %v2183_v39 = vld [vmem:[%s6793_s22 + $0x1938] sm:$0xff]  ;;  %v2185_v40 = vld [vmem:[%s6793_s22 + $0x1940] sm:$0xff] }
  0xe3   : > { %2182 = vst [vmem:[%s6798_s23 + $0xd30] sm:$0xff] %v2181_v38  ;;  %v2187_v41 = vld [vmem:[%s6793_s22 + $0x1948] sm:$0xff]  ;;  %2184 = vst [vmem:[%s6798_s23 + $0xd38] sm:$0xff] %v2183_v39  ;;  %v2189_v42 = vld [vmem:[%s6793_s22 + $0x1950] sm:$0xff] }
  0xe4   : > { %2186 = vst [vmem:[%s6798_s23 + $0xd40] sm:$0xff] %v2185_v40  ;;  %2188 = vst [vmem:[%s6798_s23 + $0xd48] sm:$0xff] %v2187_v41  ;;  %v2191_v43 = vld [vmem:[%s6793_s22 + $0x1958] sm:$0xff]  ;;  %v2193_v44 = vld [vmem:[%s6793_s22 + $0x1960] sm:$0xff] }
  0xe5   : > { %2190 = vst [vmem:[%s6798_s23 + $0xd50] sm:$0xff] %v2189_v42  ;;  %2192 = vst [vmem:[%s6798_s23 + $0xd58] sm:$0xff] %v2191_v43  ;;  %v2195_v45 = vld [vmem:[%s6793_s22 + $0x1968] sm:$0xff]  ;;  %v2197_v46 = vld [vmem:[%s6793_s22 + $0x1970] sm:$0xff] }
  0xe6   : > { %2194 = vst [vmem:[%s6798_s23 + $0xd60] sm:$0xff] %v2193_v44  ;;  %v2199_v47 = vld [vmem:[%s6793_s22 + $0x1978] sm:$0xff]  ;;  %2196 = vst [vmem:[%s6798_s23 + $0xd68] sm:$0xff] %v2195_v45  ;;  %v2201_v48 = vld [vmem:[%s6793_s22 + $0x1980] sm:$0xff] }
  0xe7   : > { %2198 = vst [vmem:[%s6798_s23 + $0xd70] sm:$0xff] %v2197_v46  ;;  %2200 = vst [vmem:[%s6798_s23 + $0xd78] sm:$0xff] %v2199_v47  ;;  %v2203_v49 = vld [vmem:[%s6793_s22 + $0x1988] sm:$0xff]  ;;  %v2205_v50 = vld [vmem:[%s6793_s22 + $0x1990] sm:$0xff] }
  0xe8   : > { %2202 = vst [vmem:[%s6798_s23 + $0xd80] sm:$0xff] %v2201_v48  ;;  %2204 = vst [vmem:[%s6798_s23 + $0xd88] sm:$0xff] %v2203_v49  ;;  %v2207_v51 = vld [vmem:[%s6793_s22 + $0x1998] sm:$0xff]  ;;  %v2209_v52 = vld [vmem:[%s6793_s22 + $0x19a0] sm:$0xff] }
  0xe9   : > { %2206 = vst [vmem:[%s6798_s23 + $0xd90] sm:$0xff] %v2205_v50  ;;  %v2211_v53 = vld [vmem:[%s6793_s22 + $0x19a8] sm:$0xff]  ;;  %2208 = vst [vmem:[%s6798_s23 + $0xd98] sm:$0xff] %v2207_v51  ;;  %v2213_v54 = vld [vmem:[%s6793_s22 + $0x19b0] sm:$0xff] }
  0xea   : > { %2210 = vst [vmem:[%s6798_s23 + $0xda0] sm:$0xff] %v2209_v52  ;;  %2212 = vst [vmem:[%s6798_s23 + $0xda8] sm:$0xff] %v2211_v53  ;;  %v2215_v55 = vld [vmem:[%s6793_s22 + $0x19b8] sm:$0xff]  ;;  %v2217_v56 = vld [vmem:[%s6793_s22 + $0x19c0] sm:$0xff] }
  0xeb   : > { %2214 = vst [vmem:[%s6798_s23 + $0xdb0] sm:$0xff] %v2213_v54  ;;  %2216 = vst [vmem:[%s6798_s23 + $0xdb8] sm:$0xff] %v2215_v55  ;;  %v2219_v57 = vld [vmem:[%s6793_s22 + $0x19c8] sm:$0xff]  ;;  %v2221_v58 = vld [vmem:[%s6793_s22 + $0x19d0] sm:$0xff] }
  0xec   : > { %2218 = vst [vmem:[%s6798_s23 + $0xdc0] sm:$0xff] %v2217_v56  ;;  %v2223_v59 = vld [vmem:[%s6793_s22 + $0x19d8] sm:$0xff]  ;;  %2220 = vst [vmem:[%s6798_s23 + $0xdc8] sm:$0xff] %v2219_v57  ;;  %v2225_v60 = vld [vmem:[%s6793_s22 + $0x19e0] sm:$0xff] }
  0xed   : > { %2222 = vst [vmem:[%s6798_s23 + $0xdd0] sm:$0xff] %v2221_v58  ;;  %2224 = vst [vmem:[%s6798_s23 + $0xdd8] sm:$0xff] %v2223_v59  ;;  %v2227_v61 = vld [vmem:[%s6793_s22 + $0x19e8] sm:$0xff]  ;;  %v2229_v62 = vld [vmem:[%s6793_s22 + $0x19f0] sm:$0xff] }
  0xee   : > { %2226 = vst [vmem:[%s6798_s23 + $0xde0] sm:$0xff] %v2225_v60  ;;  %2228 = vst [vmem:[%s6798_s23 + $0xde8] sm:$0xff] %v2227_v61  ;;  %v2231_v63 = vld [vmem:[%s6793_s22 + $0x19f8] sm:$0xff]  ;;  %v2233_v0 = vld [vmem:[%s6793_s22 + $0x1c00] sm:$0xff] }
  0xef   : > { %2230 = vst [vmem:[%s6798_s23 + $0xdf0] sm:$0xff] %v2229_v62  ;;  %v2235_v1 = vld [vmem:[%s6793_s22 + $0x1c08] sm:$0xff]  ;;  %2232 = vst [vmem:[%s6798_s23 + $0xdf8] sm:$0xff] %v2231_v63  ;;  %v2237_v2 = vld [vmem:[%s6793_s22 + $0x1c10] sm:$0xff] }
  0xf0   : > { %2234 = vst [vmem:[%s6798_s23 + $0xe00] sm:$0xff] %v2233_v0  ;;  %2236 = vst [vmem:[%s6798_s23 + $0xe08] sm:$0xff] %v2235_v1  ;;  %v2239_v3 = vld [vmem:[%s6793_s22 + $0x1c18] sm:$0xff]  ;;  %v2241_v4 = vld [vmem:[%s6793_s22 + $0x1c20] sm:$0xff] }
  0xf1   : > { %2238 = vst [vmem:[%s6798_s23 + $0xe10] sm:$0xff] %v2237_v2  ;;  %2240 = vst [vmem:[%s6798_s23 + $0xe18] sm:$0xff] %v2239_v3  ;;  %v2243_v5 = vld [vmem:[%s6793_s22 + $0x1c28] sm:$0xff]  ;;  %v2245_v6 = vld [vmem:[%s6793_s22 + $0x1c30] sm:$0xff] }
  0xf2   : > { %2242 = vst [vmem:[%s6798_s23 + $0xe20] sm:$0xff] %v2241_v4  ;;  %v2247_v7 = vld [vmem:[%s6793_s22 + $0x1c38] sm:$0xff]  ;;  %2244 = vst [vmem:[%s6798_s23 + $0xe28] sm:$0xff] %v2243_v5  ;;  %v2249_v8 = vld [vmem:[%s6793_s22 + $0x1c40] sm:$0xff] }
  0xf3   : > { %2246 = vst [vmem:[%s6798_s23 + $0xe30] sm:$0xff] %v2245_v6  ;;  %2248 = vst [vmem:[%s6798_s23 + $0xe38] sm:$0xff] %v2247_v7  ;;  %v2251_v9 = vld [vmem:[%s6793_s22 + $0x1c48] sm:$0xff]  ;;  %v2253_v10 = vld [vmem:[%s6793_s22 + $0x1c50] sm:$0xff] }
  0xf4   : > { %2250 = vst [vmem:[%s6798_s23 + $0xe40] sm:$0xff] %v2249_v8  ;;  %2252 = vst [vmem:[%s6798_s23 + $0xe48] sm:$0xff] %v2251_v9  ;;  %v2255_v11 = vld [vmem:[%s6793_s22 + $0x1c58] sm:$0xff]  ;;  %v2257_v12 = vld [vmem:[%s6793_s22 + $0x1c60] sm:$0xff] }
  0xf5   : > { %2254 = vst [vmem:[%s6798_s23 + $0xe50] sm:$0xff] %v2253_v10  ;;  %v2259_v13 = vld [vmem:[%s6793_s22 + $0x1c68] sm:$0xff]  ;;  %2256 = vst [vmem:[%s6798_s23 + $0xe58] sm:$0xff] %v2255_v11  ;;  %v2261_v14 = vld [vmem:[%s6793_s22 + $0x1c70] sm:$0xff] }
  0xf6   : > { %2258 = vst [vmem:[%s6798_s23 + $0xe60] sm:$0xff] %v2257_v12  ;;  %2260 = vst [vmem:[%s6798_s23 + $0xe68] sm:$0xff] %v2259_v13  ;;  %v2263_v15 = vld [vmem:[%s6793_s22 + $0x1c78] sm:$0xff]  ;;  %v2265_v16 = vld [vmem:[%s6793_s22 + $0x1c80] sm:$0xff] }
  0xf7   : > { %2262 = vst [vmem:[%s6798_s23 + $0xe70] sm:$0xff] %v2261_v14  ;;  %2264 = vst [vmem:[%s6798_s23 + $0xe78] sm:$0xff] %v2263_v15  ;;  %v2267_v17 = vld [vmem:[%s6793_s22 + $0x1c88] sm:$0xff]  ;;  %v2269_v18 = vld [vmem:[%s6793_s22 + $0x1c90] sm:$0xff] }
  0xf8   : > { %2266 = vst [vmem:[%s6798_s23 + $0xe80] sm:$0xff] %v2265_v16  ;;  %v2271_v19 = vld [vmem:[%s6793_s22 + $0x1c98] sm:$0xff]  ;;  %2268 = vst [vmem:[%s6798_s23 + $0xe88] sm:$0xff] %v2267_v17  ;;  %v2273_v20 = vld [vmem:[%s6793_s22 + $0x1ca0] sm:$0xff] }
  0xf9   : > { %2270 = vst [vmem:[%s6798_s23 + $0xe90] sm:$0xff] %v2269_v18  ;;  %2272 = vst [vmem:[%s6798_s23 + $0xe98] sm:$0xff] %v2271_v19  ;;  %v2275_v21 = vld [vmem:[%s6793_s22 + $0x1ca8] sm:$0xff]  ;;  %v2277_v22 = vld [vmem:[%s6793_s22 + $0x1cb0] sm:$0xff] }
  0xfa   : > { %2274 = vst [vmem:[%s6798_s23 + $0xea0] sm:$0xff] %v2273_v20  ;;  %2276 = vst [vmem:[%s6798_s23 + $0xea8] sm:$0xff] %v2275_v21  ;;  %v2279_v23 = vld [vmem:[%s6793_s22 + $0x1cb8] sm:$0xff]  ;;  %v2281_v24 = vld [vmem:[%s6793_s22 + $0x1cc0] sm:$0xff] }
  0xfb   : > { %2278 = vst [vmem:[%s6798_s23 + $0xeb0] sm:$0xff] %v2277_v22  ;;  %v2283_v25 = vld [vmem:[%s6793_s22 + $0x1cc8] sm:$0xff]  ;;  %2280 = vst [vmem:[%s6798_s23 + $0xeb8] sm:$0xff] %v2279_v23  ;;  %v2285_v26 = vld [vmem:[%s6793_s22 + $0x1cd0] sm:$0xff] }
  0xfc   : > { %2282 = vst [vmem:[%s6798_s23 + $0xec0] sm:$0xff] %v2281_v24  ;;  %2284 = vst [vmem:[%s6798_s23 + $0xec8] sm:$0xff] %v2283_v25  ;;  %v2287_v27 = vld [vmem:[%s6793_s22 + $0x1cd8] sm:$0xff]  ;;  %v2289_v28 = vld [vmem:[%s6793_s22 + $0x1ce0] sm:$0xff] }
  0xfd   : > { %2286 = vst [vmem:[%s6798_s23 + $0xed0] sm:$0xff] %v2285_v26  ;;  %2288 = vst [vmem:[%s6798_s23 + $0xed8] sm:$0xff] %v2287_v27  ;;  %v2291_v29 = vld [vmem:[%s6793_s22 + $0x1ce8] sm:$0xff]  ;;  %v2293_v30 = vld [vmem:[%s6793_s22 + $0x1cf0] sm:$0xff] }
  0xfe   : > { %2290 = vst [vmem:[%s6798_s23 + $0xee0] sm:$0xff] %v2289_v28  ;;  %v2295_v31 = vld [vmem:[%s6793_s22 + $0x1cf8] sm:$0xff]  ;;  %2292 = vst [vmem:[%s6798_s23 + $0xee8] sm:$0xff] %v2291_v29  ;;  %v2297_v32 = vld [vmem:[%s6793_s22 + $0x1d00] sm:$0xff] }
  0xff   : > { %2294 = vst [vmem:[%s6798_s23 + $0xef0] sm:$0xff] %v2293_v30  ;;  %2296 = vst [vmem:[%s6798_s23 + $0xef8] sm:$0xff] %v2295_v31  ;;  %v2299_v33 = vld [vmem:[%s6793_s22 + $0x1d08] sm:$0xff]  ;;  %v2301_v34 = vld [vmem:[%s6793_s22 + $0x1d10] sm:$0xff] }
 0x100   : > { %2298 = vst [vmem:[%s6798_s23 + $0xf00] sm:$0xff] %v2297_v32  ;;  %2300 = vst [vmem:[%s6798_s23 + $0xf08] sm:$0xff] %v2299_v33  ;;  %v2303_v35 = vld [vmem:[%s6793_s22 + $0x1d18] sm:$0xff]  ;;  %v2305_v36 = vld [vmem:[%s6793_s22 + $0x1d20] sm:$0xff] }
 0x101   : > { %2302 = vst [vmem:[%s6798_s23 + $0xf10] sm:$0xff] %v2301_v34  ;;  %v2307_v37 = vld [vmem:[%s6793_s22 + $0x1d28] sm:$0xff]  ;;  %2304 = vst [vmem:[%s6798_s23 + $0xf18] sm:$0xff] %v2303_v35  ;;  %v2309_v38 = vld [vmem:[%s6793_s22 + $0x1d30] sm:$0xff] }
 0x102   : > { %2306 = vst [vmem:[%s6798_s23 + $0xf20] sm:$0xff] %v2305_v36  ;;  %2308 = vst [vmem:[%s6798_s23 + $0xf28] sm:$0xff] %v2307_v37  ;;  %v2311_v39 = vld [vmem:[%s6793_s22 + $0x1d38] sm:$0xff]  ;;  %v2313_v40 = vld [vmem:[%s6793_s22 + $0x1d40] sm:$0xff] }
 0x103   : > { %2310 = vst [vmem:[%s6798_s23 + $0xf30] sm:$0xff] %v2309_v38  ;;  %2312 = vst [vmem:[%s6798_s23 + $0xf38] sm:$0xff] %v2311_v39  ;;  %v2315_v41 = vld [vmem:[%s6793_s22 + $0x1d48] sm:$0xff]  ;;  %v2317_v42 = vld [vmem:[%s6793_s22 + $0x1d50] sm:$0xff] }
 0x104   : > { %2314 = vst [vmem:[%s6798_s23 + $0xf40] sm:$0xff] %v2313_v40  ;;  %v2319_v43 = vld [vmem:[%s6793_s22 + $0x1d58] sm:$0xff]  ;;  %2316 = vst [vmem:[%s6798_s23 + $0xf48] sm:$0xff] %v2315_v41  ;;  %v2321_v44 = vld [vmem:[%s6793_s22 + $0x1d60] sm:$0xff] }
 0x105   : > { %2318 = vst [vmem:[%s6798_s23 + $0xf50] sm:$0xff] %v2317_v42  ;;  %2320 = vst [vmem:[%s6798_s23 + $0xf58] sm:$0xff] %v2319_v43  ;;  %v2323_v45 = vld [vmem:[%s6793_s22 + $0x1d68] sm:$0xff]  ;;  %v2325_v46 = vld [vmem:[%s6793_s22 + $0x1d70] sm:$0xff] }
 0x106   : > { %2322 = vst [vmem:[%s6798_s23 + $0xf60] sm:$0xff] %v2321_v44  ;;  %2324 = vst [vmem:[%s6798_s23 + $0xf68] sm:$0xff] %v2323_v45  ;;  %v2327_v47 = vld [vmem:[%s6793_s22 + $0x1d78] sm:$0xff]  ;;  %v2329_v48 = vld [vmem:[%s6793_s22 + $0x1d80] sm:$0xff] }
 0x107   : > { %2326 = vst [vmem:[%s6798_s23 + $0xf70] sm:$0xff] %v2325_v46  ;;  %v2331_v49 = vld [vmem:[%s6793_s22 + $0x1d88] sm:$0xff]  ;;  %2328 = vst [vmem:[%s6798_s23 + $0xf78] sm:$0xff] %v2327_v47  ;;  %v2333_v50 = vld [vmem:[%s6793_s22 + $0x1d90] sm:$0xff] }
 0x108   : > { %2330 = vst [vmem:[%s6798_s23 + $0xf80] sm:$0xff] %v2329_v48  ;;  %2332 = vst [vmem:[%s6798_s23 + $0xf88] sm:$0xff] %v2331_v49  ;;  %v2335_v51 = vld [vmem:[%s6793_s22 + $0x1d98] sm:$0xff]  ;;  %v2337_v52 = vld [vmem:[%s6793_s22 + $0x1da0] sm:$0xff] }
 0x109   : > { %2334 = vst [vmem:[%s6798_s23 + $0xf90] sm:$0xff] %v2333_v50  ;;  %2336 = vst [vmem:[%s6798_s23 + $0xf98] sm:$0xff] %v2335_v51  ;;  %v2339_v53 = vld [vmem:[%s6793_s22 + $0x1da8] sm:$0xff]  ;;  %v2341_v54 = vld [vmem:[%s6793_s22 + $0x1db0] sm:$0xff] }
 0x10a   : > { %2338 = vst [vmem:[%s6798_s23 + $0xfa0] sm:$0xff] %v2337_v52  ;;  %v2343_v55 = vld [vmem:[%s6793_s22 + $0x1db8] sm:$0xff]  ;;  %2340 = vst [vmem:[%s6798_s23 + $0xfa8] sm:$0xff] %v2339_v53  ;;  %v2345_v56 = vld [vmem:[%s6793_s22 + $0x1dc0] sm:$0xff] }
 0x10b   : > { %2342 = vst [vmem:[%s6798_s23 + $0xfb0] sm:$0xff] %v2341_v54  ;;  %2344 = vst [vmem:[%s6798_s23 + $0xfb8] sm:$0xff] %v2343_v55  ;;  %v2347_v57 = vld [vmem:[%s6793_s22 + $0x1dc8] sm:$0xff]  ;;  %v2349_v58 = vld [vmem:[%s6793_s22 + $0x1dd0] sm:$0xff] }
 0x10c   : > { %2346 = vst [vmem:[%s6798_s23 + $0xfc0] sm:$0xff] %v2345_v56  ;;  %2348 = vst [vmem:[%s6798_s23 + $0xfc8] sm:$0xff] %v2347_v57  ;;  %v2351_v59 = vld [vmem:[%s6793_s22 + $0x1dd8] sm:$0xff]  ;;  %v2353_v60 = vld [vmem:[%s6793_s22 + $0x1de0] sm:$0xff] }
 0x10d   : > { %2350 = vst [vmem:[%s6798_s23 + $0xfd0] sm:$0xff] %v2349_v58  ;;  %v2355_v61 = vld [vmem:[%s6793_s22 + $0x1de8] sm:$0xff]  ;;  %2352 = vst [vmem:[%s6798_s23 + $0xfd8] sm:$0xff] %v2351_v59  ;;  %v2357_v62 = vld [vmem:[%s6793_s22 + $0x1df0] sm:$0xff] }
 0x10e   : > { %2354 = vst [vmem:[%s6798_s23 + $0xfe0] sm:$0xff] %v2353_v60  ;;  %2356 = vst [vmem:[%s6798_s23 + $0xfe8] sm:$0xff] %v2355_v61  ;;  %v2359_v63 = vld [vmem:[%s6793_s22 + $0x1df8] sm:$0xff] }
 0x10f   : > { %2358 = vst [vmem:[%s6798_s23 + $0xff0] sm:$0xff] %v2357_v62  ;;  %2360 = vst [vmem:[%s6798_s23 + $0xff8] sm:$0xff] %v2359_v63 }
 0x110 PF: > { %p6487_p5 = scmp.ge.s32.totalorder %s6701_s11, 1  ;;  %p4450_p6 = scmp.lt.s32.totalorder %s6701_s11, 3 }
 0x112   : > { %p4451_p7 = pnand %p6487_p5, %p4450_p6 }
 0x114   : > { %4454 = sbr.rel (%p4451_p7) target bundleno = 1246 (0x4de), region = 104 }
 0x119   : > { %s4457_s24 = sand.u32 1, %s6693_s30   ;;  %p6489_p8 = scmp.ne.s32.totalorder %s6773_s12, 0 }
 0x11a   : > { %s6488_s25 = sshll.u32 %s4457_s24, 12 }
 0x11b   : > { %s7824_s26 = scalar_lea.vmem [#allocation3], %s6488_s25  ;;  %4491 = sbr.rel (%p6489_p8) target bundleno = 290 (0x122), region = 112 }
 0x120   : > { %vm4492_vm0 = vcmask 31744   ;;  %v6703_v0 = vmov 0.0  }
 0x121   : > { %4493 = vst.msk [vmem:[#allocation2] sm:$0xff] %vm4492_vm0, %v6703_v0 }
 0x122 PF: > { %v4495_v1 = vld [vmem:[%s7824_s26] sm:$0xff]  ;;  %v4496_v2 = vld [vmem:[%s7824_s26 + $0x8] sm:$0xff]  ;;  %vm5007_vm1 = vcmask 31744   ;;  %v4497_v5 = vld [vmem:[%s7824_s26 + $0x10] sm:$0xff]  ;;  %vm6080_vm2 = vcmask 1041409   ;;  %vm6082_vm3 = vcmask 1042434  }
 0x123   : > { %v5008_v3 = vsel %vm5007_vm1, %v4495_v1, 0.0  ;;  %v5009_v4 = vsel %vm5007_vm1, %v4496_v2, 0.0  ;;  %v5011_v7 = vsel %vm5007_vm1, %v4497_v5, 0.0  ;;  %v4498_v8 = vld [vmem:[%s7824_s26 + $0x18] sm:$0xff]  ;;  %v4499_v11 = vld [vmem:[%s7824_s26 + $0x20] sm:$0xff]  ;;  %v4500_v14 = vld [vmem:[%s7824_s26 + $0x28] sm:$0xff] }
 0x124   : > { %v5010_v6 = vadd.f32 %v5009_v4, %v5008_v3  ;;  %v5013_v10 = vsel %vm5007_vm1, %v4498_v8, 0.0  ;;  %v5015_v13 = vsel %vm5007_vm1, %v4499_v11, 0.0  ;;  %v5017_v16 = vsel %vm5007_vm1, %v4500_v14, 0.0  ;;  %v4501_v17 = vld [vmem:[%s7824_s26 + $0x30] sm:$0xff]  ;;  %v4502_v20 = vld [vmem:[%s7824_s26 + $0x38] sm:$0xff]  ;;  %v4503_v23 = vld [vmem:[%s7824_s26 + $0x40] sm:$0xff] }
 0x125   : > { %v5019_v19 = vsel %vm5007_vm1, %v4501_v17, 0.0  ;;  %v5021_v22 = vsel %vm5007_vm1, %v4502_v20, 0.0  ;;  %v4559_v24 = vld [vmem:[%s7824_s26 + $0x200] sm:$0xff]  ;;  %v4560_v25 = vld [vmem:[%s7824_s26 + $0x208] sm:$0xff]  ;;  %v5023_v27 = vsel %vm5007_vm1, %v4503_v23, 0.0  ;;  %v4561_v31 = vld [vmem:[%s7824_s26 + $0x210] sm:$0xff] }
 0x126   : > { %v5012_v9 = vadd.f32 %v5011_v7, %v5010_v6  ;;  %v4504_v28 = vld [vmem:[%s7824_s26 + $0x48] sm:$0xff]  ;;  %v5141_v29 = vsel %vm5007_vm1, %v4559_v24, 0.0  ;;  %v5142_v30 = vsel %vm5007_vm1, %v4560_v25, 0.0  ;;  %v4505_v34 = vld [vmem:[%s7824_s26 + $0x50] sm:$0xff]  ;;  %v5144_v36 = vsel %vm5007_vm1, %v4561_v31, 0.0  ;;  %v4562_v37 = vld [vmem:[%s7824_s26 + $0x218] sm:$0xff] }
 0x127   : > { %v5025_v33 = vsel %vm5007_vm1, %v4504_v28, 0.0  ;;  %v5143_v35 = vadd.f32 %v5142_v30, %v5141_v29  ;;  %v5027_v39 = vsel %vm5007_vm1, %v4505_v34, 0.0  ;;  %v4506_v40 = vld [vmem:[%s7824_s26 + $0x58] sm:$0xff]  ;;  %v5146_v42 = vsel %vm5007_vm1, %v4562_v37, 0.0  ;;  %v4563_v43 = vld [vmem:[%s7824_s26 + $0x220] sm:$0xff]  ;;  %v4564_v49 = vld [vmem:[%s7824_s26 + $0x228] sm:$0xff] }
 0x128   : > { %v5014_v12 = vadd.f32 %v5013_v10, %v5012_v9  ;;  %v5029_v45 = vsel %vm5007_vm1, %v4506_v40, 0.0  ;;  %v4507_v46 = vld [vmem:[%s7824_s26 + $0x60] sm:$0xff]  ;;  %v5148_v48 = vsel %vm5007_vm1, %v4563_v43, 0.0  ;;  %v4508_v52 = vld [vmem:[%s7824_s26 + $0x68] sm:$0xff]  ;;  %v5150_v54 = vsel %vm5007_vm1, %v4564_v49, 0.0  ;;  %v4565_v55 = vld [vmem:[%s7824_s26 + $0x230] sm:$0xff] }
 0x129   : > { %v5145_v41 = vadd.f32 %v5144_v36, %v5143_v35  ;;  %v5031_v51 = vsel %vm5007_vm1, %v4507_v46, 0.0  ;;  %v5033_v57 = vsel %vm5007_vm1, %v4508_v52, 0.0  ;;  %v4509_v58 = vld [vmem:[%s7824_s26 + $0x70] sm:$0xff]  ;;  %v5152_v60 = vsel %vm5007_vm1, %v4565_v55, 0.0  ;;  %v4566_v61 = vld [vmem:[%s7824_s26 + $0x238] sm:$0xff]  ;;  %v4567_v3 = vld [vmem:[%s7824_s26 + $0x240] sm:$0xff] }
 0x12a   : > { %v5016_v15 = vadd.f32 %v5015_v13, %v5014_v12  ;;  %v5035_v63 = vsel %vm5007_vm1, %v4509_v58, 0.0  ;;  %v4510_v0 = vld [vmem:[%s7824_s26 + $0x78] sm:$0xff]  ;;  %v5154_v2 = vsel %vm5007_vm1, %v4566_v61, 0.0  ;;  %v4623_v5 = vld [vmem:[%s7824_s26 + $0x400] sm:$0xff]  ;;  %v4624_v6 = vld [vmem:[%s7824_s26 + $0x408] sm:$0xff]  ;;  %v5156_v10 = vsel %vm5007_vm1, %v4567_v3, 0.0 }
 0x12b   : > { %v5147_v47 = vadd.f32 %v5146_v42, %v5145_v41  ;;  %v5037_v7 = vsel %vm5007_vm1, %v4510_v0, 0.0  ;;  %v4511_v8 = vld [vmem:[%s7824_s26 + $0x80] sm:$0xff]  ;;  %v4568_v11 = vld [vmem:[%s7824_s26 + $0x248] sm:$0xff]  ;;  %v5274_v13 = vsel %vm5007_vm1, %v4623_v5, 0.0  ;;  %v5275_v14 = vsel %vm5007_vm1, %v4624_v6, 0.0  ;;  %v4626_v24 = vld [vmem:[%s7824_s26 + $0x418] sm:$0xff] }
 0x12c   : > { %v5018_v18 = vadd.f32 %v5017_v16, %v5016_v15  ;;  %v4625_v15 = vld [vmem:[%s7824_s26 + $0x410] sm:$0xff]  ;;  %v5039_v16 = vsel %vm5007_vm1, %v4511_v8, 0.0  ;;  %v4512_v17 = vld [vmem:[%s7824_s26 + $0x88] sm:$0xff]  ;;  %v5276_v20 = vadd.f32 %v5275_v14, %v5274_v13  ;;  %v4570_v30 = vld [vmem:[%s7824_s26 + $0x258] sm:$0xff]  ;;  %vm6084_vm4 = vcmask 1043459   ;;  %p6490_p9 = scmp.ne.s32.totalorder %s6773_s12, 1 }
 0x12d   : > { %v5149_v53 = vadd.f32 %v5148_v48, %v5147_v47  ;;  %v5277_v23 = vsel %vm5007_vm1, %v4625_v15, 0.0  ;;  %v5041_v25 = vsel %vm5007_vm1, %v4512_v17, 0.0  ;;  %v4514_v35 = vld [vmem:[%s7824_s26 + $0x98] sm:$0xff]  ;;  %v5162_v37 = vsel %vm5007_vm1, %v4570_v30, 0.0  ;;  %v4628_v42 = vld [vmem:[%s7824_s26 + $0x428] sm:$0xff]  ;;  %v4629_v52 = vld [vmem:[%s7824_s26 + $0x430] sm:$0xff] }
 0x12e   : > { %v5020_v21 = vadd.f32 %v5019_v19, %v5018_v18  ;;  %v5158_v19 = vsel %vm5007_vm1, %v4568_v11, 0.0  ;;  %v5278_v29 = vadd.f32 %v5277_v23, %v5276_v20  ;;  %v5045_v43 = vsel %vm5007_vm1, %v4514_v35, 0.0  ;;  %v4572_v48 = vld [vmem:[%s7824_s26 + $0x268] sm:$0xff]  ;;  %v4690_v61 = vld [vmem:[%s7824_s26 + $0x618] sm:$0xff]  ;;  %v4517_v5 = vld [vmem:[%s7824_s26 + $0xb0] sm:$0xff] }
 0x12f   : > { %v5151_v59 = vadd.f32 %v5150_v54, %v5149_v53  ;;  %v4687_v54 = vld [vmem:[%s7824_s26 + $0x600] sm:$0xff]  ;;  %v4688_v55 = vld [vmem:[%s7824_s26 + $0x608] sm:$0xff]  ;;  %v5166_v58 = vsel %vm5007_vm1, %v4572_v48, 0.0  ;;  %v4630_v0 = vld [vmem:[%s7824_s26 + $0x438] sm:$0xff]  ;;  %v5412_v11 = vsel %vm5007_vm1, %v4690_v61, 0.0  ;;  %vm6086_vm5 = vcmask 1044484  }
 0x130   : > { %v5022_v26 = vadd.f32 %v5021_v22, %v5020_v21  ;;  %v4569_v21 = vld [vmem:[%s7824_s26 + $0x250] sm:$0xff]  ;;  %v5408_v3 = vsel %vm5007_vm1, %v4688_v55, 0.0  ;;  %v4691_v6 = vld [vmem:[%s7824_s26 + $0x620] sm:$0xff]  ;;  %v4692_v13 = vld [vmem:[%s7824_s26 + $0x628] sm:$0xff]  ;;  %v5287_v15 = vsel %vm5007_vm1, %v4630_v0, 0.0  ;;  %vm6088_vm6 = vcmask 1045509  }
 0x131   : > { %v5153_v1 = vadd.f32 %v5152_v60, %v5151_v59  ;;  %v5160_v28 = vsel %vm5007_vm1, %v4569_v21, 0.0  ;;  %v4573_v60 = vld [vmem:[%s7824_s26 + $0x270] sm:$0xff]  ;;  %v4631_v17 = vld [vmem:[%s7824_s26 + $0x440] sm:$0xff]  ;;  %v4518_v20 = vld [vmem:[%s7824_s26 + $0xb8] sm:$0xff]  ;;  %vm6090_vm7 = vcmask 1046534   ;;  %vm6092_vm8 = vcmask 1047559  }
 0x132   : > { %v5024_v32 = vadd.f32 %v5023_v27, %v5022_v26  ;;  %v4513_v26 = vld [vmem:[%s7824_s26 + $0x90] sm:$0xff]  ;;  %v5289_v30 = vsel %vm5007_vm1, %v4631_v17, 0.0  ;;  %v4519_v35 = vld [vmem:[%s7824_s26 + $0xc0] sm:$0xff]  ;;  %v4520_v48 = vld [vmem:[%s7824_s26 + $0xc8] sm:$0xff] }
 0x133   : > { %v5155_v9 = vadd.f32 %v5154_v2, %v5153_v1  ;;  %v5043_v34 = vsel %vm5007_vm1, %v4513_v26, 0.0  ;;  %v5407_v2 = vsel %vm5007_vm1, %v4687_v54, 0.0  ;;  %v4693_v21 = vld [vmem:[%s7824_s26 + $0x630] sm:$0xff]  ;;  %v5416_v26 = vsel %vm5007_vm1, %v4692_v13, 0.0 }
 0x134   : > { %v5026_v38 = vadd.f32 %v5025_v33, %v5024_v32  ;;  %v5279_v32 = vsel %vm5007_vm1, %v4626_v24, 0.0  ;;  %v4627_v33 = vld [vmem:[%s7824_s26 + $0x420] sm:$0xff]  ;;  %v5409_v8 = vadd.f32 %v5408_v3, %v5407_v2  ;;  %v4577_v55 = vld [vmem:[%s7824_s26 + $0x290] sm:$0xff]  ;;  %v4578_v3 = vld [vmem:[%s7824_s26 + $0x298] sm:$0xff] }
 0x135   : > { %v5157_v18 = vadd.f32 %v5156_v10, %v5155_v9  ;;  %v5281_v41 = vsel %vm5007_vm1, %v4627_v33, 0.0  ;;  %v5168_v9 = vsel %vm5007_vm1, %v4573_v60, 0.0  ;;  %v5053_v33 = vsel %vm5007_vm1, %v4518_v20, 0.0  ;;  %v4521_v61 = vld [vmem:[%s7824_s26 + $0xd0] sm:$0xff]  ;;  %v4528_v20 = vld [vmem:[%s7824_s26 + $0x108] sm:$0xff] }
 0x136   : > { %v5028_v44 = vadd.f32 %v5027_v39, %v5026_v38  ;;  %v5280_v38 = vadd.f32 %v5279_v32, %v5278_v29  ;;  %v4571_v39 = vld [vmem:[%s7824_s26 + $0x260] sm:$0xff]  ;;  %v4632_v32 = vld [vmem:[%s7824_s26 + $0x448] sm:$0xff]  ;;  %v4697_v0 = vld [vmem:[%s7824_s26 + $0x650] sm:$0xff]  ;;  %v5178_v17 = vsel %vm5007_vm1, %v4578_v3, 0.0 }
 0x137   : > { %v5159_v27 = vadd.f32 %v5158_v19, %v5157_v18  ;;  %v5164_v46 = vsel %vm5007_vm1, %v4571_v39, 0.0  ;;  %v5051_v18 = vsel %vm5007_vm1, %v4517_v5, 0.0  ;;  %v5414_v19 = vsel %vm5007_vm1, %v4691_v6, 0.0  ;;  %v4635_v6 = vld [vmem:[%s7824_s26 + $0x460] sm:$0xff]  ;;  %v4700_v3 = vld [vmem:[%s7824_s26 + $0x668] sm:$0xff] }
 0x138   : > { %v5030_v50 = vadd.f32 %v5029_v45, %v5028_v44  ;;  %v4515_v44 = vld [vmem:[%s7824_s26 + $0xa0] sm:$0xff]  ;;  %v5282_v47 = vadd.f32 %v5281_v41, %v5280_v38  ;;  %v5426_v13 = vsel %vm5007_vm1, %v4697_v0, 0.0 }
 0x139   : > { %v5161_v36 = vadd.f32 %v5160_v28, %v5159_v27  ;;  %v5047_v53 = vsel %vm5007_vm1, %v4515_v44, 0.0  ;;  %v4575_v27 = vld [vmem:[%s7824_s26 + $0x280] sm:$0xff]  ;;  %v4694_v28 = vld [vmem:[%s7824_s26 + $0x638] sm:$0xff]  ;;  %v5291_v44 = vsel %vm5007_vm1, %v4632_v32, 0.0  ;;  %v4532_v32 = vld [vmem:[%s7824_s26 + $0x128] sm:$0xff] }
 0x13a   : > { %v5032_v56 = vadd.f32 %v5031_v51, %v5030_v50  ;;  %v5283_v50 = vsel %vm5007_vm1, %v4628_v42, 0.0  ;;  %v4516_v51 = vld [vmem:[%s7824_s26 + $0xa8] sm:$0xff]  ;;  %v4695_v38 = vld [vmem:[%s7824_s26 + $0x640] sm:$0xff]  ;;  %v5172_v39 = vsel %vm5007_vm1, %v4575_v27, 0.0  ;;  %v5420_v41 = vsel %vm5007_vm1, %v4694_v28, 0.0 }
 0x13b   : > { %v5163_v45 = vadd.f32 %v5162_v37, %v5161_v36  ;;  %v5284_v59 = vadd.f32 %v5283_v50, %v5282_v47  ;;  %v5049_v1 = vsel %vm5007_vm1, %v4516_v51, 0.0  ;;  %v4576_v42 = vld [vmem:[%s7824_s26 + $0x288] sm:$0xff]  ;;  %v5055_v47 = vsel %vm5007_vm1, %v4519_v35, 0.0 }
 0x13c   : > { %v5034_v62 = vadd.f32 %v5033_v57, %v5032_v56  ;;  %v4689_v56 = vld [vmem:[%s7824_s26 + $0x610] sm:$0xff]  ;;  %v5422_v51 = vsel %vm5007_vm1, %v4695_v38, 0.0  ;;  %v4534_v38 = vld [vmem:[%s7824_s26 + $0x138] sm:$0xff] }
 0x13d   : > { %v5165_v57 = vadd.f32 %v5164_v46, %v5163_v45  ;;  %v4633_v46 = vld [vmem:[%s7824_s26 + $0x450] sm:$0xff] }
 0x13e   : > { %v5036_v4 = vadd.f32 %v5035_v63, %v5034_v62  ;;  %v5285_v63 = vsel %vm5007_vm1, %v4629_v52, 0.0  ;;  %v4696_v52 = vld [vmem:[%s7824_s26 + $0x648] sm:$0xff] }
 0x13f   : > { %v5286_v10 = vadd.f32 %v5285_v63, %v5284_v59  ;;  %v5057_v59 = vsel %vm5007_vm1, %v4520_v48, 0.0  ;;  %v5424_v63 = vsel %vm5007_vm1, %v4696_v52, 0.0  ;;  %v4538_v52 = vld [vmem:[%s7824_s26 + $0x158] sm:$0xff] }
 0x140   : > { %v5038_v12 = vadd.f32 %v5037_v7, %v5036_v4  ;;  %v5410_v4 = vsel %vm5007_vm1, %v4689_v56, 0.0  ;;  %v5167_v7 = vadd.f32 %v5166_v58, %v5165_v57  ;;  %v5293_v57 = vsel %vm5007_vm1, %v4633_v46, 0.0  ;;  %v4634_v58 = vld [vmem:[%s7824_s26 + $0x458] sm:$0xff]  ;;  %v4537_v46 = vld [vmem:[%s7824_s26 + $0x150] sm:$0xff] }
 0x141   : > { %v5295_v5 = vsel %vm5007_vm1, %v4634_v58, 0.0 }
 0x142   : > { %v5040_v22 = vadd.f32 %v5039_v16, %v5038_v12  ;;  %v4574_v12 = vld [vmem:[%s7824_s26 + $0x278] sm:$0xff]  ;;  %v5411_v16 = vadd.f32 %v5410_v4, %v5409_v8 }
 0x143   : > { %v5170_v24 = vsel %vm5007_vm1, %v4574_v12, 0.0 }
 0x144   : > { %v5042_v31 = vadd.f32 %v5041_v25, %v5040_v22  ;;  %v5169_v22 = vadd.f32 %v5168_v9, %v5167_v7  ;;  %v5413_v23 = vadd.f32 %v5412_v11, %v5411_v16  ;;  %v5288_v25 = vadd.f32 %v5287_v15, %v5286_v10  ;;  %v4522_v9 = vld [vmem:[%s7824_s26 + $0xd8] sm:$0xff]  ;;  %v4523_v10 = vld [vmem:[%s7824_s26 + $0xe0] sm:$0xff]  ;;  %v4524_v11 = vld [vmem:[%s7824_s26 + $0xe8] sm:$0xff] }
 0x145   : > { %v5059_v7 = vsel %vm5007_vm1, %v4521_v61, 0.0  ;;  %v4526_v15 = vld [vmem:[%s7824_s26 + $0xf8] sm:$0xff]  ;;  %v5061_v27 = vsel %vm5007_vm1, %v4522_v9, 0.0  ;;  %v5063_v28 = vsel %vm5007_vm1, %v4523_v10, 0.0  ;;  %v4753_v61 = vld [vmem:[%s7824_s26 + $0x810] sm:$0xff] }
 0x146   : > { %v5044_v40 = vadd.f32 %v5043_v34, %v5042_v31  ;;  %v5415_v31 = vadd.f32 %v5414_v19, %v5413_v23  ;;  %v5418_v34 = vsel %vm5007_vm1, %v4693_v21, 0.0  ;;  %v5171_v36 = vadd.f32 %v5170_v24, %v5169_v22  ;;  %v4698_v16 = vld [vmem:[%s7824_s26 + $0x658] sm:$0xff]  ;;  %v4527_v19 = vld [vmem:[%s7824_s26 + $0x100] sm:$0xff]  ;;  %v4529_v24 = vld [vmem:[%s7824_s26 + $0x110] sm:$0xff] }
 0x147   : > { %v4579_v21 = vld [vmem:[%s7824_s26 + $0x2a0] sm:$0xff]  ;;  %v5297_v23 = vsel %vm5007_vm1, %v4635_v6, 0.0  ;;  %v7993_v35 = vsel %vm5007_vm1, %v4526_v15, 0.0  ;;  %v4581_v9 = vld [vmem:[%s7824_s26 + $0x2b0] sm:$0xff]  ;;  %v4754_v10 = vld [vmem:[%s7824_s26 + $0x818] sm:$0xff] }
 0x148   : > { %v5046_v49 = vadd.f32 %v5045_v43, %v5044_v40  ;;  %v5417_v37 = vadd.f32 %v5416_v26, %v5415_v31  ;;  %v5290_v40 = vadd.f32 %v5289_v30, %v5288_v25  ;;  %v4530_v25 = vld [vmem:[%s7824_s26 + $0x118] sm:$0xff]  ;;  %v4636_v26 = vld [vmem:[%s7824_s26 + $0x468] sm:$0xff]  ;;  %v4531_v31 = vld [vmem:[%s7824_s26 + $0x120] sm:$0xff] }
 0x149   : > { %v4542_v15 = vld [vmem:[%s7824_s26 + $0x178] sm:$0xff] }
 0x14a   : > { %v5048_v62 = vadd.f32 %v5047_v53, %v5046_v49  ;;  %v5419_v45 = vadd.f32 %v5418_v34, %v5417_v37  ;;  %v5173_v49 = vadd.f32 %v5172_v39, %v5171_v36  ;;  %v5174_v53 = vsel %vm5007_vm1, %v4576_v42, 0.0  ;;  %v4535_v39 = vld [vmem:[%s7824_s26 + $0x140] sm:$0xff] }
 0x14b   : > { %v5292_v54 = vadd.f32 %v5291_v44, %v5290_v40  ;;  %v5428_v37 = vsel %vm5007_vm1, %v4698_v16, 0.0  ;;  %v4699_v40 = vld [vmem:[%s7824_s26 + $0x660] sm:$0xff]  ;;  %v8003_v42 = vsel %vm5007_vm1, %v4528_v20, 0.0  ;;  %v4638_v16 = vld [vmem:[%s7824_s26 + $0x478] sm:$0xff]  ;;  %v5543_v20 = vsel %vm5007_vm1, %v4753_v61, 0.0 }
 0x14c   : > { %v5050_v14 = vadd.f32 %v5049_v1, %v5048_v62  ;;  %v5421_v50 = vadd.f32 %v5420_v41, %v5419_v45  ;;  %v5175_v62 = vadd.f32 %v5174_v53, %v5173_v49  ;;  %v5176_v1 = vsel %vm5007_vm1, %v4577_v55, 0.0  ;;  %v4536_v45 = vld [vmem:[%s7824_s26 + $0x148] sm:$0xff]  ;;  %v4539_v53 = vld [vmem:[%s7824_s26 + $0x160] sm:$0xff] }
 0x14d   : > { %v5294_v2 = vadd.f32 %v5293_v57, %v5292_v54  ;;  %v8000_v41 = vsel %vm5007_vm1, %v4527_v19, 0.0  ;;  %v8010_v49 = vsel %vm5007_vm1, %v4529_v24, 0.0  ;;  %v4637_v54 = vld [vmem:[%s7824_s26 + $0x470] sm:$0xff]  ;;  %v8020_v55 = vsel %vm5007_vm1, %v4531_v31, 0.0 }
 0x14e   : > { %v5052_v29 = vadd.f32 %v5051_v18, %v5050_v14  ;;  %v5423_v60 = vadd.f32 %v5422_v51, %v5421_v50  ;;  %v5177_v12 = vadd.f32 %v5176_v1, %v5175_v62  ;;  %v4525_v14 = vld [vmem:[%s7824_s26 + $0xf0] sm:$0xff]  ;;  %v8013_v50 = vsel %vm5007_vm1, %v4530_v25, 0.0 }
 0x14f   : > { %v5296_v18 = vadd.f32 %v5295_v5, %v5294_v2  ;;  %v7990_v34 = vsel %vm5007_vm1, %v4525_v14, 0.0  ;;  %v5299_v51 = vsel %vm5007_vm1, %v4636_v26, 0.0  ;;  %v8032_v62 = vsel %vm5007_vm1, %v4534_v38, 0.0  ;;  %v4540_v2 = vld [vmem:[%s7824_s26 + $0x168] sm:$0xff]  ;;  %v4582_v38 = vld [vmem:[%s7824_s26 + $0x2b8] sm:$0xff] }
 0x150   : > { %v5054_v43 = vadd.f32 %v5053_v33, %v5052_v29  ;;  %v5425_v8 = vadd.f32 %v5424_v63, %v5423_v60  ;;  %v7984_v29 = vsel %vm5007_vm1, %v4524_v11, 0.0  ;;  %v4533_v33 = vld [vmem:[%s7824_s26 + $0x130] sm:$0xff]  ;;  %v5179_v36 = vadd.f32 %v5178_v17, %v5177_v12  ;;  %v4752_v60 = vld [vmem:[%s7824_s26 + $0x808] sm:$0xff] }
 0x151   : > { %v5298_v44 = vadd.f32 %v5297_v23, %v5296_v18  ;;  %v8026_v57 = vsel %vm5007_vm1, %v4533_v33, 0.0  ;;  %v8035_v63 = vsel %vm5007_vm1, %v4535_v39, 0.0  ;;  %v5430_v1 = vsel %vm5007_vm1, %v4699_v40, 0.0  ;;  %v4755_v23 = vld [vmem:[%s7824_s26 + $0x820] sm:$0xff]  ;;  %v4756_v39 = vld [vmem:[%s7824_s26 + $0x828] sm:$0xff] }
 0x152   : > { %v5056_v56 = vadd.f32 %v5055_v47, %v5054_v43  ;;  %v5427_v30 = vadd.f32 %v5426_v13, %v5425_v8  ;;  %v5180_v43 = vsel %vm5007_vm1, %v4579_v21, 0.0  ;;  %v4580_v47 = vld [vmem:[%s7824_s26 + $0x2a8] sm:$0xff]  ;;  %v8044_v5 = vsel %vm5007_vm1, %v4537_v46, 0.0  ;;  %v4541_v8 = vld [vmem:[%s7824_s26 + $0x170] sm:$0xff]  ;;  %v4543_v21 = vld [vmem:[%s7824_s26 + $0x180] sm:$0xff] }
 0x153   : > { %v5181_v0 = vadd.f32 %v5180_v43, %v5179_v36  ;;  %v5182_v6 = vsel %vm5007_vm1, %v4580_v47, 0.0  ;;  %v8051_v12 = vsel %vm5007_vm1, %v4538_v52, 0.0  ;;  %v8054_v13 = vsel %vm5007_vm1, %v4539_v53, 0.0  ;;  %v4547_v46 = vld [vmem:[%s7824_s26 + $0x1a0] sm:$0xff]  ;;  %v4548_v53 = vld [vmem:[%s7824_s26 + $0x1a8] sm:$0xff] }
 0x154   : > { %v5058_v4 = vadd.f32 %v5057_v59, %v5056_v56  ;;  %v8023_v56 = vsel %vm5007_vm1, %v4532_v32, 0.0  ;;  %v5429_v58 = vadd.f32 %v5428_v37, %v5427_v30  ;;  %v4751_v59 = vld [vmem:[%s7824_s26 + $0x800] sm:$0xff]  ;;  %v5301_v14 = vsel %vm5007_vm1, %v4637_v54, 0.0  ;;  %v4701_v30 = vld [vmem:[%s7824_s26 + $0x670] sm:$0xff]  ;;  %v4546_v37 = vld [vmem:[%s7824_s26 + $0x198] sm:$0xff] }
 0x155   : > { %v5540_v18 = vsel %vm5007_vm1, %v4751_v59, 0.0  ;;  %v5541_v19 = vsel %vm5007_vm1, %v4752_v60, 0.0  ;;  %v8066_v24 = vsel %vm5007_vm1, %v4540_v2, 0.0  ;;  %v5183_v25 = vadd.f32 %v5182_v6, %v5181_v0  ;;  %v4639_v47 = vld [vmem:[%s7824_s26 + $0x480] sm:$0xff]  ;;  %v4549_v54 = vld [vmem:[%s7824_s26 + $0x1b0] sm:$0xff]  ;;  %v4702_v2 = vld [vmem:[%s7824_s26 + $0x678] sm:$0xff] }
 0x156   : > { %v5060_v22 = vadd.f32 %v5059_v7, %v5058_v4  ;;  %v8041_v4 = vsel %vm5007_vm1, %v4536_v45, 0.0  ;;  %v5300_v7 = vadd.f32 %v5299_v51, %v5298_v44  ;;  %v5431_v17 = vadd.f32 %v5430_v1, %v5429_v58  ;;  %v4757_v58 = vld [vmem:[%s7824_s26 + $0x830] sm:$0xff]  ;;  %v4550_v1 = vld [vmem:[%s7824_s26 + $0x1b8] sm:$0xff] }
 0x157   : > { %v5432_v26 = vsel %vm5007_vm1, %v4700_v3, 0.0  ;;  %v8072_v31 = vsel %vm5007_vm1, %v4541_v8, 0.0  ;;  %v5184_v32 = vsel %vm5007_vm1, %v4581_v9, 0.0  ;;  %v5545_v36 = vsel %vm5007_vm1, %v4754_v10, 0.0  ;;  %v4551_v9 = vld [vmem:[%s7824_s26 + $0x1c0] sm:$0xff] }
 0x158   : > { %v5062_v48 = vadd.f32 %v5061_v27, %v5060_v22  ;;  %v4544_v22 = vld [vmem:[%s7824_s26 + $0x188] sm:$0xff]  ;;  %v5542_v27 = vadd.f32 %v5541_v19, %v5540_v18  ;;  %v5302_v33 = vadd.f32 %v5301_v14, %v5300_v7  ;;  %v8081_v43 = vsel %vm5007_vm1, %v4542_v15, 0.0  ;;  %v4583_v10 = vld [vmem:[%s7824_s26 + $0x2c0] sm:$0xff] }
 0x159   : > { %v5303_v44 = vsel %vm5007_vm1, %v4638_v16, 0.0  ;;  %v8090_v51 = vsel %vm5007_vm1, %v4544_v22, 0.0  ;;  %v5433_v52 = vadd.f32 %v5432_v26, %v5431_v17  ;;  %v5185_v60 = vadd.f32 %v5184_v32, %v5183_v25  ;;  %v4552_v18 = vld [vmem:[%s7824_s26 + $0x1c8] sm:$0xff]  ;;  %v4554_v25 = vld [vmem:[%s7824_s26 + $0x1d8] sm:$0xff]  ;;  %v4759_v26 = vld [vmem:[%s7824_s26 + $0x840] sm:$0xff] }
 0x15a   : > { %v5064_v11 = vadd.f32 %v5063_v28, %v5062_v48  ;;  %v4545_v28 = vld [vmem:[%s7824_s26 + $0x190] sm:$0xff]  ;;  %v5544_v45 = vadd.f32 %v5543_v20, %v5542_v27  ;;  %v8087_v48 = vsel %vm5007_vm1, %v4543_v21, 0.0  ;;  %v5434_v61 = vsel %vm5007_vm1, %v4701_v30, 0.0  ;;  %v4640_v19 = vld [vmem:[%s7824_s26 + $0x488] sm:$0xff] }
 0x15b   : > { %v8097_v59 = vsel %vm5007_vm1, %v4545_v28, 0.0  ;;  %v8103_v3 = vsel %vm5007_vm1, %v4546_v37, 0.0  ;;  %v5186_v6 = vsel %vm5007_vm1, %v4582_v38, 0.0  ;;  %v5304_v7 = vadd.f32 %v5303_v44, %v5302_v33  ;;  %v4555_v33 = vld [vmem:[%s7824_s26 + $0x1e0] sm:$0xff]  ;;  %v4556_v44 = vld [vmem:[%s7824_s26 + $0x1e8] sm:$0xff] }
 0x15c   : > { %v5066_v40 = vadd.f32 %v7984_v29, %v5064_v11  ;;  %v5547_v29 = vsel %vm5007_vm1, %v4755_v23, 0.0  ;;  %v5546_v0 = vadd.f32 %v5545_v36, %v5544_v45  ;;  %v5549_v8 = vsel %vm5007_vm1, %v4756_v39, 0.0  ;;  %v4758_v11 = vld [vmem:[%s7824_s26 + $0x838] sm:$0xff]  ;;  %v4553_v23 = vld [vmem:[%s7824_s26 + $0x1d0] sm:$0xff]  ;;  %v4703_v36 = vld [vmem:[%s7824_s26 + $0x680] sm:$0xff] }
 0x15d   : > { %v8112_v15 = vsel %vm5007_vm1, %v4547_v46, 0.0  ;;  %v5305_v16 = vsel %vm5007_vm1, %v4639_v47, 0.0  ;;  %v8118_v20 = vsel %vm5007_vm1, %v4548_v53, 0.0  ;;  %v8121_v21 = vsel %vm5007_vm1, %v4549_v54, 0.0  ;;  %v4584_v45 = vld [vmem:[%s7824_s26 + $0x2c8] sm:$0xff]  ;;  %v4557_v54 = vld [vmem:[%s7824_s26 + $0x1f0] sm:$0xff] }
 0x15e   : > { %v5068_v14 = vadd.f32 %v7990_v34, %v5066_v40  ;;  %v5548_v17 = vadd.f32 %v5547_v29, %v5546_v0  ;;  %v5435_v22 = vadd.f32 %v5434_v61, %v5433_v52  ;;  %v5551_v34 = vsel %vm5007_vm1, %v4757_v58, 0.0  ;;  %v4760_v46 = vld [vmem:[%s7824_s26 + $0x848] sm:$0xff]  ;;  %v4641_v58 = vld [vmem:[%s7824_s26 + $0x490] sm:$0xff] }
 0x15f   : > { %v8128_v27 = vsel %vm5007_vm1, %v4550_v1, 0.0  ;;  %v5187_v28 = vadd.f32 %v5186_v6, %v5185_v60  ;;  %v5436_v30 = vsel %vm5007_vm1, %v4702_v2, 0.0  ;;  %v8134_v37 = vsel %vm5007_vm1, %v4551_v9, 0.0  ;;  %v4558_v1 = vld [vmem:[%s7824_s26 + $0x1f8] sm:$0xff]  ;;  %v4585_v2 = vld [vmem:[%s7824_s26 + $0x2d0] sm:$0xff] }
 0x160   : > { %9403 = vst [vmem:[#allocation7_spill] sm:$0xff] %v8128_v27  ;;  %v5550_v32 = vadd.f32 %v5549_v8, %v5548_v17  ;;  %9404 = vst [vmem:[#allocation8_spill] sm:$0xff] %v8134_v37  ;;  %v5188_v38 = vsel %vm5007_vm1, %v4583_v10, 0.0  ;;  %v5306_v39 = vadd.f32 %v5305_v16, %v5304_v7  ;;  %v5553_v40 = vsel %vm5007_vm1, %v4758_v11, 0.0  ;;  %v4761_v6 = vld [vmem:[%s7824_s26 + $0x850] sm:$0xff]  ;;  %v4586_v11 = vld [vmem:[%s7824_s26 + $0x2d8] sm:$0xff] }
 0x161   : > { %v5070_v47 = vadd.f32 %v7993_v35, %v5068_v14  ;;  %v8143_v52 = vsel %vm5007_vm1, %v4552_v18, 0.0  ;;  %v5307_v29 = vsel %vm5007_vm1, %v4640_v19, 0.0  ;;  %v8149_v60 = vsel %vm5007_vm1, %v4553_v23, 0.0  ;;  %v4704_v14 = vld [vmem:[%s7824_s26 + $0x688] sm:$0xff]  ;;  %v4762_v23 = vld [vmem:[%s7824_s26 + $0x858] sm:$0xff] }
 0x162   : > { %9405 = vst [vmem:[#allocation9_spill] sm:$0xff] %v8143_v52  ;;  %v5552_v53 = vadd.f32 %v5551_v34, %v5550_v32  ;;  %9406 = vst [vmem:[#allocation10_spill] sm:$0xff] %v8149_v60  ;;  %v8152_v61 = vsel %vm5007_vm1, %v4554_v25, 0.0  ;;  %v5437_v0 = vadd.f32 %v5436_v30, %v5435_v22  ;;  %v5555_v35 = vsel %vm5007_vm1, %v4759_v26, 0.0  ;;  %v4587_v22 = vld [vmem:[%s7824_s26 + $0x2e0] sm:$0xff]  ;;  %v4588_v34 = vld [vmem:[%s7824_s26 + $0x2e8] sm:$0xff] }
 0x163   : > { %9407 = vst [vmem:[#allocation11_spill] sm:$0xff] %v8152_v61  ;;  %v8159_v7 = vsel %vm5007_vm1, %v4555_v33, 0.0  ;;  %v5189_v8 = vadd.f32 %v5188_v38, %v5187_v28  ;;  %v5438_v9 = vsel %vm5007_vm1, %v4703_v36, 0.0  ;;  %v8165_v16 = vsel %vm5007_vm1, %v4556_v44, 0.0  ;;  %v4589_v32 = vld [vmem:[%s7824_s26 + $0x2f0] sm:$0xff]  ;;  %v4642_v33 = vld [vmem:[%s7824_s26 + $0x498] sm:$0xff] }
 0x164   : > { %9408 = vst [vmem:[#allocation12_spill] sm:$0xff] %v8159_v7  ;;  %v5554_v10 = vadd.f32 %v5553_v40, %v5552_v53  ;;  %9409 = vst [vmem:[#allocation13_spill] sm:$0xff] %v8165_v16  ;;  %v5190_v17 = vsel %vm5007_vm1, %v4584_v45, 0.0  ;;  %v5308_v18 = vadd.f32 %v5307_v29, %v5306_v39  ;;  %v5557_v19 = vsel %vm5007_vm1, %v4760_v46, 0.0  ;;  %v4590_v40 = vld [vmem:[%s7824_s26 + $0x2f8] sm:$0xff]  ;;  %v4591_v44 = vld [vmem:[%s7824_s26 + $0x300] sm:$0xff] }
 0x165   : > { %v5072_v25 = vadd.f32 %v8000_v41, %v5070_v47  ;;  %v8174_v26 = vsel %vm5007_vm1, %v4557_v54, 0.0  ;;  %v5309_v28 = vsel %vm5007_vm1, %v4641_v58, 0.0  ;;  %v8180_v36 = vsel %vm5007_vm1, %v4558_v1, 0.0  ;;  %v4763_v45 = vld [vmem:[%s7824_s26 + $0x860] sm:$0xff]  ;;  %v4592_v54 = vld [vmem:[%s7824_s26 + $0x308] sm:$0xff]  ;;  %v4705_v58 = vld [vmem:[%s7824_s26 + $0x690] sm:$0xff] }
 0x166   : > { %9410 = vst [vmem:[#allocation14_spill] sm:$0xff] %v8174_v26  ;;  %v5556_v30 = vadd.f32 %v5555_v35, %v5554_v10  ;;  %9411 = vst [vmem:[#allocation15_spill] sm:$0xff] %v8180_v36  ;;  %v5192_v38 = vsel %vm5007_vm1, %v4585_v2, 0.0  ;;  %v5439_v39 = vadd.f32 %v5438_v9, %v5437_v0  ;;  %v5559_v41 = vsel %vm5007_vm1, %v4761_v6, 0.0  ;;  %v4593_v6 = vld [vmem:[%s7824_s26 + $0x310] sm:$0xff]  ;;  %v4764_v9 = vld [vmem:[%s7824_s26 + $0x868] sm:$0xff] }
 0x167   : > { %v5191_v46 = vadd.f32 %v5190_v17, %v5189_v8  ;;  %v5194_v47 = vsel %vm5007_vm1, %v4586_v11, 0.0  ;;  %v5440_v29 = vsel %vm5007_vm1, %v4704_v14, 0.0  ;;  %v8192_v35 = vsel %vm5007_vm1, %v4587_v22, 0.0  ;;  %v4594_v8 = vld [vmem:[%s7824_s26 + $0x318] sm:$0xff]  ;;  %v4643_v22 = vld [vmem:[%s7824_s26 + $0x4a0] sm:$0xff]  ;;  %v4644_v26 = vld [vmem:[%s7824_s26 + $0x4a8] sm:$0xff] }
 0x168   : > { %v5558_v53 = vadd.f32 %v5557_v19, %v5556_v30  ;;  %v8195_v0 = vsel %vm5007_vm1, %v4588_v34, 0.0  ;;  %v5310_v1 = vadd.f32 %v5309_v28, %v5308_v18  ;;  %v5561_v2 = vsel %vm5007_vm1, %v4762_v23, 0.0  ;;  %v4595_v19 = vld [vmem:[%s7824_s26 + $0x320] sm:$0xff]  ;;  %v4597_v28 = vld [vmem:[%s7824_s26 + $0x330] sm:$0xff]  ;;  %v4766_v36 = vld [vmem:[%s7824_s26 + $0x878] sm:$0xff] }
 0x169   : > { %v5074_v10 = vadd.f32 %v8003_v42, %v5072_v25  ;;  %v8203_v11 = vsel %vm5007_vm1, %v4589_v32, 0.0  ;;  %v5311_v14 = vsel %vm5007_vm1, %v4642_v33, 0.0  ;;  %v8209_v18 = vsel %vm5007_vm1, %v4590_v40, 0.0  ;;  %v4596_v25 = vld [vmem:[%s7824_s26 + $0x328] sm:$0xff]  ;;  %v4765_v30 = vld [vmem:[%s7824_s26 + $0x870] sm:$0xff]  ;;  %v4767_v16 = vld [vmem:[%s7824_s26 + $0x880] sm:$0xff] }
 0x16a   : > { %v5560_v17 = vadd.f32 %v5559_v41, %v5558_v53  ;;  %v8212_v34 = vsel %vm5007_vm1, %v4591_v44, 0.0  ;;  %v5441_v23 = vadd.f32 %v5440_v29, %v5439_v39  ;;  %v5563_v42 = vsel %vm5007_vm1, %v4763_v45, 0.0  ;;  %v4598_v44 = vld [vmem:[%s7824_s26 + $0x338] sm:$0xff]  ;;  %v4707_v7 = vld [vmem:[%s7824_s26 + $0x6a0] sm:$0xff]  ;;  %v4768_v61 = vld [vmem:[%s7824_s26 + $0x888] sm:$0xff] }
 0x16b   : > { %v5193_v32 = vadd.f32 %v5192_v38, %v5191_v46  ;;  %v8219_v33 = vsel %vm5007_vm1, %v4592_v54, 0.0  ;;  %v5442_v41 = vsel %vm5007_vm1, %v4705_v58, 0.0  ;;  %v4706_v53 = vld [vmem:[%s7824_s26 + $0x698] sm:$0xff]  ;;  %v8225_v39 = vsel %vm5007_vm1, %v4593_v6, 0.0  ;;  %v4599_v46 = vld [vmem:[%s7824_s26 + $0x340] sm:$0xff]  ;;  %v4600_v54 = vld [vmem:[%s7824_s26 + $0x348] sm:$0xff] }
 0x16c   : > { %v5562_v40 = vadd.f32 %v5561_v2, %v5560_v17  ;;  %v8228_v45 = vsel %vm5007_vm1, %v4594_v8, 0.0  ;;  %v5312_v29 = vadd.f32 %v5311_v14, %v5310_v1  ;;  %v5565_v38 = vsel %vm5007_vm1, %v4764_v9, 0.0  ;;  %v4601_v17 = vld [vmem:[%s7824_s26 + $0x350] sm:$0xff]  ;;  %v4708_v37 = vld [vmem:[%s7824_s26 + $0x6a8] sm:$0xff]  ;;  %v4770_v27 = vld [vmem:[%s7824_s26 + $0x898] sm:$0xff] }
 0x16d   : > { %v5076_v58 = vadd.f32 %v8010_v49, %v5074_v10  ;;  %v8236_v2 = vsel %vm5007_vm1, %v4595_v19, 0.0  ;;  %v5313_v6 = vsel %vm5007_vm1, %v4643_v22, 0.0  ;;  %v8242_v1 = vsel %vm5007_vm1, %v4596_v25, 0.0  ;;  %v4602_v10 = vld [vmem:[%s7824_s26 + $0x358] sm:$0xff]  ;;  %v4603_v19 = vld [vmem:[%s7824_s26 + $0x360] sm:$0xff]  ;;  %v4645_v60 = vld [vmem:[%s7824_s26 + $0x4b0] sm:$0xff] }
 0x16e   : > { %v5564_v8 = vadd.f32 %v5563_v42, %v5562_v40  ;;  %v8245_v9 = vsel %vm5007_vm1, %v4597_v28, 0.0  ;;  %v5443_v14 = vadd.f32 %v5442_v41, %v5441_v23  ;;  %v5567_v49 = vsel %vm5007_vm1, %v4765_v30, 0.0  ;;  %v4604_v28 = vld [vmem:[%s7824_s26 + $0x368] sm:$0xff]  ;;  %v4769_v52 = vld [vmem:[%s7824_s26 + $0x890] sm:$0xff] }
 0x16f   : > { %v5195_v22 = vadd.f32 %v5194_v47, %v5193_v32  ;;  %v8252_v42 = vsel %vm5007_vm1, %v4598_v44, 0.0  ;;  %v5444_v25 = vsel %vm5007_vm1, %v4706_v53, 0.0  ;;  %v8258_v23 = vsel %vm5007_vm1, %v4599_v46, 0.0  ;;  %v4605_v32 = vld [vmem:[%s7824_s26 + $0x370] sm:$0xff]  ;;  %v4606_v44 = vld [vmem:[%s7824_s26 + $0x378] sm:$0xff] }
 0x170   : > { %v5566_v40 = vadd.f32 %v5565_v38, %v5564_v8  ;;  %v8261_v30 = vsel %vm5007_vm1, %v4600_v54, 0.0  ;;  %v5314_v41 = vadd.f32 %v5313_v6, %v5312_v29  ;;  %v5569_v47 = vsel %vm5007_vm1, %v4766_v36, 0.0  ;;  %v4607_v8 = vld [vmem:[%s7824_s26 + $0x380] sm:$0xff] }
 0x171   : > { %v5078_v53 = vadd.f32 %v8013_v50, %v5076_v58  ;;  %v8269_v38 = vsel %vm5007_vm1, %v4601_v17, 0.0  ;;  %v5315_v46 = vsel %vm5007_vm1, %v4644_v26, 0.0  ;;  %v8275_v29 = vsel %vm5007_vm1, %v4602_v10, 0.0  ;;  %v4608_v58 = vld [vmem:[%s7824_s26 + $0x388] sm:$0xff]  ;;  %v4609_v17 = vld [vmem:[%s7824_s26 + $0x390] sm:$0xff] }
 0x172   : > { %v5568_v54 = vadd.f32 %v5567_v49, %v5566_v40  ;;  %v8278_v36 = vsel %vm5007_vm1, %v4603_v19, 0.0  ;;  %v5445_v6 = vadd.f32 %v5444_v25, %v5443_v14  ;;  %v5571_v50 = vsel %vm5007_vm1, %v4767_v16, 0.0  ;;  %v4610_v40 = vld [vmem:[%s7824_s26 + $0x398] sm:$0xff] }
 0x173   : > { %v5197_v26 = vadd.f32 %v8192_v35, %v5195_v22  ;;  %v8286_v49 = vsel %vm5007_vm1, %v4604_v28, 0.0  ;;  %v5446_v10 = vsel %vm5007_vm1, %v4707_v7, 0.0  ;;  %v8292_v14 = vsel %vm5007_vm1, %v4605_v32, 0.0  ;;  %v4611_v22 = vld [vmem:[%s7824_s26 + $0x3a0] sm:$0xff]  ;;  %v4612_v28 = vld [vmem:[%s7824_s26 + $0x3a8] sm:$0xff] }
 0x174   : > { %v5570_v19 = vadd.f32 %v5569_v47, %v5568_v54  ;;  %v8295_v16 = vsel %vm5007_vm1, %v4606_v44, 0.0  ;;  %v5316_v25 = vadd.f32 %v5315_v46, %v5314_v41  ;;  %v5573_v35 = vsel %vm5007_vm1, %v4768_v61, 0.0  ;;  %v4613_v54 = vld [vmem:[%s7824_s26 + $0x3b0] sm:$0xff] }
 0x175   : > { %9412 = vst [vmem:[#allocation16_spill] sm:$0xff] %v8295_v16  ;;  %v5080_v7 = vadd.f32 %v8020_v55, %v5078_v53  ;;  %v8303_v47 = vsel %vm5007_vm1, %v4607_v8, 0.0  ;;  %v5317_v32 = vsel %vm5007_vm1, %v4645_v60, 0.0  ;;  %v4646_v16 = vld [vmem:[%s7824_s26 + $0x4b8] sm:$0xff]  ;;  %v8309_v41 = vsel %vm5007_vm1, %v4608_v58, 0.0  ;;  %v4615_v8 = vld [vmem:[%s7824_s26 + $0x3c0] sm:$0xff] }
 0x176   : > { %9413 = vst [vmem:[#allocation17_spill] sm:$0xff] %v8303_v47  ;;  %v5572_v44 = vadd.f32 %v5571_v50, %v5570_v19  ;;  %9414 = vst [vmem:[#allocation18_spill] sm:$0xff] %v8309_v41  ;;  %v8312_v61 = vsel %vm5007_vm1, %v4609_v17, 0.0  ;;  %v5447_v46 = vadd.f32 %v5446_v10, %v5445_v6  ;;  %v5575_v55 = vsel %vm5007_vm1, %v4769_v52, 0.0  ;;  %v4614_v53 = vld [vmem:[%s7824_s26 + $0x3b8] sm:$0xff]  ;;  %v4771_v47 = vld [vmem:[%s7824_s26 + $0x8a0] sm:$0xff] }
 0x177   : > { %9415 = vst [vmem:[#allocation19_spill] sm:$0xff] %v8312_v61  ;;  %v5199_v60 = vadd.f32 %v8195_v0, %v5197_v26  ;;  %v8320_v50 = vsel %vm5007_vm1, %v4610_v40, 0.0  ;;  %v5448_v58 = vsel %vm5007_vm1, %v4708_v37, 0.0  ;;  %v4616_v17 = vld [vmem:[%s7824_s26 + $0x3c8] sm:$0xff]  ;;  %v4709_v61 = vld [vmem:[%s7824_s26 + $0x6b0] sm:$0xff]  ;;  %v8326_v6 = vsel %vm5007_vm1, %v4611_v22, 0.0 }
 0x178   : > { %9416 = vst [vmem:[#allocation20_spill] sm:$0xff] %v8320_v50  ;;  %v5574_v19 = vadd.f32 %v5573_v35, %v5572_v44  ;;  %9417 = vst [vmem:[#allocation21_spill] sm:$0xff] %v8326_v6  ;;  %v8329_v52 = vsel %vm5007_vm1, %v4612_v28, 0.0  ;;  %v5318_v10 = vadd.f32 %v5317_v32, %v5316_v25  ;;  %v5577_v0 = vsel %vm5007_vm1, %v4770_v27, 0.0  ;;  %v4772_v26 = vld [vmem:[%s7824_s26 + $0x8a8] sm:$0xff]  ;;  %v4815_v40 = vld [vmem:[%s7824_s26 + $0xa00] sm:$0xff] }
 0x179   : > { %9418 = vst [vmem:[#allocation22_spill] sm:$0xff] %v8329_v52  ;;  %v4816_v50 = vld [vmem:[%s7824_s26 + $0xa08] sm:$0xff]  ;;  %v5082_v37 = vadd.f32 %v8023_v56, %v5080_v7  ;;  %v8337_v35 = vsel %vm5007_vm1, %v4613_v54, 0.0  ;;  %v5319_v22 = vsel %vm5007_vm1, %v4646_v16, 0.0  ;;  %v4647_v6 = vld [vmem:[%s7824_s26 + $0x4c0] sm:$0xff]  ;;  %v8342_v28 = vsel %vm5007_vm1, %v4614_v53, 0.0 }
 0x17a   : > { %9419 = vst [vmem:[#allocation23_spill] sm:$0xff] %v8337_v35  ;;  %v5576_v44 = vadd.f32 %v5575_v55, %v5574_v19  ;;  %9420 = vst [vmem:[#allocation24_spill] sm:$0xff] %v8342_v28  ;;  %v8345_v25 = vsel %vm5007_vm1, %v4615_v8, 0.0  ;;  %v5449_v27 = vadd.f32 %v5448_v58, %v5447_v46  ;;  %v5579_v56 = vsel %vm5007_vm1, %v4771_v47, 0.0  ;;  %v4773_v7 = vld [vmem:[%s7824_s26 + $0x8b0] sm:$0xff]  ;;  %v4818_v54 = vld [vmem:[%s7824_s26 + $0xa18] sm:$0xff] }
 0x17b   : > { %9421 = vst [vmem:[#allocation25_spill] sm:$0xff] %v8345_v25  ;;  %v4817_v32 = vld [vmem:[%s7824_s26 + $0xa10] sm:$0xff]  ;;  %v5201_v35 = vadd.f32 %v8203_v11, %v5199_v60  ;;  %v8353_v16 = vsel %vm5007_vm1, %v4616_v17, 0.0  ;;  %v5450_v55 = vsel %vm5007_vm1, %v4709_v61, 0.0  ;;  %v4710_v19 = vld [vmem:[%s7824_s26 + $0x6b8] sm:$0xff]  ;;  %v5320_v8 = vadd.f32 %v5319_v22, %v5318_v10  ;;  %v4819_v60 = vld [vmem:[%s7824_s26 + $0xa20] sm:$0xff] }
 0x17c   : > { %9422 = vst [vmem:[#allocation26_spill] sm:$0xff] %v8353_v16  ;;  %v5578_v53 = vadd.f32 %v5577_v0, %v5576_v44  ;;  %v5581_v46 = vsel %vm5007_vm1, %v4772_v26, 0.0  ;;  %v5673_v47 = vsel %vm5007_vm1, %v4815_v40, 0.0  ;;  %v5674_v58 = vsel %vm5007_vm1, %v4816_v50, 0.0  ;;  %v4617_v25 = vld [vmem:[%s7824_s26 + $0x3d0] sm:$0xff]  ;;  %v4618_v11 = vld [vmem:[%s7824_s26 + $0x3d8] sm:$0xff] }
 0x17d   : > { %v5084_v17 = vadd.f32 %v8026_v57, %v5082_v37  ;;  %v5321_v61 = vsel %vm5007_vm1, %v4647_v6, 0.0  ;;  %v5675_v10 = vadd.f32 %v5674_v58, %v5673_v47  ;;  %v4648_v22 = vld [vmem:[%s7824_s26 + $0x4c8] sm:$0xff]  ;;  %v5451_v44 = vadd.f32 %v5450_v55, %v5449_v27  ;;  %v4619_v16 = vld [vmem:[%s7824_s26 + $0x3e0] sm:$0xff]  ;;  %v4774_v28 = vld [vmem:[%s7824_s26 + $0x8b8] sm:$0xff] }
 0x17e   : > { %v5580_v0 = vadd.f32 %v5579_v56, %v5578_v53  ;;  %v5583_v26 = vsel %vm5007_vm1, %v4773_v7, 0.0  ;;  %v5676_v40 = vsel %vm5007_vm1, %v4817_v32, 0.0  ;;  %v5678_v50 = vsel %vm5007_vm1, %v4818_v54, 0.0  ;;  %v4820_v57 = vld [vmem:[%s7824_s26 + $0xa28] sm:$0xff]  ;;  %v4711_v55 = vld [vmem:[%s7824_s26 + $0x6c0] sm:$0xff]  ;;  %v4830_v41 = vld [vmem:[%s7824_s26 + $0xa78] sm:$0xff] }
 0x17f   : > { %v5203_v37 = vadd.f32 %v8209_v18, %v5201_v35  ;;  %v5452_v6 = vsel %vm5007_vm1, %v4710_v19, 0.0  ;;  %v5677_v53 = vadd.f32 %v5676_v40, %v5675_v10  ;;  %v4620_v27 = vld [vmem:[%s7824_s26 + $0x3e8] sm:$0xff]  ;;  %v8377_v7 = vsel %vm5007_vm1, %v4617_v25, 0.0  ;;  %v4621_v18 = vld [vmem:[%s7824_s26 + $0x3f0] sm:$0xff]  ;;  %v4622_v35 = vld [vmem:[%s7824_s26 + $0x3f8] sm:$0xff] }
 0x180   : > { %v5582_v56 = vadd.f32 %v5581_v46, %v5580_v0  ;;  %9423 = vst [vmem:[#allocation27_spill] sm:$0xff] %v8377_v7  ;;  %v8380_v32 = vsel %vm5007_vm1, %v4618_v11, 0.0  ;;  %v5322_v54 = vadd.f32 %v5321_v61, %v5320_v8  ;;  %v5680_v47 = vsel %vm5007_vm1, %v4819_v60, 0.0  ;;  %v4821_v19 = vld [vmem:[%s7824_s26 + $0xa30] sm:$0xff]  ;;  %v4650_v61 = vld [vmem:[%s7824_s26 + $0x4d8] sm:$0xff]  ;;  %v4828_v7 = vld [vmem:[%s7824_s26 + $0xa68] sm:$0xff] }
 0x181   : > { %9424 = vst [vmem:[#allocation28_spill] sm:$0xff] %v8380_v32  ;;  %v5086_v46 = vadd.f32 %v8032_v62, %v5084_v17  ;;  %v5323_v58 = vsel %vm5007_vm1, %v4648_v22, 0.0  ;;  %v5679_v0 = vadd.f32 %v5678_v50, %v5677_v53  ;;  %v4649_v10 = vld [vmem:[%s7824_s26 + $0x4d0] sm:$0xff]  ;;  %v8390_v11 = vsel %vm5007_vm1, %v4619_v16, 0.0  ;;  %v4775_v62 = vld [vmem:[%s7824_s26 + $0x8c0] sm:$0xff]  ;;  %v4822_v17 = vld [vmem:[%s7824_s26 + $0xa38] sm:$0xff] }
 0x182   : > { %v5584_v25 = vadd.f32 %v5583_v26, %v5582_v56  ;;  %9425 = vst [vmem:[#allocation29_spill] sm:$0xff] %v8390_v11  ;;  %v5453_v40 = vadd.f32 %v5452_v6, %v5451_v44  ;;  %v5585_v8 = vsel %vm5007_vm1, %v4774_v28, 0.0  ;;  %v5682_v60 = vsel %vm5007_vm1, %v4820_v57, 0.0  ;;  %v4651_v44 = vld [vmem:[%s7824_s26 + $0x4e0] sm:$0xff]  ;;  %v4712_v6 = vld [vmem:[%s7824_s26 + $0x6c8] sm:$0xff]  ;;  %v4653_v53 = vld [vmem:[%s7824_s26 + $0x4f0] sm:$0xff] }
 0x183   : > { %v5205_v22 = vadd.f32 %v8212_v34, %v5203_v37  ;;  %v8399_v26 = vsel %vm5007_vm1, %v4620_v27, 0.0  ;;  %v5454_v16 = vsel %vm5007_vm1, %v4711_v55, 0.0  ;;  %v5681_v50 = vadd.f32 %v5680_v47, %v5679_v0  ;;  %v4652_v37 = vld [vmem:[%s7824_s26 + $0x4e8] sm:$0xff]  ;;  %v4823_v27 = vld [vmem:[%s7824_s26 + $0xa40] sm:$0xff]  ;;  %v4826_v11 = vld [vmem:[%s7824_s26 + $0xa58] sm:$0xff] }
 0x184   : > { %9426 = vst [vmem:[#allocation30_spill] sm:$0xff] %v8399_v26  ;;  %v8405_v28 = vsel %vm5007_vm1, %v4621_v18, 0.0  ;;  %v8408_v57 = vsel %vm5007_vm1, %v4622_v35, 0.0  ;;  %v5324_v56 = vadd.f32 %v5323_v58, %v5322_v54  ;;  %v5684_v34 = vsel %vm5007_vm1, %v4821_v19, 0.0  ;;  %v4655_v58 = vld [vmem:[%s7824_s26 + $0x500] sm:$0xff]  ;;  %v4776_v26 = vld [vmem:[%s7824_s26 + $0x8c8] sm:$0xff] }
 0x185   : > { %9427 = vst [vmem:[#allocation31_spill] sm:$0xff] %v8405_v28  ;;  %9428 = vst [vmem:[#allocation32_spill] sm:$0xff] %v8408_v57  ;;  %v5088_v55 = vadd.f32 %v8035_v63, %v5086_v46  ;;  %v5325_v47 = vsel %vm5007_vm1, %v4649_v10, 0.0  ;;  %v5586_v18 = vadd.f32 %v5585_v8, %v5584_v25  ;;  %v5683_v0 = vadd.f32 %v5682_v60, %v5681_v50  ;;  %v4654_v28 = vld [vmem:[%s7824_s26 + $0x4f8] sm:$0xff]  ;;  %v4824_v63 = vld [vmem:[%s7824_s26 + $0xa48] sm:$0xff] }
 0x186   : > { %v5327_v35 = vsel %vm5007_vm1, %v4650_v61, 0.0  ;;  %v5455_v57 = vadd.f32 %v5454_v16, %v5453_v40  ;;  %v5587_v54 = vsel %vm5007_vm1, %v4775_v62, 0.0  ;;  %v5686_v19 = vsel %vm5007_vm1, %v4822_v17, 0.0  ;;  %v4656_v60 = vld [vmem:[%s7824_s26 + $0x508] sm:$0xff]  ;;  %v4713_v40 = vld [vmem:[%s7824_s26 + $0x6d0] sm:$0xff]  ;;  %v4658_v16 = vld [vmem:[%s7824_s26 + $0x518] sm:$0xff] }
 0x187   : > { %v5207_v46 = vadd.f32 %v8219_v33, %v5205_v22  ;;  %v5329_v10 = vsel %vm5007_vm1, %v4651_v44, 0.0  ;;  %v5456_v25 = vsel %vm5007_vm1, %v4712_v6, 0.0  ;;  %v5685_v8 = vadd.f32 %v5684_v34, %v5683_v0  ;;  %v4657_v22 = vld [vmem:[%s7824_s26 + $0x510] sm:$0xff] }
 0x188   : > { %v5326_v61 = vadd.f32 %v5325_v47, %v5324_v56  ;;  %v8429_v62 = vsel %vm5007_vm1, %v4652_v37, 0.0  ;;  %v8432_v17 = vsel %vm5007_vm1, %v4653_v53, 0.0  ;;  %v5688_v33 = vsel %vm5007_vm1, %v4823_v27, 0.0  ;;  %v4825_v50 = vld [vmem:[%s7824_s26 + $0xa50] sm:$0xff]  ;;  %v4659_v37 = vld [vmem:[%s7824_s26 + $0x520] sm:$0xff] }
 0x189   : > { %v5090_v44 = vadd.f32 %v8041_v4, %v5088_v55  ;;  %v8440_v6 = vsel %vm5007_vm1, %v4654_v28, 0.0  ;;  %v5588_v56 = vadd.f32 %v5587_v54, %v5586_v18  ;;  %v5687_v34 = vadd.f32 %v5686_v19, %v5685_v8  ;;  %v4660_v4 = vld [vmem:[%s7824_s26 + $0x528] sm:$0xff]  ;;  %v4777_v55 = vld [vmem:[%s7824_s26 + $0x8d0] sm:$0xff]  ;;  %v4663_v8 = vld [vmem:[%s7824_s26 + $0x540] sm:$0xff] }
 0x18a   : > { %v8444_v47 = vsel %vm5007_vm1, %v4655_v58, 0.0  ;;  %v5457_v53 = vadd.f32 %v5456_v25, %v5455_v57  ;;  %v5589_v27 = vsel %vm5007_vm1, %v4776_v26, 0.0  ;;  %v5690_v0 = vsel %vm5007_vm1, %v4824_v63, 0.0  ;;  %v4661_v57 = vld [vmem:[%s7824_s26 + $0x530] sm:$0xff]  ;;  %v4714_v58 = vld [vmem:[%s7824_s26 + $0x6d8] sm:$0xff] }
 0x18b   : > { %v5209_v28 = vadd.f32 %v8225_v39, %v5207_v46  ;;  %v8453_v18 = vsel %vm5007_vm1, %v4656_v60, 0.0  ;;  %v5458_v54 = vsel %vm5007_vm1, %v4713_v40, 0.0  ;;  %v5689_v19 = vadd.f32 %v5688_v33, %v5687_v34  ;;  %v4662_v46 = vld [vmem:[%s7824_s26 + $0x538] sm:$0xff]  ;;  %v4827_v60 = vld [vmem:[%s7824_s26 + $0xa60] sm:$0xff] }
 0x18c   : > { %v5328_v25 = vadd.f32 %v5327_v35, %v5326_v61  ;;  %v8459_v26 = vsel %vm5007_vm1, %v4657_v22, 0.0  ;;  %v8462_v63 = vsel %vm5007_vm1, %v4658_v16, 0.0  ;;  %v5692_v39 = vsel %vm5007_vm1, %v4825_v50, 0.0  ;;  %v4664_v22 = vld [vmem:[%s7824_s26 + $0x548] sm:$0xff] }
 0x18d   : > { %v5092_v40 = vadd.f32 %v8044_v5, %v5090_v44  ;;  %v8470_v33 = vsel %vm5007_vm1, %v4659_v37, 0.0  ;;  %v5590_v35 = vadd.f32 %v5589_v27, %v5588_v56  ;;  %v5691_v61 = vadd.f32 %v5690_v0, %v5689_v19  ;;  %v4665_v5 = vld [vmem:[%s7824_s26 + $0x550] sm:$0xff]  ;;  %v4778_v44 = vld [vmem:[%s7824_s26 + $0x8d8] sm:$0xff]  ;;  %v4668_v19 = vld [vmem:[%s7824_s26 + $0x568] sm:$0xff] }
 0x18e   : > { %v8474_v34 = vsel %vm5007_vm1, %v4660_v4, 0.0  ;;  %v5459_v16 = vadd.f32 %v5458_v54, %v5457_v53  ;;  %v5591_v50 = vsel %vm5007_vm1, %v4777_v55, 0.0  ;;  %v5694_v32 = vsel %vm5007_vm1, %v4826_v11, 0.0  ;;  %v4666_v53 = vld [vmem:[%s7824_s26 + $0x558] sm:$0xff]  ;;  %v4715_v4 = vld [vmem:[%s7824_s26 + $0x6e0] sm:$0xff] }
 0x18f   : > { %v5211_v37 = vadd.f32 %v8228_v45, %v5209_v28  ;;  %v8483_v56 = vsel %vm5007_vm1, %v4661_v57, 0.0  ;;  %v5460_v27 = vsel %vm5007_vm1, %v4714_v58, 0.0  ;;  %v5693_v0 = vadd.f32 %v5692_v39, %v5691_v61  ;;  %v4667_v28 = vld [vmem:[%s7824_s26 + $0x560] sm:$0xff]  ;;  %v4829_v57 = vld [vmem:[%s7824_s26 + $0xa70] sm:$0xff] }
 0x190   : > { %v5330_v54 = vadd.f32 %v5329_v10, %v5328_v25  ;;  %v8489_v55 = vsel %vm5007_vm1, %v4662_v46, 0.0  ;;  %v8492_v11 = vsel %vm5007_vm1, %v4663_v8, 0.0  ;;  %v5696_v45 = vsel %vm5007_vm1, %v4827_v60, 0.0  ;;  %v4669_v46 = vld [vmem:[%s7824_s26 + $0x570] sm:$0xff] }
 0x191   : > { %v5094_v58 = vadd.f32 %v8051_v12, %v5092_v40  ;;  %v8500_v39 = vsel %vm5007_vm1, %v4664_v22, 0.0  ;;  %v5592_v10 = vadd.f32 %v5591_v50, %v5590_v35  ;;  %v5695_v25 = vadd.f32 %v5694_v32, %v5693_v0  ;;  %v4670_v12 = vld [vmem:[%s7824_s26 + $0x578] sm:$0xff]  ;;  %v4779_v40 = vld [vmem:[%s7824_s26 + $0x8e0] sm:$0xff]  ;;  %v4673_v0 = vld [vmem:[%s7824_s26 + $0x590] sm:$0xff] }
 0x192   : > { %v8504_v61 = vsel %vm5007_vm1, %v4665_v5, 0.0  ;;  %v5461_v8 = vadd.f32 %v5460_v27, %v5459_v16  ;;  %v5593_v60 = vsel %vm5007_vm1, %v4778_v44, 0.0  ;;  %v5698_v52 = vsel %vm5007_vm1, %v4828_v7, 0.0  ;;  %v4671_v16 = vld [vmem:[%s7824_s26 + $0x580] sm:$0xff]  ;;  %v4716_v5 = vld [vmem:[%s7824_s26 + $0x6e8] sm:$0xff] }
 0x193   : > { %v5213_v22 = vadd.f32 %v8236_v2, %v5211_v37  ;;  %v8513_v35 = vsel %vm5007_vm1, %v4666_v53, 0.0  ;;  %v5462_v32 = vsel %vm5007_vm1, %v4715_v4, 0.0  ;;  %v5697_v50 = vadd.f32 %v5696_v45, %v5695_v25  ;;  %v4672_v37 = vld [vmem:[%s7824_s26 + $0x588] sm:$0xff]  ;;  %v4831_v53 = vld [vmem:[%s7824_s26 + $0xa80] sm:$0xff] }
 0x194   : > { %v5332_v44 = vadd.f32 %v8429_v62, %v5330_v54  ;;  %v8520_v7 = vsel %vm5007_vm1, %v4667_v28, 0.0  ;;  %v8523_v27 = vsel %vm5007_vm1, %v4668_v19, 0.0  ;;  %v5700_v2 = vsel %vm5007_vm1, %v4829_v57, 0.0  ;;  %v4674_v28 = vld [vmem:[%s7824_s26 + $0x598] sm:$0xff] }
 0x195   : > { %9429 = vst [vmem:[#allocation33_spill] sm:$0xff] %v8520_v7  ;;  %9430 = vst [vmem:[#allocation34_spill] sm:$0xff] %v8523_v27  ;;  %v5096_v4 = vadd.f32 %v8054_v13, %v5094_v58  ;;  %v8531_v45 = vsel %vm5007_vm1, %v4669_v46, 0.0  ;;  %v5594_v62 = vadd.f32 %v5593_v60, %v5592_v10  ;;  %v5699_v54 = vadd.f32 %v5698_v52, %v5697_v50  ;;  %v4675_v13 = vld [vmem:[%s7824_s26 + $0x5a0] sm:$0xff]  ;;  %v4780_v58 = vld [vmem:[%s7824_s26 + $0x8e8] sm:$0xff] }
 0x196   : > { %v8535_v25 = vsel %vm5007_vm1, %v4670_v12, 0.0  ;;  %v5463_v19 = vadd.f32 %v5462_v32, %v5461_v8  ;;  %v5595_v57 = vsel %vm5007_vm1, %v4779_v40, 0.0  ;;  %v5702_v27 = vsel %vm5007_vm1, %v4830_v41, 0.0  ;;  %v4832_v7 = vld [vmem:[%s7824_s26 + $0xa88] sm:$0xff]  ;;  %v4717_v12 = vld [vmem:[%s7824_s26 + $0x6f0] sm:$0xff]  ;;  %v4879_v50 = vld [vmem:[%s7824_s26 + $0xc00] sm:$0xff] }
 0x197   : > { %v5215_v46 = vadd.f32 %v8242_v1, %v5213_v22  ;;  %v8544_v10 = vsel %vm5007_vm1, %v4671_v16, 0.0  ;;  %v5464_v52 = vsel %vm5007_vm1, %v4716_v5, 0.0  ;;  %v5701_v60 = vadd.f32 %v5700_v2, %v5699_v54  ;;  %v4676_v8 = vld [vmem:[%s7824_s26 + $0x5a8] sm:$0xff]  ;;  %v4833_v22 = vld [vmem:[%s7824_s26 + $0xa90] sm:$0xff] }
 0x198   : > { %9431 = vst [vmem:[#allocation35_spill] sm:$0xff] %v8544_v10  ;;  %v5334_v40 = vadd.f32 %v8432_v17, %v5332_v44  ;;  %v8551_v41 = vsel %vm5007_vm1, %v4672_v37, 0.0  ;;  %v8554_v32 = vsel %vm5007_vm1, %v4673_v0, 0.0  ;;  %v5704_v1 = vsel %vm5007_vm1, %v4831_v53, 0.0  ;;  %v4880_v16 = vld [vmem:[%s7824_s26 + $0xc08] sm:$0xff]  ;;  %v4781_v37 = vld [vmem:[%s7824_s26 + $0x8f0] sm:$0xff] }
 0x199   : > { %9432 = vst [vmem:[#allocation36_spill] sm:$0xff] %v8551_v41  ;;  %9433 = vst [vmem:[#allocation37_spill] sm:$0xff] %v8554_v32  ;;  %v5098_v5 = vadd.f32 %v8066_v24, %v5096_v4  ;;  %v8562_v2 = vsel %vm5007_vm1, %v4674_v28, 0.0  ;;  %v5596_v17 = vadd.f32 %v5595_v57, %v5594_v62  ;;  %v5703_v44 = vadd.f32 %v5702_v27, %v5701_v60  ;;  %v4834_v41 = vld [vmem:[%s7824_s26 + $0xa98] sm:$0xff]  ;;  %v4881_v10 = vld [vmem:[%s7824_s26 + $0xc10] sm:$0xff] }
 0x19a   : > { %v8566_v54 = vsel %vm5007_vm1, %v4675_v13, 0.0  ;;  %v5465_v0 = vadd.f32 %v5464_v52, %v5463_v19  ;;  %v5597_v53 = vsel %vm5007_vm1, %v4780_v58, 0.0  ;;  %v5706_v32 = vsel %vm5007_vm1, %v4832_v7, 0.0  ;;  %v4718_v28 = vld [vmem:[%s7824_s26 + $0x6f8] sm:$0xff] }
 0x19b   : > { %v5217_v24 = vadd.f32 %v8245_v9, %v5215_v46  ;;  %v8574_v4 = vsel %vm5007_vm1, %v4676_v8, 0.0  ;;  %v5466_v27 = vsel %vm5007_vm1, %v4717_v12, 0.0  ;;  %v5705_v62 = vadd.f32 %v5704_v1, %v5703_v44  ;;  %v4882_v57 = vld [vmem:[%s7824_s26 + $0xc18] sm:$0xff]  ;;  %v4677_v9 = vld [vmem:[%s7824_s26 + $0x5b0] sm:$0xff]  ;;  %v4835_v46 = vld [vmem:[%s7824_s26 + $0xaa0] sm:$0xff] }
 0x19c   : > { %9434 = vst [vmem:[#allocation38_spill] sm:$0xff] %v8574_v4  ;;  %v5336_v19 = vadd.f32 %v8440_v6, %v5334_v40  ;;  %v5708_v13 = vsel %vm5007_vm1, %v4833_v22, 0.0  ;;  %v5806_v7 = vsel %vm5007_vm1, %v4879_v50, 0.0  ;;  %v5807_v58 = vsel %vm5007_vm1, %v4880_v16, 0.0  ;;  %v4883_v1 = vld [vmem:[%s7824_s26 + $0xc20] sm:$0xff]  ;;  %v4782_v50 = vld [vmem:[%s7824_s26 + $0x8f8] sm:$0xff] }
 0x19d   : > { %v5100_v52 = vadd.f32 %v8072_v31, %v5098_v5  ;;  %v5598_v60 = vadd.f32 %v5597_v53, %v5596_v17  ;;  %v5599_v8 = vsel %vm5007_vm1, %v4781_v37, 0.0  ;;  %v5707_v12 = vadd.f32 %v5706_v32, %v5705_v62  ;;  %v4836_v16 = vld [vmem:[%s7824_s26 + $0xaa8] sm:$0xff]  ;;  %v4719_v32 = vld [vmem:[%s7824_s26 + $0x700] sm:$0xff] }
 0x19e   : > { %v5467_v44 = vadd.f32 %v5466_v27, %v5465_v0  ;;  %v5710_v6 = vsel %vm5007_vm1, %v4834_v41, 0.0  ;;  %v5808_v40 = vadd.f32 %v5807_v58, %v5806_v7  ;;  %v5809_v22 = vsel %vm5007_vm1, %v4881_v10, 0.0  ;;  %v4884_v37 = vld [vmem:[%s7824_s26 + $0xc28] sm:$0xff]  ;;  %v4678_v27 = vld [vmem:[%s7824_s26 + $0x5b8] sm:$0xff] }
 0x19f   : > { %v5219_v4 = vadd.f32 %v8252_v42, %v5217_v24  ;;  %v5468_v31 = vsel %vm5007_vm1, %v4718_v28, 0.0  ;;  %v5709_v5 = vadd.f32 %v5708_v13, %v5707_v12  ;;  %v5811_v17 = vsel %vm5007_vm1, %v4882_v57, 0.0  ;;  %v4837_v42 = vld [vmem:[%s7824_s26 + $0xab0] sm:$0xff] }
 0x1a0   : > { %v5338_v0 = vadd.f32 %v8444_v47, %v5336_v19  ;;  %v8599_v41 = vsel %vm5007_vm1, %v4677_v9, 0.0  ;;  %v5712_v10 = vsel %vm5007_vm1, %v4835_v46, 0.0  ;;  %v5810_v53 = vadd.f32 %v5809_v22, %v5808_v40  ;;  %v4885_v13 = vld [vmem:[%s7824_s26 + $0xc30] sm:$0xff]  ;;  %v4783_v9 = vld [vmem:[%s7824_s26 + $0x900] sm:$0xff]  ;;  %v4838_v46 = vld [vmem:[%s7824_s26 + $0xab8] sm:$0xff] }
 0x1a1   : > { %v5102_v24 = vadd.f32 %v8081_v43, %v5100_v52  ;;  %v5600_v62 = vadd.f32 %v5599_v8, %v5598_v60  ;;  %v5711_v28 = vadd.f32 %v5710_v6, %v5709_v5  ;;  %v5813_v57 = vsel %vm5007_vm1, %v4883_v1, 0.0  ;;  %v4720_v8 = vld [vmem:[%s7824_s26 + $0x708] sm:$0xff]  ;;  %v4886_v1 = vld [vmem:[%s7824_s26 + $0xc38] sm:$0xff] }
 0x1a2   : > { %v5469_v7 = vadd.f32 %v5468_v31, %v5467_v44  ;;  %v5601_v47 = vsel %vm5007_vm1, %v4782_v50, 0.0  ;;  %v5714_v19 = vsel %vm5007_vm1, %v4836_v16, 0.0  ;;  %v5812_v58 = vadd.f32 %v5811_v17, %v5810_v53  ;;  %v4679_v50 = vld [vmem:[%s7824_s26 + $0x5c0] sm:$0xff]  ;;  %v4840_v53 = vld [vmem:[%s7824_s26 + $0xac8] sm:$0xff] }
 0x1a3   : > { %v5221_v12 = vadd.f32 %v8258_v23, %v5219_v4  ;;  %v5470_v43 = vsel %vm5007_vm1, %v4719_v32, 0.0  ;;  %v5713_v52 = vadd.f32 %v5712_v10, %v5711_v28  ;;  %v5815_v60 = vsel %vm5007_vm1, %v4884_v37, 0.0  ;;  %v4839_v23 = vld [vmem:[%s7824_s26 + $0xac0] sm:$0xff]  ;;  %v4784_v10 = vld [vmem:[%s7824_s26 + $0x908] sm:$0xff] }
 0x1a4   : > { %v5340_v44 = vadd.f32 %v8453_v18, %v5338_v0  ;;  %v8618_v6 = vsel %vm5007_vm1, %v4678_v27, 0.0  ;;  %v5716_v40 = vsel %vm5007_vm1, %v4837_v42, 0.0  ;;  %v5814_v22 = vadd.f32 %v5813_v57, %v5812_v58  ;;  %v4887_v17 = vld [vmem:[%s7824_s26 + $0xc40] sm:$0xff]  ;;  %v4888_v28 = vld [vmem:[%s7824_s26 + $0xc48] sm:$0xff] }
 0x1a5   : > { %v5104_v4 = vadd.f32 %v8087_v48, %v5102_v24  ;;  %v5602_v16 = vadd.f32 %v5601_v47, %v5600_v62  ;;  %v5715_v31 = vadd.f32 %v5714_v19, %v5713_v52  ;;  %v5817_v5 = vsel %vm5007_vm1, %v4885_v13, 0.0  ;;  %v4721_v62 = vld [vmem:[%s7824_s26 + $0x710] sm:$0xff]  ;;  %v4680_v19 = vld [vmem:[%s7824_s26 + $0x5c8] sm:$0xff] }
 0x1a6   : > { %v5471_v32 = vadd.f32 %v5470_v43, %v5469_v7  ;;  %v5603_v18 = vsel %vm5007_vm1, %v4783_v9, 0.0  ;;  %v5718_v37 = vsel %vm5007_vm1, %v4838_v46, 0.0  ;;  %v5816_v0 = vadd.f32 %v5815_v60, %v5814_v22  ;;  %v4889_v43 = vld [vmem:[%s7824_s26 + $0xc50] sm:$0xff] }
 0x1a7   : > { %v5223_v27 = vadd.f32 %v8261_v30, %v5221_v12  ;;  %v5472_v48 = vsel %vm5007_vm1, %v4720_v8, 0.0  ;;  %v5717_v42 = vadd.f32 %v5716_v40, %v5715_v31  ;;  %v5819_v24 = vsel %vm5007_vm1, %v4886_v1, 0.0  ;;  %v4841_v30 = vld [vmem:[%s7824_s26 + $0xad0] sm:$0xff] }
 0x1a8   : > { %v5342_v57 = vadd.f32 %v8459_v26, %v5340_v44  ;;  %v8637_v13 = vsel %vm5007_vm1, %v4679_v50, 0.0  ;;  %v5720_v7 = vsel %vm5007_vm1, %v4839_v23, 0.0  ;;  %v5818_v47 = vadd.f32 %v5817_v5, %v5816_v0  ;;  %v4785_v1 = vld [vmem:[%s7824_s26 + $0x910] sm:$0xff]  ;;  %v4842_v44 = vld [vmem:[%s7824_s26 + $0xad8] sm:$0xff] }
 0x1a9   : > { %v5106_v58 = vadd.f32 %v8090_v51, %v5104_v4  ;;  %v5604_v9 = vadd.f32 %v5603_v18, %v5602_v16  ;;  %v5719_v46 = vadd.f32 %v5718_v37, %v5717_v42  ;;  %v5821_v12 = vsel %vm5007_vm1, %v4887_v17, 0.0  ;;  %v4722_v23 = vld [vmem:[%s7824_s26 + $0x718] sm:$0xff] }
 0x1aa   : > { %v5473_v52 = vadd.f32 %v5472_v48, %v5471_v32  ;;  %v5605_v26 = vsel %vm5007_vm1, %v4784_v10, 0.0  ;;  %v5722_v60 = vsel %vm5007_vm1, %v4840_v53, 0.0  ;;  %v5820_v8 = vadd.f32 %v5819_v24, %v5818_v47  ;;  %v4890_v4 = vld [vmem:[%s7824_s26 + $0xc58] sm:$0xff]  ;;  %v4681_v32 = vld [vmem:[%s7824_s26 + $0x5d0] sm:$0xff]  ;;  %v4891_v53 = vld [vmem:[%s7824_s26 + $0xc60] sm:$0xff] }
 0x1ab   : > { %v5225_v40 = vadd.f32 %v8269_v38, %v5223_v27  ;;  %v5474_v51 = vsel %vm5007_vm1, %v4721_v62, 0.0  ;;  %v5721_v22 = vadd.f32 %v5720_v7, %v5719_v46  ;;  %v5823_v50 = vsel %vm5007_vm1, %v4888_v28, 0.0  ;;  %v4843_v38 = vld [vmem:[%s7824_s26 + $0xae0] sm:$0xff]  ;;  %v4786_v24 = vld [vmem:[%s7824_s26 + $0x918] sm:$0xff]  ;;  %v4844_v62 = vld [vmem:[%s7824_s26 + $0xae8] sm:$0xff] }
 0x1ac   : > { %v5344_v16 = vadd.f32 %v8462_v63, %v5342_v57  ;;  %v8656_v31 = vsel %vm5007_vm1, %v4680_v19, 0.0  ;;  %v5724_v5 = vsel %vm5007_vm1, %v4841_v30, 0.0  ;;  %v5822_v17 = vadd.f32 %v5821_v12, %v5820_v8  ;;  %v4723_v47 = vld [vmem:[%s7824_s26 + $0x720] sm:$0xff]  ;;  %v4892_v19 = vld [vmem:[%s7824_s26 + $0xc68] sm:$0xff]  ;;  %v4845_v12 = vld [vmem:[%s7824_s26 + $0xaf0] sm:$0xff] }
 0x1ad   : > { %v5108_v18 = vadd.f32 %v8097_v59, %v5106_v58  ;;  %v5606_v37 = vadd.f32 %v5605_v26, %v5604_v9  ;;  %v5723_v0 = vadd.f32 %v5722_v60, %v5721_v22  ;;  %v5825_v10 = vsel %vm5007_vm1, %v4889_v43, 0.0  ;;  %v4725_v8 = vld [vmem:[%s7824_s26 + $0x730] sm:$0xff]  ;;  %v4787_v22 = vld [vmem:[%s7824_s26 + $0x920] sm:$0xff] }
 0x1ae   : > { %v5475_v27 = vadd.f32 %v5474_v51, %v5473_v52  ;;  %v5607_v63 = vsel %vm5007_vm1, %v4785_v1, 0.0  ;;  %v5726_v48 = vsel %vm5007_vm1, %v4842_v44, 0.0  ;;  %v5824_v42 = vadd.f32 %v5823_v50, %v5822_v17  ;;  %v4846_v50 = vld [vmem:[%s7824_s26 + $0xaf8] sm:$0xff] }
 0x1af   : > { %v5227_v28 = vadd.f32 %v8275_v29, %v5225_v40  ;;  %v5476_v59 = vsel %vm5007_vm1, %v4722_v23, 0.0  ;;  %v5725_v57 = vadd.f32 %v5724_v5, %v5723_v0  ;;  %v5827_v7 = vsel %vm5007_vm1, %v4890_v4, 0.0  ;;  %v4724_v29 = vld [vmem:[%s7824_s26 + $0x728] sm:$0xff]  ;;  %v4726_v5 = vld [vmem:[%s7824_s26 + $0x738] sm:$0xff]  ;;  %v4847_v0 = vld [vmem:[%s7824_s26 + $0xb00] sm:$0xff] }
 0x1b0   : > { %v5346_v30 = vadd.f32 %v8470_v33, %v5344_v16  ;;  %v8675_v58 = vsel %vm5007_vm1, %v4681_v32, 0.0  ;;  %v5728_v9 = vsel %vm5007_vm1, %v4843_v38, 0.0  ;;  %v5826_v46 = vadd.f32 %v5825_v10, %v5824_v42  ;;  %v4893_v33 = vld [vmem:[%s7824_s26 + $0xc70] sm:$0xff]  ;;  %v4894_v17 = vld [vmem:[%s7824_s26 + $0xc78] sm:$0xff] }
 0x1b1   : > { %v5110_v43 = vadd.f32 %v8103_v3, %v5108_v18  ;;  %v5608_v52 = vadd.f32 %v5607_v63, %v5606_v37  ;;  %v5727_v26 = vadd.f32 %v5726_v48, %v5725_v57  ;;  %v5829_v60 = vsel %vm5007_vm1, %v4891_v53, 0.0  ;;  %v4727_v63 = vld [vmem:[%s7824_s26 + $0x740] sm:$0xff] }
 0x1b2   : > { %v5477_v1 = vadd.f32 %v5476_v59, %v5475_v27  ;;  %v5609_v44 = vsel %vm5007_vm1, %v4786_v24, 0.0  ;;  %v5730_v40 = vsel %vm5007_vm1, %v4844_v62, 0.0  ;;  %v5828_v51 = vadd.f32 %v5827_v7, %v5826_v46  ;;  %v4895_v48 = vld [vmem:[%s7824_s26 + $0xc80] sm:$0xff]  ;;  %v4848_v59 = vld [vmem:[%s7824_s26 + $0xb08] sm:$0xff] }
 0x1b3   : > { %v5229_v3 = vadd.f32 %v8278_v36, %v5227_v28  ;;  %v5478_v23 = vsel %vm5007_vm1, %v4723_v47, 0.0  ;;  %v5729_v4 = vadd.f32 %v5728_v9, %v5727_v26  ;;  %v5831_v16 = vsel %vm5007_vm1, %v4892_v19, 0.0  ;;  %v4788_v28 = vld [vmem:[%s7824_s26 + $0x928] sm:$0xff]  ;;  %v4729_v9 = vld [vmem:[%s7824_s26 + $0x750] sm:$0xff] }
 0x1b4   : > { %v5348_v32 = vadd.f32 %v8474_v34, %v5346_v30  ;;  %v5480_v38 = vsel %vm5007_vm1, %v4724_v29, 0.0  ;;  %v5732_v18 = vsel %vm5007_vm1, %v4845_v12, 0.0  ;;  %v5830_v37 = vadd.f32 %v5829_v60, %v5828_v51  ;;  %v4728_v30 = vld [vmem:[%s7824_s26 + $0x748] sm:$0xff] }
 0x1b5   : > { %v5482_v36 = vsel %vm5007_vm1, %v4725_v8, 0.0  ;;  %v5610_v10 = vadd.f32 %v5609_v44, %v5608_v52  ;;  %v5731_v53 = vadd.f32 %v5730_v40, %v5729_v4  ;;  %v5833_v27 = vsel %vm5007_vm1, %v4893_v33, 0.0  ;;  %v4896_v46 = vld [vmem:[%s7824_s26 + $0xc88] sm:$0xff]  ;;  %v4849_v52 = vld [vmem:[%s7824_s26 + $0xb10] sm:$0xff] }
 0x1b6   : > { %v5479_v42 = vadd.f32 %v5478_v23, %v5477_v1  ;;  %v5611_v34 = vsel %vm5007_vm1, %v4787_v22, 0.0  ;;  %v5734_v24 = vsel %vm5007_vm1, %v4846_v50, 0.0  ;;  %v5832_v62 = vadd.f32 %v5831_v16, %v5830_v37  ;;  %v4789_v1 = vld [vmem:[%s7824_s26 + $0x930] sm:$0xff]  ;;  %v4850_v22 = vld [vmem:[%s7824_s26 + $0xb18] sm:$0xff]  ;;  %v4943_v50 = vld [vmem:[%s7824_s26 + $0xe00] sm:$0xff] }
 0x1b7   : > { %v5112_v57 = vadd.f32 %v8112_v15, %v5110_v43  ;;  %v8707_v7 = vsel %vm5007_vm1, %v4726_v5, 0.0  ;;  %v5733_v47 = vadd.f32 %v5732_v18, %v5731_v53  ;;  %v5835_v19 = vsel %vm5007_vm1, %v4894_v17, 0.0  ;;  %v4790_v5 = vld [vmem:[%s7824_s26 + $0x938] sm:$0xff]  ;;  %v4945_v53 = vld [vmem:[%s7824_s26 + $0xe10] sm:$0xff] }
 0x1b8   : > { %v8714_v29 = vadd.f32 %v8286_v49, %v5229_v3  ;;  %v5350_v12 = vadd.f32 %v8483_v56, %v5348_v32  ;;  %v5736_v15 = vsel %vm5007_vm1, %v4847_v0, 0.0  ;;  %v5834_v43 = vadd.f32 %v5833_v27, %v5832_v62  ;;  %v4897_v49 = vld [vmem:[%s7824_s26 + $0xc90] sm:$0xff]  ;;  %v4898_v17 = vld [vmem:[%s7824_s26 + $0xc98] sm:$0xff]  ;;  %v4944_v32 = vld [vmem:[%s7824_s26 + $0xe08] sm:$0xff] }
 0x1b9   : > { %v8720_v26 = vsel %vm5007_vm1, %v4727_v63, 0.0  ;;  %v5612_v60 = vadd.f32 %v5611_v34, %v5610_v10  ;;  %v5735_v8 = vadd.f32 %v5734_v24, %v5733_v47  ;;  %v5837_v33 = vsel %vm5007_vm1, %v4895_v48, 0.0  ;;  %v4851_v10 = vld [vmem:[%s7824_s26 + $0xb20] sm:$0xff]  ;;  %v4946_v24 = vld [vmem:[%s7824_s26 + $0xe18] sm:$0xff] }
 0x1ba   : > { %v5481_v44 = vadd.f32 %v5480_v38, %v5479_v42  ;;  %v5613_v40 = vsel %vm5007_vm1, %v4788_v28, 0.0  ;;  %v5738_v56 = vsel %vm5007_vm1, %v4848_v59, 0.0  ;;  %v5836_v51 = vadd.f32 %v5835_v19, %v5834_v43  ;;  %v4899_v34 = vld [vmem:[%s7824_s26 + $0xca0] sm:$0xff]  ;;  %v4852_v59 = vld [vmem:[%s7824_s26 + $0xb28] sm:$0xff] }
 0x1bb   : > { %v8730_v3 = vsel %vm5007_vm1, %v4728_v30, 0.0  ;;  %v8733_v23 = vsel %vm5007_vm1, %v4729_v9, 0.0  ;;  %v5737_v4 = vadd.f32 %v5736_v15, %v5735_v8  ;;  %v5839_v16 = vsel %vm5007_vm1, %v4896_v46, 0.0  ;;  %v4900_v9 = vld [vmem:[%s7824_s26 + $0xca8] sm:$0xff]  ;;  %v4947_v46 = vld [vmem:[%s7824_s26 + $0xe20] sm:$0xff] }
 0x1bc   : > { %v8740_v38 = vadd.f32 %v8118_v20, %v5112_v57  ;;  %v5352_v18 = vadd.f32 %v8489_v55, %v5350_v12  ;;  %v5740_v37 = vsel %vm5007_vm1, %v4849_v52, 0.0  ;;  %v5838_v0 = vadd.f32 %v5837_v33, %v5836_v51  ;;  %v4791_v52 = vld [vmem:[%s7824_s26 + $0x940] sm:$0xff] }
 0x1bd   : > { %v5614_v27 = vadd.f32 %v5613_v40, %v5612_v60  ;;  %v5615_v63 = vsel %vm5007_vm1, %v4789_v1, 0.0  ;;  %v5739_v48 = vadd.f32 %v5738_v56, %v5737_v4  ;;  %v5841_v42 = vsel %vm5007_vm1, %v4897_v49, 0.0  ;;  %v4853_v60 = vld [vmem:[%s7824_s26 + $0xb30] sm:$0xff]  ;;  %v4948_v40 = vld [vmem:[%s7824_s26 + $0xe28] sm:$0xff]  ;;  %v4854_v4 = vld [vmem:[%s7824_s26 + $0xb38] sm:$0xff] }
 0x1be   : > { %v5483_v20 = vadd.f32 %v5482_v36, %v5481_v44  ;;  %v5742_v55 = vsel %vm5007_vm1, %v4850_v22, 0.0  ;;  %v5840_v62 = vadd.f32 %v5839_v16, %v5838_v0  ;;  %v5939_v28 = vsel %vm5007_vm1, %v4943_v50, 0.0  ;;  %v4901_v44 = vld [vmem:[%s7824_s26 + $0xcb0] sm:$0xff] }
 0x1bf   : > { %v5617_v57 = vsel %vm5007_vm1, %v4790_v5, 0.0  ;;  %v5741_v47 = vadd.f32 %v5740_v37, %v5739_v48  ;;  %v5843_v19 = vsel %vm5007_vm1, %v4898_v17, 0.0  ;;  %v5940_v30 = vsel %vm5007_vm1, %v4944_v32, 0.0  ;;  %v4902_v37 = vld [vmem:[%s7824_s26 + $0xcb8] sm:$0xff]  ;;  %v4949_v0 = vld [vmem:[%s7824_s26 + $0xe30] sm:$0xff]  ;;  %v4855_v48 = vld [vmem:[%s7824_s26 + $0xb40] sm:$0xff] }
 0x1c0   : > { %v5744_v36 = vsel %vm5007_vm1, %v4851_v10, 0.0  ;;  %v5842_v12 = vadd.f32 %v5841_v42, %v5840_v62  ;;  %v5941_v15 = vadd.f32 %v5940_v30, %v5939_v28  ;;  %v5942_v43 = vsel %vm5007_vm1, %v4945_v53, 0.0 }
 0x1c1   : > { %v5616_v8 = vadd.f32 %v5615_v63, %v5614_v27  ;;  %v5743_v33 = vadd.f32 %v5742_v55, %v5741_v47  ;;  %v5845_v1 = vsel %vm5007_vm1, %v4899_v34, 0.0  ;;  %v5944_v49 = vsel %vm5007_vm1, %v4946_v24, 0.0  ;;  %v4730_v63 = vld [vmem:[%s7824_s26 + $0x758] sm:$0xff]  ;;  %v4903_v24 = vld [vmem:[%s7824_s26 + $0xcc0] sm:$0xff]  ;;  %v4792_v47 = vld [vmem:[%s7824_s26 + $0x948] sm:$0xff] }
 0x1c2   : > { %v5485_v56 = vadd.f32 %v8707_v7, %v5483_v20  ;;  %v5746_v51 = vsel %vm5007_vm1, %v4852_v59, 0.0  ;;  %v5844_v22 = vadd.f32 %v5843_v19, %v5842_v12  ;;  %v5943_v50 = vadd.f32 %v5942_v43, %v5941_v15  ;;  %v4950_v20 = vld [vmem:[%s7824_s26 + $0xe38] sm:$0xff] }
 0x1c3   : > { %v5354_v16 = vadd.f32 %v8492_v11, %v5352_v18  ;;  %v5745_v5 = vadd.f32 %v5744_v36, %v5743_v33  ;;  %v5847_v17 = vsel %vm5007_vm1, %v4900_v9, 0.0  ;;  %v5946_v32 = vsel %vm5007_vm1, %v4947_v46, 0.0  ;;  %v4904_v46 = vld [vmem:[%s7824_s26 + $0xcc8] sm:$0xff]  ;;  %v4951_v36 = vld [vmem:[%s7824_s26 + $0xe40] sm:$0xff] }
 0x1c4   : > { %v5619_v10 = vsel %vm5007_vm1, %v4791_v52, 0.0  ;;  %v5748_v7 = vsel %vm5007_vm1, %v4853_v60, 0.0  ;;  %v5846_v53 = vadd.f32 %v5845_v1, %v5844_v22  ;;  %v5945_v27 = vadd.f32 %v5944_v49, %v5943_v50  ;;  %v4731_v52 = vld [vmem:[%s7824_s26 + $0x760] sm:$0xff]  ;;  %v4856_v1 = vld [vmem:[%s7824_s26 + $0xb48] sm:$0xff]  ;;  %v4905_v49 = vld [vmem:[%s7824_s26 + $0xcd0] sm:$0xff] }
 0x1c5   : > { %v5618_v11 = vadd.f32 %v5617_v57, %v5616_v8  ;;  %v5747_v18 = vadd.f32 %v5746_v51, %v5745_v5  ;;  %v5849_v42 = vsel %vm5007_vm1, %v4901_v44, 0.0  ;;  %v5948_v34 = vsel %vm5007_vm1, %v4948_v40, 0.0  ;;  %v4952_v44 = vld [vmem:[%s7824_s26 + $0xe48] sm:$0xff]  ;;  %v4793_v50 = vld [vmem:[%s7824_s26 + $0x950] sm:$0xff] }
 0x1c6   : > { %v5487_v55 = vadd.f32 %v8720_v26, %v5485_v56  ;;  %v5750_v62 = vsel %vm5007_vm1, %v4854_v4, 0.0  ;;  %v5848_v28 = vadd.f32 %v5847_v17, %v5846_v53  ;;  %v5947_v59 = vadd.f32 %v5946_v32, %v5945_v27  ;;  %v4906_v32 = vld [vmem:[%s7824_s26 + $0xcd8] sm:$0xff] }
 0x1c7   : > { %v5356_v19 = vadd.f32 %v8500_v39, %v5354_v16  ;;  %v5749_v57 = vadd.f32 %v5748_v7, %v5747_v18  ;;  %v5851_v30 = vsel %vm5007_vm1, %v4902_v37, 0.0  ;;  %v5950_v9 = vsel %vm5007_vm1, %v4949_v0, 0.0  ;;  %v4953_v37 = vld [vmem:[%s7824_s26 + $0xe50] sm:$0xff]  ;;  %v4954_v18 = vld [vmem:[%s7824_s26 + $0xe58] sm:$0xff] }
 0x1c8   : > { %v5492_v12 = vsel %vm5007_vm1, %v4730_v63, 0.0  ;;  %v5752_v26 = vsel %vm5007_vm1, %v4855_v48, 0.0  ;;  %v5850_v15 = vadd.f32 %v5849_v42, %v5848_v28  ;;  %v5949_v43 = vadd.f32 %v5948_v34, %v5947_v59  ;;  %v4857_v48 = vld [vmem:[%s7824_s26 + $0xb50] sm:$0xff] }
 0x1c9   : > { %v5620_v60 = vadd.f32 %v5619_v10, %v5618_v11  ;;  %v5751_v39 = vadd.f32 %v5750_v62, %v5749_v57  ;;  %v5853_v8 = vsel %vm5007_vm1, %v4903_v24, 0.0  ;;  %v5952_v33 = vsel %vm5007_vm1, %v4950_v20, 0.0  ;;  %v4907_v11 = vld [vmem:[%s7824_s26 + $0xce0] sm:$0xff] }
 0x1ca   : > { %v5489_v40 = vadd.f32 %v8730_v3, %v5487_v55  ;;  %v5621_v56 = vsel %vm5007_vm1, %v4792_v47, 0.0  ;;  %v5852_v51 = vadd.f32 %v5851_v30, %v5850_v15  ;;  %v5951_v22 = vadd.f32 %v5950_v9, %v5949_v43  ;;  %v4732_v3 = vld [vmem:[%s7824_s26 + $0x768] sm:$0xff]  ;;  %v4794_v55 = vld [vmem:[%s7824_s26 + $0x958] sm:$0xff]  ;;  %v4955_v57 = vld [vmem:[%s7824_s26 + $0xe60] sm:$0xff] }
 0x1cb   : > { %v8803_v4 = vadd.f32 %v8292_v14, %v8714_v29  ;;  %v5358_v16 = vadd.f32 %v8504_v61, %v5356_v19  ;;  %v5855_v5 = vsel %vm5007_vm1, %v4904_v46, 0.0  ;;  %v5954_v17 = vsel %vm5007_vm1, %v4951_v36, 0.0  ;;  %v4733_v14 = vld [vmem:[%s7824_s26 + $0x770] sm:$0xff]  ;;  %v4908_v19 = vld [vmem:[%s7824_s26 + $0xce8] sm:$0xff]  ;;  %v4734_v36 = vld [vmem:[%s7824_s26 + $0x778] sm:$0xff] }
 0x1cc   : > { %v5494_v0 = vsel %vm5007_vm1, %v4731_v52, 0.0  ;;  %v5753_v10 = vadd.f32 %v5752_v26, %v5751_v39  ;;  %v5854_v7 = vadd.f32 %v5853_v8, %v5852_v51  ;;  %v5953_v53 = vadd.f32 %v5952_v33, %v5951_v22  ;;  %v4858_v52 = vld [vmem:[%s7824_s26 + $0xb58] sm:$0xff]  ;;  %v4956_v39 = vld [vmem:[%s7824_s26 + $0xe68] sm:$0xff] }
 0x1cd   : > { %v5622_v29 = vadd.f32 %v5621_v56, %v5620_v60  ;;  %v5754_v61 = vsel %vm5007_vm1, %v4856_v1, 0.0  ;;  %v5857_v27 = vsel %vm5007_vm1, %v4905_v49, 0.0  ;;  %v5956_v63 = vsel %vm5007_vm1, %v4952_v44, 0.0  ;;  %v4909_v60 = vld [vmem:[%s7824_s26 + $0xcf0] sm:$0xff]  ;;  %v4795_v44 = vld [vmem:[%s7824_s26 + $0x960] sm:$0xff]  ;;  %v9435_v56 = vld [vmem:[#allocation33_spill] sm:$0xff] }
 0x1ce   : > { %v5491_v42 = vadd.f32 %v8733_v23, %v5489_v40  ;;  %v5623_v34 = vsel %vm5007_vm1, %v4793_v50, 0.0  ;;  %v5856_v24 = vadd.f32 %v5855_v5, %v5854_v7  ;;  %v5955_v20 = vadd.f32 %v5954_v17, %v5953_v53  ;;  %v4859_v53 = vld [vmem:[%s7824_s26 + $0xb60] sm:$0xff] }
 0x1cf   : > { %v5360_v62 = vadd.f32 %v8513_v35, %v5358_v16  ;;  %v8824_v28 = vsel %vm5007_vm1, %v4732_v3, 0.0  ;;  %v5859_v59 = vsel %vm5007_vm1, %v4906_v32, 0.0  ;;  %v5958_v47 = vsel %vm5007_vm1, %v4953_v37, 0.0  ;;  %v4910_v16 = vld [vmem:[%s7824_s26 + $0xcf8] sm:$0xff]  ;;  %v4735_v37 = vld [vmem:[%s7824_s26 + $0x780] sm:$0xff] }
 0x1d0   : > { %v8831_v23 = vsel %vm5007_vm1, %v4733_v14, 0.0  ;;  %v5755_v30 = vadd.f32 %v5754_v61, %v5753_v10  ;;  %v5858_v9 = vadd.f32 %v5857_v27, %v5856_v24  ;;  %v5957_v46 = vadd.f32 %v5956_v63, %v5955_v20  ;;  %v4911_v14 = vld [vmem:[%s7824_s26 + $0xd00] sm:$0xff] }
 0x1d1   : > { %v5624_v35 = vadd.f32 %v5623_v34, %v5622_v29  ;;  %v5756_v26 = vsel %vm5007_vm1, %v4857_v48, 0.0  ;;  %v5861_v15 = vsel %vm5007_vm1, %v4907_v11, 0.0  ;;  %v5960_v43 = vsel %vm5007_vm1, %v4954_v18, 0.0  ;;  %v4958_v29 = vld [vmem:[%s7824_s26 + $0xe78] sm:$0xff]  ;;  %v4796_v11 = vld [vmem:[%s7824_s26 + $0x968] sm:$0xff]  ;;  %v9436_v18 = vld [vmem:[#allocation16_spill] sm:$0xff] }
 0x1d2   : > { %v5493_v8 = vadd.f32 %v5492_v12, %v5491_v42  ;;  %v5625_v33 = vsel %vm5007_vm1, %v4794_v55, 0.0  ;;  %v5860_v1 = vadd.f32 %v5859_v59, %v5858_v9  ;;  %v5959_v49 = vadd.f32 %v5958_v47, %v5957_v46  ;;  %v4957_v12 = vld [vmem:[%s7824_s26 + $0xe70] sm:$0xff]  ;;  %v9437_v34 = vld [vmem:[#allocation34_spill] sm:$0xff] }
 0x1d3   : > { %v8844_v40 = vadd.f32 %v8121_v21, %v8740_v38  ;;  %v5362_v51 = vadd.f32 %v9435_v56, %v5360_v62  ;;  %v5863_v22 = vsel %vm5007_vm1, %v4908_v19, 0.0  ;;  %v5962_v50 = vsel %vm5007_vm1, %v4955_v57, 0.0  ;;  %v4736_v62 = vld [vmem:[%s7824_s26 + $0x788] sm:$0xff]  ;;  %v4959_v59 = vld [vmem:[%s7824_s26 + $0xe80] sm:$0xff] }
 0x1d4   : > { %v8852_v5 = vsel %vm5007_vm1, %v4734_v36, 0.0  ;;  %v5757_v17 = vadd.f32 %v5756_v26, %v5755_v30  ;;  %v5862_v3 = vadd.f32 %v5861_v15, %v5860_v1  ;;  %v5961_v32 = vadd.f32 %v5960_v43, %v5959_v49  ;;  %v4860_v26 = vld [vmem:[%s7824_s26 + $0xb68] sm:$0xff]  ;;  %v4913_v15 = vld [vmem:[%s7824_s26 + $0xd10] sm:$0xff] }
 0x1d5   : > { %v5626_v21 = vadd.f32 %v5625_v33, %v5624_v35  ;;  %v5758_v38 = vsel %vm5007_vm1, %v4858_v52, 0.0  ;;  %v5865_v10 = vsel %vm5007_vm1, %v4909_v60, 0.0  ;;  %v5964_v7 = vsel %vm5007_vm1, %v4956_v39, 0.0  ;;  %v4960_v43 = vld [vmem:[%s7824_s26 + $0xe88] sm:$0xff]  ;;  %v4797_v33 = vld [vmem:[%s7824_s26 + $0x970] sm:$0xff] }
 0x1d6   : > { %v5495_v61 = vadd.f32 %v5494_v0, %v5493_v8  ;;  %v5627_v27 = vsel %vm5007_vm1, %v4795_v44, 0.0  ;;  %v5864_v63 = vadd.f32 %v5863_v22, %v5862_v3  ;;  %v5963_v48 = vadd.f32 %v5962_v50, %v5961_v32  ;;  %v4912_v0 = vld [vmem:[%s7824_s26 + $0xd08] sm:$0xff]  ;;  %v4961_v22 = vld [vmem:[%s7824_s26 + $0xe90] sm:$0xff] }
 0x1d7   : > { %v5235_v42 = vadd.f32 %v9436_v18, %v8803_v4  ;;  %v5364_v24 = vadd.f32 %v9437_v34, %v5362_v51  ;;  %v5867_v20 = vsel %vm5007_vm1, %v4910_v16, 0.0  ;;  %v5966_v55 = vsel %vm5007_vm1, %v4957_v12, 0.0  ;;  %v4737_v4 = vld [vmem:[%s7824_s26 + $0x790] sm:$0xff]  ;;  %v4914_v51 = vld [vmem:[%s7824_s26 + $0xd18] sm:$0xff]  ;;  %v4916_v18 = vld [vmem:[%s7824_s26 + $0xd28] sm:$0xff] }
 0x1d8   : > { %v8872_v47 = vsel %vm5007_vm1, %v4735_v37, 0.0  ;;  %v5759_v19 = vadd.f32 %v5758_v38, %v5757_v17  ;;  %v5866_v57 = vadd.f32 %v5865_v10, %v5864_v63  ;;  %v5965_v30 = vadd.f32 %v5964_v7, %v5963_v48  ;;  %v4861_v37 = vld [vmem:[%s7824_s26 + $0xb70] sm:$0xff]  ;;  %v4962_v38 = vld [vmem:[%s7824_s26 + $0xe98] sm:$0xff]  ;;  %v4963_v34 = vld [vmem:[%s7824_s26 + $0xea0] sm:$0xff] }
 0x1d9   : > { %v5628_v9 = vadd.f32 %v5627_v27, %v5626_v21  ;;  %v5760_v46 = vsel %vm5007_vm1, %v4859_v53, 0.0  ;;  %v5869_v36 = vsel %vm5007_vm1, %v4911_v14, 0.0  ;;  %v5968_v35 = vsel %vm5007_vm1, %v4958_v29, 0.0  ;;  %v4915_v21 = vld [vmem:[%s7824_s26 + $0xd20] sm:$0xff]  ;;  %v4798_v29 = vld [vmem:[%s7824_s26 + $0x978] sm:$0xff] }
 0x1da   : > { %v5497_v52 = vadd.f32 %v8824_v28, %v5495_v61  ;;  %v5629_v60 = vsel %vm5007_vm1, %v4796_v11, 0.0  ;;  %v5868_v39 = vadd.f32 %v5867_v20, %v5866_v57  ;;  %v5967_v8 = vadd.f32 %v5966_v55, %v5965_v30  ;;  %v9438_v61 = vld [vmem:[#allocation17_spill] sm:$0xff]  ;;  %v4917_v30 = vld [vmem:[%s7824_s26 + $0xd30] sm:$0xff] }
 0x1db   : > { %v5366_v1 = vadd.f32 %v8531_v45, %v5364_v24  ;;  %v8886_v49 = vsel %vm5007_vm1, %v4736_v62, 0.0  ;;  %v5871_v44 = vsel %vm5007_vm1, %v4912_v0, 0.0  ;;  %v5970_v56 = vsel %vm5007_vm1, %v4959_v59, 0.0  ;;  %v4738_v0 = vld [vmem:[%s7824_s26 + $0x798] sm:$0xff] }
 0x1dc   : > { %v8893_v28 = vsel %vm5007_vm1, %v4737_v4, 0.0  ;;  %v5761_v50 = vadd.f32 %v5760_v46, %v5759_v19  ;;  %v5870_v16 = vadd.f32 %v5869_v36, %v5868_v39  ;;  %v5969_v12 = vadd.f32 %v5968_v35, %v5967_v8  ;;  %v4862_v57 = vld [vmem:[%s7824_s26 + $0xb78] sm:$0xff]  ;;  %v4964_v4 = vld [vmem:[%s7824_s26 + $0xea8] sm:$0xff]  ;;  %v4799_v35 = vld [vmem:[%s7824_s26 + $0x980] sm:$0xff] }
 0x1dd   : > { %v5630_v17 = vadd.f32 %v5629_v60, %v5628_v9  ;;  %v5762_v45 = vsel %vm5007_vm1, %v4860_v26, 0.0  ;;  %v5873_v3 = vsel %vm5007_vm1, %v4913_v15, 0.0  ;;  %v5972_v32 = vsel %vm5007_vm1, %v4960_v43, 0.0  ;;  %v9440_v26 = vld [vmem:[#allocation18_spill] sm:$0xff]  ;;  %v9441_v43 = vld [vmem:[#allocation35_spill] sm:$0xff]  ;;  %v4918_v8 = vld [vmem:[%s7824_s26 + $0xd38] sm:$0xff] }
 0x1de   : > { %v5499_v10 = vadd.f32 %v8831_v23, %v5497_v52  ;;  %v5631_v7 = vsel %vm5007_vm1, %v4797_v33, 0.0  ;;  %v5872_v53 = vadd.f32 %v5871_v44, %v5870_v16  ;;  %v5971_v14 = vadd.f32 %v5970_v56, %v5969_v12  ;;  %v9439_v23 = vld [vmem:[#allocation7_spill] sm:$0xff]  ;;  %v4965_v33 = vld [vmem:[%s7824_s26 + $0xeb0] sm:$0xff] }
 0x1df   : > { %v5237_v27 = vadd.f32 %v9438_v61, %v5235_v42  ;;  %v5368_v63 = vadd.f32 %v8535_v25, %v5366_v1  ;;  %v5875_v48 = vsel %vm5007_vm1, %v4914_v51, 0.0  ;;  %v5974_v11 = vsel %vm5007_vm1, %v4961_v22, 0.0  ;;  %v4739_v51 = vld [vmem:[%s7824_s26 + $0x7a0] sm:$0xff] }
 0x1e0   : > { %v8912_v24 = vadd.f32 %v9439_v23, %v8844_v40  ;;  %v5763_v20 = vadd.f32 %v5762_v45, %v5761_v50  ;;  %v5874_v55 = vadd.f32 %v5873_v3, %v5872_v53  ;;  %v5973_v62 = vadd.f32 %v5972_v32, %v5971_v14  ;;  %v4919_v45 = vld [vmem:[%s7824_s26 + $0xd40] sm:$0xff]  ;;  %v4966_v3 = vld [vmem:[%s7824_s26 + $0xeb8] sm:$0xff]  ;;  %v9443_v14 = vld [vmem:[#allocation36_spill] sm:$0xff] }
 0x1e1   : > { %v5632_v42 = vadd.f32 %v5631_v7, %v5630_v17  ;;  %v5764_v25 = vsel %vm5007_vm1, %v4861_v37, 0.0  ;;  %v5877_v59 = vsel %vm5007_vm1, %v4915_v21, 0.0  ;;  %v5976_v19 = vsel %vm5007_vm1, %v4962_v38, 0.0  ;;  %v4863_v17 = vld [vmem:[%s7824_s26 + $0xb80] sm:$0xff]  ;;  %v9442_v7 = vld [vmem:[#allocation19_spill] sm:$0xff] }
 0x1e2   : > { %v5501_v40 = vadd.f32 %v8852_v5, %v5499_v10  ;;  %v5633_v9 = vsel %vm5007_vm1, %v4798_v29, 0.0  ;;  %v5876_v46 = vadd.f32 %v5875_v48, %v5874_v55  ;;  %v5975_v36 = vadd.f32 %v5974_v11, %v5973_v62  ;;  %v4800_v10 = vld [vmem:[%s7824_s26 + $0x988] sm:$0xff]  ;;  %v4967_v48 = vld [vmem:[%s7824_s26 + $0xec0] sm:$0xff] }
 0x1e3   : > { %v5239_v15 = vadd.f32 %v9440_v26, %v5237_v27  ;;  %v5370_v52 = vadd.f32 %v9441_v43, %v5368_v63  ;;  %v5879_v60 = vsel %vm5007_vm1, %v4916_v18, 0.0  ;;  %v5978_v39 = vsel %vm5007_vm1, %v4963_v34, 0.0  ;;  %v4920_v63 = vld [vmem:[%s7824_s26 + $0xd48] sm:$0xff]  ;;  %v4922_v43 = vld [vmem:[%s7824_s26 + $0xd58] sm:$0xff] }
 0x1e4   : > { %v8931_v5 = vsel %vm5007_vm1, %v4738_v0, 0.0  ;;  %v5765_v1 = vadd.f32 %v5764_v25, %v5763_v20  ;;  %v5878_v44 = vadd.f32 %v5877_v59, %v5876_v46  ;;  %v5977_v56 = vadd.f32 %v5976_v19, %v5975_v36  ;;  %v4740_v23 = vld [vmem:[%s7824_s26 + $0x7a8] sm:$0xff]  ;;  %v4921_v25 = vld [vmem:[%s7824_s26 + $0xd50] sm:$0xff]  ;;  %v9445_v36 = vld [vmem:[#allocation37_spill] sm:$0xff] }
 0x1e5   : > { %v5634_v22 = vadd.f32 %v5633_v9, %v5632_v42  ;;  %v5766_v50 = vsel %vm5007_vm1, %v4862_v57, 0.0  ;;  %v5881_v16 = vsel %vm5007_vm1, %v4917_v30, 0.0  ;;  %v5980_v12 = vsel %vm5007_vm1, %v4964_v4, 0.0  ;;  %v4864_v42 = vld [vmem:[%s7824_s26 + $0xb88] sm:$0xff]  ;;  %v9444_v9 = vld [vmem:[#allocation20_spill] sm:$0xff] }
 0x1e6   : > { %v5503_v32 = vadd.f32 %v8872_v47, %v5501_v40  ;;  %v5635_v37 = vsel %vm5007_vm1, %v4799_v35, 0.0  ;;  %v5880_v21 = vadd.f32 %v5879_v60, %v5878_v44  ;;  %v5979_v38 = vadd.f32 %v5978_v39, %v5977_v56  ;;  %v4968_v59 = vld [vmem:[%s7824_s26 + $0xec8] sm:$0xff]  ;;  %v4801_v40 = vld [vmem:[%s7824_s26 + $0x990] sm:$0xff] }
 0x1e7   : > { %v5241_v53 = vadd.f32 %v9442_v7, %v5239_v15  ;;  %v5372_v29 = vadd.f32 %v9443_v14, %v5370_v52  ;;  %v5883_v61 = vsel %vm5007_vm1, %v4918_v8, 0.0  ;;  %v5982_v27 = vsel %vm5007_vm1, %v4965_v33, 0.0  ;;  %v4969_v52 = vld [vmem:[%s7824_s26 + $0xed0] sm:$0xff]  ;;  %v4971_v14 = vld [vmem:[%s7824_s26 + $0xee0] sm:$0xff] }
 0x1e8   : > { %v8950_v47 = vsel %vm5007_vm1, %v4739_v51, 0.0  ;;  %v5767_v11 = vadd.f32 %v5766_v50, %v5765_v1  ;;  %v5882_v18 = vadd.f32 %v5881_v16, %v5880_v21  ;;  %v5981_v34 = vadd.f32 %v5980_v12, %v5979_v38  ;;  %v4741_v33 = vld [vmem:[%s7824_s26 + $0x7b0] sm:$0xff]  ;;  %v4923_v50 = vld [vmem:[%s7824_s26 + $0xd60] sm:$0xff]  ;;  %v4970_v16 = vld [vmem:[%s7824_s26 + $0xed8] sm:$0xff] }
 0x1e9   : > { %v5636_v20 = vadd.f32 %v5635_v37, %v5634_v22  ;;  %v5768_v55 = vsel %vm5007_vm1, %v4863_v17, 0.0  ;;  %v5885_v62 = vsel %vm5007_vm1, %v4919_v45, 0.0  ;;  %v5984_v0 = vsel %vm5007_vm1, %v4966_v3, 0.0  ;;  %v4865_v22 = vld [vmem:[%s7824_s26 + $0xb90] sm:$0xff]  ;;  %v9446_v37 = vld [vmem:[#allocation21_spill] sm:$0xff] }
 0x1ea   : > { %v5505_v19 = vadd.f32 %v8886_v49, %v5503_v32  ;;  %v5637_v57 = vsel %vm5007_vm1, %v4800_v10, 0.0  ;;  %v5884_v30 = vadd.f32 %v5883_v61, %v5882_v18  ;;  %v5983_v4 = vadd.f32 %v5982_v27, %v5981_v34  ;;  %v4802_v32 = vld [vmem:[%s7824_s26 + $0x998] sm:$0xff]  ;;  %v4925_v34 = vld [vmem:[%s7824_s26 + $0xd70] sm:$0xff] }
 0x1eb   : > { %v5243_v46 = vadd.f32 %v9444_v9, %v5241_v53  ;;  %v5374_v35 = vadd.f32 %v9445_v36, %v5372_v29  ;;  %v5887_v26 = vsel %vm5007_vm1, %v4920_v63, 0.0  ;;  %v5986_v15 = vsel %vm5007_vm1, %v4967_v48, 0.0  ;;  %v4924_v53 = vld [vmem:[%s7824_s26 + $0xd68] sm:$0xff]  ;;  %v4866_v18 = vld [vmem:[%s7824_s26 + $0xb98] sm:$0xff] }
 0x1ec   : > { %v8969_v49 = vsel %vm5007_vm1, %v4740_v23, 0.0  ;;  %v5769_v60 = vadd.f32 %v5768_v55, %v5767_v11  ;;  %v5886_v39 = vadd.f32 %v5885_v62, %v5884_v30  ;;  %v5985_v8 = vadd.f32 %v5984_v0, %v5983_v4  ;;  %v4972_v23 = vld [vmem:[%s7824_s26 + $0xee8] sm:$0xff]  ;;  %v4926_v4 = vld [vmem:[%s7824_s26 + $0xd78] sm:$0xff] }
 0x1ed   : > { %v5638_v1 = vadd.f32 %v5637_v57, %v5636_v20  ;;  %v5770_v44 = vsel %vm5007_vm1, %v4864_v42, 0.0  ;;  %v5889_v56 = vsel %vm5007_vm1, %v4921_v25, 0.0  ;;  %v5988_v51 = vsel %vm5007_vm1, %v4968_v59, 0.0  ;;  %v4803_v42 = vld [vmem:[%s7824_s26 + $0x9a0] sm:$0xff] }
 0x1ee   : > { %v5507_v12 = vadd.f32 %v8893_v28, %v5505_v19  ;;  %v5639_v17 = vsel %vm5007_vm1, %v4801_v40, 0.0  ;;  %v5888_v45 = vadd.f32 %v5887_v26, %v5886_v39  ;;  %v5987_v3 = vadd.f32 %v5986_v15, %v5985_v8  ;;  %v9447_v25 = vld [vmem:[#allocation22_spill] sm:$0xff]  ;;  %v4973_v40 = vld [vmem:[%s7824_s26 + $0xef0] sm:$0xff]  ;;  %v4742_v26 = vld [vmem:[%s7824_s26 + $0x7b8] sm:$0xff] }
 0x1ef   : > { %v5245_v21 = vadd.f32 %v9446_v37, %v5243_v46  ;;  %v5376_v38 = vadd.f32 %v8562_v2, %v5374_v35  ;;  %v5891_v10 = vsel %vm5007_vm1, %v4922_v43, 0.0  ;;  %v5990_v7 = vsel %vm5007_vm1, %v4969_v52, 0.0  ;;  %v4927_v39 = vld [vmem:[%s7824_s26 + $0xd80] sm:$0xff]  ;;  %v4974_v8 = vld [vmem:[%s7824_s26 + $0xef8] sm:$0xff] }
 0x1f0   : > { %v8988_v28 = vsel %vm5007_vm1, %v4741_v33, 0.0  ;;  %v5771_v29 = vadd.f32 %v5770_v44, %v5769_v60  ;;  %v5890_v61 = vadd.f32 %v5889_v56, %v5888_v45  ;;  %v5989_v27 = vadd.f32 %v5988_v51, %v5987_v3  ;;  %v4867_v60 = vld [vmem:[%s7824_s26 + $0xba0] sm:$0xff]  ;;  %v4804_v56 = vld [vmem:[%s7824_s26 + $0x9a8] sm:$0xff] }
 0x1f1   : > { %v5640_v63 = vadd.f32 %v5639_v17, %v5638_v1  ;;  %v5772_v48 = vsel %vm5007_vm1, %v4865_v22, 0.0  ;;  %v5893_v2 = vsel %vm5007_vm1, %v4923_v50, 0.0  ;;  %v5992_v11 = vsel %vm5007_vm1, %v4970_v16, 0.0  ;;  %v9449_v51 = vld [vmem:[#allocation23_spill] sm:$0xff]  ;;  %v9450_v50 = vld [vmem:[#allocation38_spill] sm:$0xff] }
 0x1f2   : > { %v5509_v20 = vadd.f32 %v8931_v5, %v5507_v12  ;;  %v5641_v55 = vsel %vm5007_vm1, %v4802_v32, 0.0  ;;  %v5892_v62 = vadd.f32 %v5891_v10, %v5890_v61  ;;  %v5991_v0 = vadd.f32 %v5990_v7, %v5989_v27  ;;  %v9448_v5 = vld [vmem:[#allocation8_spill] sm:$0xff]  ;;  %v4928_v45 = vld [vmem:[%s7824_s26 + $0xd88] sm:$0xff]  ;;  %v4975_v3 = vld [vmem:[%s7824_s26 + $0xf00] sm:$0xff] }
 0x1f3   : > { %v5247_v59 = vadd.f32 %v9447_v25, %v5245_v21  ;;  %v5378_v19 = vadd.f32 %v8566_v54, %v5376_v38  ;;  %v5895_v57 = vsel %vm5007_vm1, %v4924_v53, 0.0  ;;  %v5994_v30 = vsel %vm5007_vm1, %v4971_v14, 0.0  ;;  %v4743_v38 = vld [vmem:[%s7824_s26 + $0x7c0] sm:$0xff]  ;;  %v4929_v61 = vld [vmem:[%s7824_s26 + $0xd90] sm:$0xff]  ;;  %v4976_v27 = vld [vmem:[%s7824_s26 + $0xf08] sm:$0xff] }
 0x1f4   : > { %v9007_v9 = vadd.f32 %v9448_v5, %v8912_v24  ;;  %v5773_v46 = vadd.f32 %v5772_v48, %v5771_v29  ;;  %v5894_v36 = vadd.f32 %v5893_v2, %v5892_v62  ;;  %v5993_v35 = vadd.f32 %v5992_v11, %v5991_v0  ;;  %v4868_v29 = vld [vmem:[%s7824_s26 + $0xba8] sm:$0xff]  ;;  %v4930_v0 = vld [vmem:[%s7824_s26 + $0xd98] sm:$0xff]  ;;  %v4931_v5 = vld [vmem:[%s7824_s26 + $0xda0] sm:$0xff] }
 0x1f5   : > { %v5642_v15 = vadd.f32 %v5641_v55, %v5640_v63  ;;  %v5774_v54 = vsel %vm5007_vm1, %v4866_v18, 0.0  ;;  %v5897_v43 = vsel %vm5007_vm1, %v4925_v34, 0.0  ;;  %v5996_v52 = vsel %vm5007_vm1, %v4972_v23, 0.0  ;;  %v4805_v18 = vld [vmem:[%s7824_s26 + $0x9b0] sm:$0xff] }
 0x1f6   : > { %v5511_v24 = vadd.f32 %v8950_v47, %v5509_v20  ;;  %v5643_v33 = vsel %vm5007_vm1, %v4803_v42, 0.0  ;;  %v5896_v1 = vadd.f32 %v5895_v57, %v5894_v36  ;;  %v5995_v44 = vadd.f32 %v5994_v30, %v5993_v35  ;;  %v9451_v34 = vld [vmem:[#allocation24_spill] sm:$0xff] }
 0x1f7   : > { %v5249_v22 = vadd.f32 %v9449_v51, %v5247_v59  ;;  %v5380_v16 = vadd.f32 %v9450_v50, %v5378_v19  ;;  %v5899_v12 = vsel %vm5007_vm1, %v4926_v4, 0.0  ;;  %v5998_v17 = vsel %vm5007_vm1, %v4973_v40, 0.0  ;;  %v4977_v42 = vld [vmem:[%s7824_s26 + $0xf10] sm:$0xff] }
 0x1f8   : > { %v5516_v47 = vsel %vm5007_vm1, %v4742_v26, 0.0  ;;  %v5775_v32 = vadd.f32 %v5774_v54, %v5773_v46  ;;  %v5898_v37 = vadd.f32 %v5897_v43, %v5896_v1  ;;  %v5997_v21 = vadd.f32 %v5996_v52, %v5995_v44  ;;  %v4869_v40 = vld [vmem:[%s7824_s26 + $0xbb0] sm:$0xff]  ;;  %v4978_v46 = vld [vmem:[%s7824_s26 + $0xf18] sm:$0xff] }
 0x1f9   : > { %v5644_v10 = vadd.f32 %v5643_v33, %v5642_v15  ;;  %v5776_v7 = vsel %vm5007_vm1, %v4867_v60, 0.0  ;;  %v5901_v53 = vsel %vm5007_vm1, %v4927_v39, 0.0  ;;  %v6000_v14 = vsel %vm5007_vm1, %v4974_v8, 0.0  ;;  %v4806_v54 = vld [vmem:[%s7824_s26 + $0x9b8] sm:$0xff]  ;;  %v4979_v33 = vld [vmem:[%s7824_s26 + $0xf20] sm:$0xff] }
 0x1fa   : > { %v5513_v63 = vadd.f32 %v8969_v49, %v5511_v24  ;;  %v5645_v48 = vsel %vm5007_vm1, %v4804_v56, 0.0  ;;  %v5900_v2 = vadd.f32 %v5899_v12, %v5898_v37  ;;  %v5999_v11 = vadd.f32 %v5998_v17, %v5997_v21  ;;  %v9452_v43 = vld [vmem:[#allocation25_spill] sm:$0xff]  ;;  %v4932_v24 = vld [vmem:[%s7824_s26 + $0xda8] sm:$0xff] }
 0x1fb   : > { %v5251_v23 = vadd.f32 %v9451_v34, %v5249_v22  ;;  %v5382_v20 = vadd.f32 %v8599_v41, %v5380_v16  ;;  %v5903_v55 = vsel %vm5007_vm1, %v4928_v45, 0.0  ;;  %v6002_v62 = vsel %vm5007_vm1, %v4975_v3, 0.0  ;;  %v4744_v22 = vld [vmem:[%s7824_s26 + $0x7c8] sm:$0xff]  ;;  %v4870_v17 = vld [vmem:[%s7824_s26 + $0xbb8] sm:$0xff]  ;;  %v4933_v45 = vld [vmem:[%s7824_s26 + $0xdb0] sm:$0xff] }
 0x1fc   : > { %v5518_v49 = vsel %vm5007_vm1, %v4743_v38, 0.0  ;;  %v5777_v25 = vadd.f32 %v5776_v7, %v5775_v32  ;;  %v5902_v59 = vadd.f32 %v5901_v53, %v5900_v2  ;;  %v6001_v19 = vadd.f32 %v6000_v14, %v5999_v11  ;;  %v4980_v3 = vld [vmem:[%s7824_s26 + $0xf28] sm:$0xff]  ;;  %v4807_v38 = vld [vmem:[%s7824_s26 + $0x9c0] sm:$0xff]  ;;  %v4934_v2 = vld [vmem:[%s7824_s26 + $0xdb8] sm:$0xff] }
 0x1fd   : > { %v5646_v57 = vadd.f32 %v5645_v48, %v5644_v10  ;;  %v5778_v30 = vsel %vm5007_vm1, %v4868_v29, 0.0  ;;  %v5905_v4 = vsel %vm5007_vm1, %v4929_v61, 0.0  ;;  %v6004_v41 = vsel %vm5007_vm1, %v4976_v27, 0.0  ;;  %v9454_v10 = vld [vmem:[#allocation26_spill] sm:$0xff]  ;;  %v4981_v61 = vld [vmem:[%s7824_s26 + $0xf30] sm:$0xff] }
 0x1fe   : > { %v5515_v36 = vadd.f32 %v8988_v28, %v5513_v63  ;;  %v5647_v35 = vsel %vm5007_vm1, %v4805_v18, 0.0  ;;  %v5904_v26 = vadd.f32 %v5903_v55, %v5902_v59  ;;  %v6003_v15 = vadd.f32 %v6002_v62, %v6001_v19  ;;  %v9453_v28 = vld [vmem:[#allocation9_spill] sm:$0xff]  ;;  %v4745_v59 = vld [vmem:[%s7824_s26 + $0x7d0] sm:$0xff]  ;;  %v4808_v19 = vld [vmem:[%s7824_s26 + $0x9c8] sm:$0xff] }
 0x1ff   : > { %v5253_v52 = vadd.f32 %v9452_v43, %v5251_v23  ;;  %v5384_v60 = vadd.f32 %v8618_v6, %v5382_v20  ;;  %v5907_v39 = vsel %vm5007_vm1, %v4930_v0, 0.0  ;;  %v6006_v8 = vsel %vm5007_vm1, %v4977_v42, 0.0  ;;  %v4682_v23 = vld [vmem:[%s7824_s26 + $0x5d8] sm:$0xff]  ;;  %v4871_v20 = vld [vmem:[%s7824_s26 + $0xbc0] sm:$0xff] }
 0x200   : > { %v5122_v1 = vadd.f32 %v9453_v28, %v9007_v9  ;;  %v5779_v44 = vadd.f32 %v5778_v30, %v5777_v25  ;;  %v5906_v56 = vadd.f32 %v5905_v4, %v5904_v26  ;;  %v6005_v51 = vadd.f32 %v6004_v41, %v6003_v15  ;;  %v4982_v55 = vld [vmem:[%s7824_s26 + $0xf38] sm:$0xff]  ;;  %v9456_v4 = vld [vmem:[#allocation27_spill] sm:$0xff]  ;;  %v4935_v15 = vld [vmem:[%s7824_s26 + $0xdc0] sm:$0xff] }
 0x201   : > { %v5648_v50 = vadd.f32 %v5647_v35, %v5646_v57  ;;  %v5780_v16 = vsel %vm5007_vm1, %v4869_v40, 0.0  ;;  %v5909_v6 = vsel %vm5007_vm1, %v4931_v5, 0.0  ;;  %v6008_v12 = vsel %vm5007_vm1, %v4978_v46, 0.0  ;;  %v9455_v57 = vld [vmem:[#allocation10_spill] sm:$0xff] }
 0x202   : > { %v5517_v32 = vadd.f32 %v5516_v47, %v5515_v36  ;;  %v5649_v9 = vsel %vm5007_vm1, %v4806_v54, 0.0  ;;  %v5908_v37 = vadd.f32 %v5907_v39, %v5906_v56  ;;  %v6007_v21 = vadd.f32 %v6006_v8, %v6005_v51  ;;  %v4983_v46 = vld [vmem:[%s7824_s26 + $0xf40] sm:$0xff]  ;;  %v4872_v39 = vld [vmem:[%s7824_s26 + $0xbc8] sm:$0xff]  ;;  %v4809_v56 = vld [vmem:[%s7824_s26 + $0x9d0] sm:$0xff] }
 0x203   : > { %v5255_v7 = vadd.f32 %v9454_v10, %v5253_v52  ;;  %v5386_v53 = vadd.f32 %v8637_v13, %v5384_v60  ;;  %v5911_v14 = vsel %vm5007_vm1, %v4932_v24, 0.0  ;;  %v6010_v29 = vsel %vm5007_vm1, %v4979_v33, 0.0  ;;  %v4984_v8 = vld [vmem:[%s7824_s26 + $0xf48] sm:$0xff] }
 0x204   : > { %v5520_v27 = vsel %vm5007_vm1, %v4744_v22, 0.0  ;;  %v5781_v47 = vadd.f32 %v5780_v16, %v5779_v44  ;;  %v5910_v63 = vadd.f32 %v5909_v6, %v5908_v37  ;;  %v6009_v48 = vadd.f32 %v6008_v12, %v6007_v21  ;;  %v4746_v44 = vld [vmem:[%s7824_s26 + $0x7d8] sm:$0xff]  ;;  %v9457_v51 = vld [vmem:[#allocation11_spill] sm:$0xff]  ;;  %v4985_v12 = vld [vmem:[%s7824_s26 + $0xf50] sm:$0xff] }
 0x205   : > { %v5650_v11 = vadd.f32 %v5649_v9, %v5648_v50  ;;  %v5782_v18 = vsel %vm5007_vm1, %v4870_v17, 0.0  ;;  %v5913_v34 = vsel %vm5007_vm1, %v4933_v45, 0.0  ;;  %v6012_v13 = vsel %vm5007_vm1, %v4980_v3, 0.0  ;;  %v9458_v17 = vld [vmem:[#allocation28_spill] sm:$0xff]  ;;  %v4936_v37 = vld [vmem:[%s7824_s26 + $0xdc8] sm:$0xff] }
 0x206   : > { %v5519_v62 = vadd.f32 %v5518_v49, %v5517_v32  ;;  %v5651_v0 = vsel %vm5007_vm1, %v4807_v38, 0.0  ;;  %v5912_v42 = vadd.f32 %v5911_v14, %v5910_v63  ;;  %v6011_v25 = vadd.f32 %v6010_v29, %v6009_v48  ;;  %v4986_v14 = vld [vmem:[%s7824_s26 + $0xf58] sm:$0xff]  ;;  %v4747_v63 = vld [vmem:[%s7824_s26 + $0x7e0] sm:$0xff] }
 0x207   : > { %v5124_v30 = vadd.f32 %v9455_v57, %v5122_v1  ;;  %v5257_v41 = vadd.f32 %v9456_v4, %v5255_v7  ;;  %v5388_v40 = vadd.f32 %v8656_v31, %v5386_v53  ;;  %v6014_v5 = vsel %vm5007_vm1, %v4981_v61, 0.0  ;;  %v4683_v31 = vld [vmem:[%s7824_s26 + $0x5e0] sm:$0xff]  ;;  %v4684_v7 = vld [vmem:[%s7824_s26 + $0x5e8] sm:$0xff]  ;;  %v4873_v53 = vld [vmem:[%s7824_s26 + $0xbd0] sm:$0xff] }
 0x208   : > { %v5783_v36 = vadd.f32 %v5782_v18, %v5781_v47  ;;  %v5914_v49 = vadd.f32 %v5913_v34, %v5912_v42  ;;  %v5915_v35 = vsel %vm5007_vm1, %v4934_v2, 0.0  ;;  %v6013_v26 = vadd.f32 %v6012_v13, %v6011_v25  ;;  %v4810_v48 = vld [vmem:[%s7824_s26 + $0x9d8] sm:$0xff]  ;;  %v9459_v2 = vld [vmem:[#allocation12_spill] sm:$0xff] }
 0x209   : > { %v5391_v54 = vsel %vm5007_vm1, %v4682_v23, 0.0  ;;  %v5652_v43 = vadd.f32 %v5651_v0, %v5650_v11  ;;  %v5784_v52 = vsel %vm5007_vm1, %v4871_v20, 0.0  ;;  %v6016_v60 = vsel %vm5007_vm1, %v4982_v55, 0.0  ;;  %v4987_v23 = vld [vmem:[%s7824_s26 + $0xf60] sm:$0xff]  ;;  %v9460_v20 = vld [vmem:[#allocation29_spill] sm:$0xff]  ;;  %v4937_v25 = vld [vmem:[%s7824_s26 + $0xdd0] sm:$0xff] }
 0x20a   : > { %v5521_v24 = vadd.f32 %v5520_v27, %v5519_v62  ;;  %v5522_v33 = vsel %vm5007_vm1, %v4745_v59, 0.0  ;;  %v5653_v28 = vsel %vm5007_vm1, %v4808_v19, 0.0  ;;  %v6015_v1 = vadd.f32 %v6014_v5, %v6013_v26  ;;  %v4685_v4 = vld [vmem:[%s7824_s26 + $0x5f0] sm:$0xff]  ;;  %v4811_v26 = vld [vmem:[%s7824_s26 + $0x9e0] sm:$0xff] }
 0x20b   : > { %v5126_v22 = vadd.f32 %v9457_v51, %v5124_v30  ;;  %v5390_v50 = vadd.f32 %v8675_v58, %v5388_v40  ;;  %v5916_v16 = vadd.f32 %v5915_v35, %v5914_v49  ;;  %v6018_v6 = vsel %vm5007_vm1, %v4983_v46, 0.0  ;;  %v4988_v40 = vld [vmem:[%s7824_s26 + $0xf68] sm:$0xff] }
 0x20c   : > { %v5259_v45 = vadd.f32 %v9458_v17, %v5257_v41  ;;  %v5785_v3 = vadd.f32 %v5784_v52, %v5783_v36  ;;  %v5917_v32 = vsel %vm5007_vm1, %v4935_v15, 0.0  ;;  %v6017_v9 = vadd.f32 %v6016_v60, %v6015_v1  ;;  %v4874_v41 = vld [vmem:[%s7824_s26 + $0xbd8] sm:$0xff]  ;;  %v4748_v35 = vld [vmem:[%s7824_s26 + $0x7e8] sm:$0xff] }
 0x20d   : > { %v5393_v21 = vsel %vm5007_vm1, %v4683_v31, 0.0  ;;  %v5654_v38 = vadd.f32 %v5653_v28, %v5652_v43  ;;  %v5786_v10 = vsel %vm5007_vm1, %v4872_v39, 0.0  ;;  %v6020_v58 = vsel %vm5007_vm1, %v4984_v8, 0.0  ;;  %v9461_v15 = vld [vmem:[#allocation13_spill] sm:$0xff]  ;;  %v4989_v31 = vld [vmem:[%s7824_s26 + $0xf70] sm:$0xff]  ;;  %v9462_v39 = vld [vmem:[#allocation30_spill] sm:$0xff] }
 0x20e   : > { %v5523_v29 = vadd.f32 %v5522_v33, %v5521_v24  ;;  %v5524_v61 = vsel %vm5007_vm1, %v4746_v44, 0.0  ;;  %v5655_v27 = vsel %vm5007_vm1, %v4809_v56, 0.0  ;;  %v6019_v47 = vadd.f32 %v6018_v6, %v6017_v9  ;;  %v4938_v1 = vld [vmem:[%s7824_s26 + $0xdd8] sm:$0xff]  ;;  %v4812_v9 = vld [vmem:[%s7824_s26 + $0x9e8] sm:$0xff] }
 0x20f   : > { %v5128_v11 = vadd.f32 %v9459_v2, %v5126_v22  ;;  %v5392_v18 = vadd.f32 %v5391_v54, %v5390_v50  ;;  %v5918_v34 = vadd.f32 %v5917_v32, %v5916_v16  ;;  %v6022_v13 = vsel %vm5007_vm1, %v4985_v12, 0.0  ;;  %v4686_v50 = vld [vmem:[%s7824_s26 + $0x5f8] sm:$0xff]  ;;  %v4875_v16 = vld [vmem:[%s7824_s26 + $0xbe0] sm:$0xff]  ;;  %v4749_v32 = vld [vmem:[%s7824_s26 + $0x7f0] sm:$0xff] }
 0x210   : > { %v5261_v55 = vadd.f32 %v9460_v20, %v5259_v45  ;;  %v5787_v62 = vadd.f32 %v5786_v10, %v5785_v3  ;;  %v5919_v0 = vsel %vm5007_vm1, %v4936_v37, 0.0  ;;  %v6021_v42 = vadd.f32 %v6020_v58, %v6019_v47  ;;  %v4990_v6 = vld [vmem:[%s7824_s26 + $0xf78] sm:$0xff]  ;;  %v9463_v37 = vld [vmem:[#allocation14_spill] sm:$0xff] }
 0x211   : > { %v5395_v59 = vsel %vm5007_vm1, %v4684_v7, 0.0  ;;  %v5656_v19 = vadd.f32 %v5655_v27, %v5654_v38  ;;  %v5788_v57 = vsel %vm5007_vm1, %v4873_v53, 0.0  ;;  %v6024_v30 = vsel %vm5007_vm1, %v4986_v14, 0.0  ;;  %v4991_v7 = vld [vmem:[%s7824_s26 + $0xf80] sm:$0xff]  ;;  %v9464_v53 = vld [vmem:[#allocation31_spill] sm:$0xff] }
 0x212   : > { %v5525_v5 = vadd.f32 %v5524_v61, %v5523_v29  ;;  %v5526_v46 = vsel %vm5007_vm1, %v4747_v63, 0.0  ;;  %v5657_v36 = vsel %vm5007_vm1, %v4810_v48, 0.0  ;;  %v6023_v49 = vadd.f32 %v6022_v13, %v6021_v42  ;;  %v4939_v47 = vld [vmem:[%s7824_s26 + $0xde0] sm:$0xff]  ;;  %v9465_v42 = vld [vmem:[#allocation15_spill] sm:$0xff] }
 0x213   : > { %v5130_v54 = vadd.f32 %v9461_v15, %v5128_v11  ;;  %v5394_v43 = vadd.f32 %v5393_v21, %v5392_v18  ;;  %v5920_v52 = vadd.f32 %v5919_v0, %v5918_v34  ;;  %v6026_v60 = vsel %vm5007_vm1, %v4987_v23, 0.0  ;;  %v4876_v18 = vld [vmem:[%s7824_s26 + $0xbe8] sm:$0xff]  ;;  %v4813_v0 = vld [vmem:[%s7824_s26 + $0x9f0] sm:$0xff] }
 0x214   : > { %v5263_v8 = vadd.f32 %v9462_v39, %v5261_v55  ;;  %v5789_v24 = vadd.f32 %v5788_v57, %v5787_v62  ;;  %v5921_v33 = vsel %vm5007_vm1, %v4937_v25, 0.0  ;;  %v6025_v28 = vadd.f32 %v6024_v30, %v6023_v49  ;;  %v4992_v34 = vld [vmem:[%s7824_s26 + $0xf88] sm:$0xff]  ;;  %v4750_v62 = vld [vmem:[%s7824_s26 + $0x7f8] sm:$0xff]  ;;  %v4993_v30 = vld [vmem:[%s7824_s26 + $0xf90] sm:$0xff] }
 0x215   : > { %v5397_v44 = vsel %vm5007_vm1, %v4685_v4, 0.0  ;;  %v5658_v56 = vadd.f32 %v5657_v36, %v5656_v19  ;;  %v5790_v51 = vsel %vm5007_vm1, %v4874_v41, 0.0  ;;  %v6028_v22 = vsel %vm5007_vm1, %v4988_v40, 0.0  ;;  %v9466_v4 = vld [vmem:[#allocation32_spill] sm:$0xff]  ;;  %v4940_v36 = vld [vmem:[%s7824_s26 + $0xde8] sm:$0xff]  ;;  %v4814_v39 = vld [vmem:[%s7824_s26 + $0x9f8] sm:$0xff] }
 0x216   : > { %v5527_v12 = vadd.f32 %v5526_v46, %v5525_v5  ;;  %v5528_v17 = vsel %vm5007_vm1, %v4748_v35, 0.0  ;;  %v5659_v45 = vsel %vm5007_vm1, %v4811_v26, 0.0  ;;  %v6027_v3 = vadd.f32 %v6026_v60, %v6025_v28  ;;  %v4877_v15 = vld [vmem:[%s7824_s26 + $0xbf0] sm:$0xff] }
 0x217   : > { %v5132_v21 = vadd.f32 %v9463_v37, %v5130_v54  ;;  %v5396_v38 = vadd.f32 %v5395_v59, %v5394_v43  ;;  %v5922_v10 = vadd.f32 %v5921_v33, %v5920_v52  ;;  %v6030_v58 = vsel %vm5007_vm1, %v4989_v31, 0.0  ;;  %v4994_v54 = vld [vmem:[%s7824_s26 + $0xf98] sm:$0xff] }
 0x218   : > { %v5265_v14 = vadd.f32 %v9464_v53, %v5263_v8  ;;  %v5791_v29 = vadd.f32 %v5790_v51, %v5789_v24  ;;  %v5923_v61 = vsel %vm5007_vm1, %v4938_v1, 0.0  ;;  %v6029_v27 = vadd.f32 %v6028_v22, %v6027_v3  ;;  %v4995_v1 = vld [vmem:[%s7824_s26 + $0xfa0] sm:$0xff] }
 0x219   : > { %v5399_v63 = vsel %vm5007_vm1, %v4686_v50, 0.0  ;;  %v5660_v48 = vadd.f32 %v5659_v45, %v5658_v56  ;;  %v5792_v2 = vsel %vm5007_vm1, %v4875_v16, 0.0  ;;  %v6032_v11 = vsel %vm5007_vm1, %v4990_v6, 0.0  ;;  %v4941_v50 = vld [vmem:[%s7824_s26 + $0xdf0] sm:$0xff]  ;;  %v4996_v45 = vld [vmem:[%s7824_s26 + $0xfa8] sm:$0xff] }
 0x21a   : > { %v5529_v13 = vadd.f32 %v5528_v17, %v5527_v12  ;;  %v5530_v23 = vsel %vm5007_vm1, %v4749_v32, 0.0  ;;  %v5661_v20 = vsel %vm5007_vm1, %v4812_v9, 0.0  ;;  %v6031_v55 = vadd.f32 %v6030_v58, %v6029_v27  ;;  %v4878_v17 = vld [vmem:[%s7824_s26 + $0xbf8] sm:$0xff]  ;;  %v4997_v58 = vld [vmem:[%s7824_s26 + $0xfb0] sm:$0xff] }
 0x21b   : > { %v5134_v25 = vadd.f32 %v9465_v42, %v5132_v21  ;;  %v5398_v59 = vadd.f32 %v5397_v44, %v5396_v38  ;;  %v5924_v19 = vadd.f32 %v5923_v61, %v5922_v10  ;;  %v6034_v57 = vsel %vm5007_vm1, %v4991_v7, 0.0  ;;  %v4942_v61 = vld [vmem:[%s7824_s26 + $0xdf8] sm:$0xff] }
 0x21c   : > { %v5267_v41 = vadd.f32 %v9466_v4, %v5265_v14  ;;  %v5793_v40 = vadd.f32 %v5792_v2, %v5791_v29  ;;  %v5925_v5 = vsel %vm5007_vm1, %v4939_v47, 0.0  ;;  %v6033_v46 = vadd.f32 %v6032_v11, %v6031_v55 }
 0x21d   : > { %v5662_v49 = vadd.f32 %v5661_v20, %v5660_v48  ;;  %v5794_v35 = vsel %vm5007_vm1, %v4876_v18, 0.0  ;;  %v6036_v26 = vsel %vm5007_vm1, %v4992_v34, 0.0  ;;  %v5531_v43 = vadd.f32 %v5530_v23, %v5529_v13  ;;  %v4998_v48 = vld [vmem:[%s7824_s26 + $0xfb8] sm:$0xff]  ;;  %v4999_v20 = vld [vmem:[%s7824_s26 + $0xfc0] sm:$0xff] }
 0x21e   : > { %v5532_v52 = vsel %vm5007_vm1, %v4750_v62, 0.0  ;;  %v5663_v60 = vsel %vm5007_vm1, %v4813_v0, 0.0  ;;  %v6035_v31 = vadd.f32 %v6034_v57, %v6033_v46  ;;  %v5135_v8 = vrot.slane %v5134_v25, 4 }
 0x21f   : > { %v5400_v24 = vadd.f32 %v5399_v63, %v5398_v59  ;;  %v5926_v33 = vadd.f32 %v5925_v5, %v5924_v19  ;;  %v6038_v28 = vsel %vm5007_vm1, %v4993_v30, 0.0  ;;  %v5268_v44 = vrot.slane %v5267_v41, 4  ;;  %v5000_v19 = vld [vmem:[%s7824_s26 + $0xfc8] sm:$0xff]  ;;  %v5001_v5 = vld [vmem:[%s7824_s26 + $0xfd0] sm:$0xff] }
 0x220   : > { %v5795_v56 = vadd.f32 %v5794_v35, %v5793_v40  ;;  %v5927_v51 = vsel %vm5007_vm1, %v4940_v36, 0.0  ;;  %v6037_v22 = vadd.f32 %v6036_v26, %v6035_v31  ;;  %v5664_v16 = vadd.f32 %v5663_v60, %v5662_v49 }
 0x221   : > { %v5796_v6 = vsel %vm5007_vm1, %v4877_v15, 0.0  ;;  %v6040_v12 = vsel %vm5007_vm1, %v4994_v54, 0.0  ;;  %v5533_v3 = vadd.f32 %v5532_v52, %v5531_v43  ;;  %v5665_v32 = vsel %vm5007_vm1, %v4814_v39, 0.0  ;;  %v5002_v54 = vld [vmem:[%s7824_s26 + $0xfd8] sm:$0xff] }
 0x222   : > { %v6039_v9 = vadd.f32 %v6038_v28, %v6037_v22  ;;  %v5136_v37 = vadd.f32 %v5135_v8, %v5134_v25  ;;  %v5401_v21 = vrot.slane %v5400_v24, 4  ;;  %v5928_v38 = vadd.f32 %v5927_v51, %v5926_v33  ;;  %v5003_v8 = vld [vmem:[%s7824_s26 + $0xfe0] sm:$0xff]  ;;  %v5004_v51 = vld [vmem:[%s7824_s26 + $0xfe8] sm:$0xff] }
 0x223   : > { %v6042_v10 = vsel %vm5007_vm1, %v4995_v1, 0.0  ;;  %v5269_v7 = vadd.f32 %v5268_v44, %v5267_v41  ;;  %v5797_v53 = vadd.f32 %v5796_v6, %v5795_v56  ;;  %v5929_v14 = vsel %vm5007_vm1, %v4941_v50, 0.0 }
 0x224   : > { %v6041_v29 = vadd.f32 %v6040_v12, %v6039_v9  ;;  %v5666_v27 = vadd.f32 %v5665_v32, %v5664_v16  ;;  %v5798_v47 = vsel %vm5007_vm1, %v4878_v17, 0.0  ;;  %v6044_v63 = vsel %vm5007_vm1, %v4996_v45, 0.0  ;;  %v5005_v17 = vld [vmem:[%s7824_s26 + $0xff0] sm:$0xff] }
 0x225   : > { %v5534_v2 = vrot.slane %v5533_v3, 4  ;;  %v5137_v18 = vrot.slane %v5136_v37, 2  ;;  %v5402_v34 = vadd.f32 %v5401_v21, %v5400_v24  ;;  %v5930_v13 = vadd.f32 %v5929_v14, %v5928_v38  ;;  %v5006_v38 = vld [vmem:[%s7824_s26 + $0xff8] sm:$0xff] }
 0x226   : > { %v6043_v11 = vadd.f32 %v6042_v10, %v6041_v29  ;;  %v6046_v23 = vsel %vm5007_vm1, %v4997_v58, 0.0  ;;  %v5270_v55 = vrot.slane %v5269_v7, 2  ;;  %v5799_v62 = vadd.f32 %v5798_v47, %v5797_v53 }
 0x227   : > { %v5931_v0 = vsel %vm5007_vm1, %v4942_v61, 0.0  ;;  %v5667_v25 = vrot.slane %v5666_v27, 4  ;;  %v6048_v59 = vsel %vm5007_vm1, %v4998_v48, 0.0  ;;  %v5535_v57 = vadd.f32 %v5534_v2, %v5533_v3 }
 0x228   : > { %v6045_v42 = vadd.f32 %v6044_v63, %v6043_v11  ;;  %v5403_v4 = vrot.slane %v5402_v34, 2  ;;  %v5932_v41 = vadd.f32 %v5931_v0, %v5930_v13  ;;  %v6050_v40 = vsel %vm5007_vm1, %v4999_v20, 0.0 }
 0x229   : > { %v5138_v46 = vadd.f32 %v5137_v18, %v5136_v37  ;;  %v5271_v36 = vadd.f32 %v5270_v55, %v5269_v7  ;;  %v5800_v49 = vrot.slane %v5799_v62, 4  ;;  %v5668_v26 = vadd.f32 %v5667_v25, %v5666_v27 }
 0x22a   : > { %v6047_v30 = vadd.f32 %v6046_v23, %v6045_v42  ;;  %v6052_v15 = vsel %vm5007_vm1, %v5000_v19, 0.0  ;;  %v5536_v43 = vrot.slane %v5535_v57, 2  ;;  %v5404_v60 = vadd.f32 %v5403_v4, %v5402_v34 }
 0x22b   : > { %v5933_v31 = vrot.slane %v5932_v41, 4  ;;  %v6054_v39 = vsel %vm5007_vm1, %v5001_v5, 0.0  ;;  %v5139_v24 = vrot.slane %v5138_v46, 1  ;;  %v5272_v33 = vrot.slane %v5271_v36, 1 }
 0x22c   : > { %v6049_v35 = vadd.f32 %v6048_v59, %v6047_v30  ;;  %v5801_v28 = vadd.f32 %v5800_v49, %v5799_v62  ;;  %v5669_v44 = vrot.slane %v5668_v26, 2  ;;  %v6056_v56 = vsel %vm5007_vm1, %v5002_v54, 0.0 }
 0x22d   : > { %v5537_v22 = vadd.f32 %v5536_v43, %v5535_v57  ;;  %v5405_v16 = vrot.slane %v5404_v60, 1  ;;  %v5934_v6 = vadd.f32 %v5933_v31, %v5932_v41  ;;  %v6058_v12 = vsel %vm5007_vm1, %v5003_v8, 0.0 }
 0x22e   : > { %v6051_v52 = vadd.f32 %v6050_v40, %v6049_v35  ;;  %v5140_v45 = vadd.f32 %v5139_v24, %v5138_v46  ;;  %v5273_v3 = vadd.f32 %v5272_v33, %v5271_v36  ;;  %v5802_v32 = vrot.slane %v5801_v28, 2  ;;  %v4494_v40 = vld [vmem:[#allocation2] sm:$0xff] }
 0x22f   : > { %v5670_v37 = vadd.f32 %v5669_v44, %v5668_v26  ;;  %v6060_v21 = vsel %vm5007_vm1, %v5004_v51, 0.0  ;;  %v5538_v10 = vrot.slane %v5537_v22, 1  ;;  %v5406_v7 = vadd.f32 %v5405_v16, %v5404_v60 }
 0x230   : > { %v6053_v1 = vadd.f32 %v6052_v15, %v6051_v52  ;;  %v5935_v53 = vrot.slane %v5934_v6, 2  ;;  %v6062_v14 = vsel %vm5007_vm1, %v5005_v17, 0.0  ;;  %v5803_v29 = vadd.f32 %v5802_v32, %v5801_v28 }
 0x231   : > { %v6081_v27 = vsel %vm6080_vm2, %v5273_v3, %v5140_v45  ;;  %v5671_v47 = vrot.slane %v5670_v37, 1  ;;  %v6064_v63 = vsel %vm5007_vm1, %v5006_v38, 0.0  ;;  %v5539_v48 = vadd.f32 %v5538_v10, %v5537_v22 }
 0x232   : > { %v6055_v50 = vadd.f32 %v6054_v39, %v6053_v1  ;;  %v5936_v11 = vadd.f32 %v5935_v53, %v5934_v6  ;;  %v6083_v18 = vsel %vm6082_vm3, %v5406_v7, %v6081_v27  ;;  %v5804_v34 = vrot.slane %v5803_v29, 1 }
 0x233   : > { %v5672_v23 = vadd.f32 %v5671_v47, %v5670_v37  ;;  %v6085_v55 = vsel %vm6084_vm4, %v5539_v48, %v6083_v18 }
 0x234   : > { %v6057_v9 = vadd.f32 %v6056_v56, %v6055_v50  ;;  %v5937_v62 = vrot.slane %v5936_v11, 1  ;;  %v5805_v0 = vadd.f32 %v5804_v34, %v5803_v29 }
 0x235   : > { %v6087_v25 = vsel %vm6086_vm5, %v5672_v23, %v6085_v55 }
 0x236   : > { %v6059_v58 = vadd.f32 %v6058_v12, %v6057_v9  ;;  %v5938_v19 = vadd.f32 %v5937_v62, %v5936_v11  ;;  %v6089_v30 = vsel %vm6088_vm6, %v5805_v0, %v6087_v25 }
 0x238   : > { %v6061_v61 = vadd.f32 %v6060_v21, %v6059_v58  ;;  %v6091_v41 = vsel %vm6090_vm7, %v5938_v19, %v6089_v30 }
 0x23a   : > { %v6063_v2 = vadd.f32 %v6062_v14, %v6061_v61 }
 0x23c   : > { %v6065_v13 = vadd.f32 %v6064_v63, %v6063_v2 }
 0x23e   : > { %v6066_v20 = vrot.slane %v6065_v13, 4 }
 0x240   : > { %v6067_v42 = vadd.f32 %v6066_v20, %v6065_v13 }
 0x242   : > { %v6068_v59 = vrot.slane %v6067_v42, 2 }
 0x244   : > { %v6069_v57 = vadd.f32 %v6068_v59, %v6067_v42 }
 0x246   : > { %v6070_v4 = vrot.slane %v6069_v57, 1 }
 0x248   : > { %v6071_v5 = vadd.f32 %v6070_v4, %v6069_v57 }
 0x249   : > { %6100 = sbr.rel (%p6490_p9) target bundleno = 1231 (0x4cf), region = 116 }
 0x24a   : > { %v6093_v46 = vsel %vm6092_vm8, %v6071_v5, %v6091_v41 }
 0x24b   : > { %v6095_v36 = vadd.f32 %v6093_v46, %v4494_v40 }
 0x24d   : > { %6096 = vst.msk [vmem:[#allocation2] sm:$0xff] %vm5007_vm1, %v6095_v36 }
 0x24e   : > { %v6103_v49 = vld [vmem:[%s9394_s1] sm:$0xf]  ;;  %vm6114_vm9 = vcmask 1043456   ;;  %v6704_v26 = vmov 0.0   ;;  %vm6705_vm10 = vmmov 0   ;;  %v6203_v54 = vld [vmem:[%s9396_s3 + $0x78] sm:$0xff]  ;;  %v6281_v63 = vlaneseq }
 0x24f   : > { %6540 = vmatprep.subr.mxu0 %v6704_v26  ;;  %6542 = vmatprep.mubr.msk.f32.mxu0 %vm6705_vm10, %v6704_v26  ;;  %v6202_v43 = vld [vmem:[%s9396_s3 + $0x70] sm:$0xff]  ;;  %v6201_v52 = vld [vmem:[%s9396_s3 + $0x68] sm:$0xff]  ;;  %v6200_v60 = vld [vmem:[%s9396_s3 + $0x60] sm:$0xff] }
 0x250   : > { %6541 = vmatpush3.msk.msra.mxu0 %vm6114_vm9, %v6103_v49  ;;  %6545 = vmatprep.subr.mxu1 %v6704_v26  ;;  %v6199_v31 = vld [vmem:[%s9396_s3 + $0x58] sm:$0xff]  ;;  %v6198_v39 = vld [vmem:[%s9396_s3 + $0x50] sm:$0xff]  ;;  %v6197_v8 = vld [vmem:[%s9396_s3 + $0x48] sm:$0xff]  ;;  %v6282_v48 = vshrl.u32 %v6281_v63, 7 }
 0x251   : > { %6546 = vmatpush3.msra.mxu1 %v6203_v54  ;;  %6577 = vmatprep.mubr.msk.f32.mxu1 %vm6705_vm10, %v6704_v26  ;;  %v6196_v24 = vld [vmem:[%s9396_s3 + $0x40] sm:$0xff]  ;;  %v6195_v33 = vld [vmem:[%s9396_s3 + $0x38] sm:$0xff]  ;;  %v6194_v28 = vld [vmem:[%s9396_s3 + $0x30] sm:$0xff] }
 0x252   : > { %6547 = vmatprep.subr.mxu1 %v6704_v26  ;;  %6580 = vmatprep.subr.mxu0 %v6704_v26  ;;  %v6193_v1 = vld [vmem:[%s9396_s3 + $0x28] sm:$0xff]  ;;  %v6192_v44 = vld [vmem:[%s9396_s3 + $0x20] sm:$0xff]  ;;  %v6191_v56 = vld [vmem:[%s9396_s3 + $0x18] sm:$0xff]  ;;  %vm6283_vm11 = vcmp.lt.s32.totalorder %v6282_v48, 2 }
 0x253   : > { %6548 = vmatpush3.msra.mxu1 %v6202_v43  ;;  %v6190_v51 = vld [vmem:[%s9396_s3 + $0x10] sm:$0xff]  ;;  %v6189_v22 = vld [vmem:[%s9396_s3 + $0x8] sm:$0xff]  ;;  %v6188_v50 = vld [vmem:[%s9396_s3] sm:$0xff]  ;;  %v6495_v18 = vsel %vm6283_vm11, 1.0, %v6704_v26 }
 0x254   : > { %v6101_v35 = vld [vmem:[#allocation2] sm:$0xff]  ;;  %6549 = vmatprep.subr.mxu1 %v6704_v26  ;;  %v6341_v45 = vld [vmem:[%s9400_s7 + $0x78] sm:$0xff]  ;;  %v6340_v3 = vld [vmem:[%s9400_s7 + $0x70] sm:$0xff] }
 0x255   : > { %v6102_v15 = vmul.f32 0.0009765625, %v6101_v35  ;;  %6550 = vmatpush3.msra.mxu1 %v6201_v52  ;;  %v6491_v16 = vld [vmem:[%s9395_s2] ss:$0 sm:$0xff]  ;;  %v6339_v32 = vld [vmem:[%s9400_s7 + $0x68] sm:$0xff]  ;;  %v6337_v37 = vld [vmem:[%s9400_s7 + $0x58] sm:$0xff] }
 0x256   : > { %6551 = vmatprep.subr.mxu1 %v6704_v26  ;;  %v6338_v9 = vld [vmem:[%s9400_s7 + $0x60] sm:$0xff]  ;;  %v6336_v21 = vld [vmem:[%s9400_s7 + $0x50] sm:$0xff]  ;;  %v6335_v38 = vld [vmem:[%s9400_s7 + $0x48] sm:$0xff] }
 0x257   : > { %6543 = vmatmul.mubr.msk.f32.vlgmr.msra.gmra.mxu0 %vm5007_vm1, %v6102_v15  ;;  %6552 = vmatpush3.msra.mxu1 %v6200_v60  ;;  %v6334_v10 = vld [vmem:[%s9400_s7 + $0x40] sm:$0xff]  ;;  %v6333_v58 = vld [vmem:[%s9400_s7 + $0x38] sm:$0xff]  ;;  %v6332_v7 = vld [vmem:[%s9400_s7 + $0x30] sm:$0xff] }
 0x258   : > { %6612 = vmatprep.mubr.msk.f32.mxu0 %vm6705_vm10, %v6704_v26  ;;  %6553 = vmatprep.subr.mxu1 %v6704_v26  ;;  %v6331_v53 = vld [vmem:[%s9400_s7 + $0x28] sm:$0xff]  ;;  %v6330_v14 = vld [vmem:[%s9400_s7 + $0x20] sm:$0xff]  ;;  %v6329_v29 = vld [vmem:[%s9400_s7 + $0x18] sm:$0xff] }
 0x259   : > { %6554 = vmatpush3.msra.mxu1 %v6199_v31  ;;  %6581 = vmatpush3.msra.mxu0 %v6341_v45  ;;  %v6328_v61 = vld [vmem:[%s9400_s7 + $0x10] sm:$0xff]  ;;  %v6327_v27 = vld [vmem:[%s9400_s7 + $0x8] sm:$0xff]  ;;  %v6326_v47 = vld [vmem:[%s9400_s7] sm:$0xff] }
 0x25a   : > { %6555 = vmatprep.subr.mxu1 %v6704_v26  ;;  %6582 = vmatprep.subr.mxu0 %v6704_v26  ;;  %v6494_v2 = vld [vmem:[%s9397_s4] ss:$0 sm:$0xff] }
 0x25b   : > { %6556 = vmatpush3.msra.mxu1 %v6198_v39  ;;  %6583 = vmatpush3.msra.mxu0 %v6340_v3  ;;  %v6496_v43 = vld [vmem:[%s9398_s5] ss:$0 sm:$0xff] }
 0x25c   : > { %6557 = vmatprep.subr.mxu1 %v6704_v26  ;;  %6584 = vmatprep.subr.mxu0 %v6704_v26  ;;  %v6497_v60 = vld [vmem:[%s9399_s6] ss:$0 sm:$0xff] }
 0x25d   : > { %6558 = vmatpush3.msra.mxu1 %v6197_v8  ;;  %6585 = vmatpush3.msra.mxu0 %v6339_v32 }
 0x25e   : > { %6559 = vmatprep.subr.mxu1 %v6704_v26  ;;  %6586 = vmatprep.subr.mxu0 %v6704_v26 }
 0x25f   : > { %6560 = vmatpush3.msra.mxu1 %v6196_v24  ;;  %6587 = vmatpush3.msra.mxu0 %v6338_v9  ;;  %v6498_v24 = vld [vmem:[%s9401_s8] ss:$0 sm:$0xff] }
 0x260   : > { %6561 = vmatprep.subr.mxu1 %v6704_v26  ;;  %6588 = vmatprep.subr.mxu0 %v6704_v26 }
 0x261   : > { %6562 = vmatpush3.msra.mxu1 %v6195_v33  ;;  %6589 = vmatpush3.msra.mxu0 %v6337_v37 }
 0x262   : > { %6563 = vmatprep.subr.mxu1 %v6704_v26  ;;  %6590 = vmatprep.subr.mxu0 %v6704_v26 }
 0x263   : > { %6564 = vmatpush3.msra.mxu1 %v6194_v28  ;;  %6591 = vmatpush3.msra.mxu0 %v6336_v21 }
 0x264   : > { %6565 = vmatprep.subr.mxu1 %v6704_v26  ;;  %6592 = vmatprep.subr.mxu0 %v6704_v26 }
 0x265   : > { %6566 = vmatpush3.msra.mxu1 %v6193_v1  ;;  %6593 = vmatpush3.msra.mxu0 %v6335_v38 }
 0x266   : > { %6567 = vmatprep.subr.mxu1 %v6704_v26  ;;  %6594 = vmatprep.subr.mxu0 %v6704_v26 }
 0x267   : > { %6568 = vmatpush3.msra.mxu1 %v6192_v44  ;;  %6595 = vmatpush3.msra.mxu0 %v6334_v10 }
 0x268   : > { %6569 = vmatprep.subr.mxu1 %v6704_v26  ;;  %6596 = vmatprep.subr.mxu0 %v6704_v26 }
 0x269   : > { %6570 = vmatpush3.msra.mxu1 %v6191_v56  ;;  %6597 = vmatpush3.msra.mxu0 %v6333_v58 }
 0x26a   : > { %6571 = vmatprep.subr.mxu1 %v6704_v26  ;;  %6598 = vmatprep.subr.mxu0 %v6704_v26 }
 0x26b   : > { %6572 = vmatpush3.msra.mxu1 %v6190_v51  ;;  %6599 = vmatpush3.msra.mxu0 %v6332_v7 }
 0x26c   : > { %6573 = vmatprep.subr.mxu1 %v6704_v26  ;;  %6600 = vmatprep.subr.mxu0 %v6704_v26 }
 0x26d   : > { %6574 = vmatpush3.msra.mxu1 %v6189_v22  ;;  %6601 = vmatpush3.msra.mxu0 %v6331_v53 }
 0x26e   : > { %6575 = vmatprep.subr.mxu1 %v6704_v26  ;;  %6602 = vmatprep.subr.mxu0 %v6704_v26 }
 0x26f   : > { %6576 = vmatpush3.msra.mxu1 %v6188_v50  ;;  %6603 = vmatpush3.msra.mxu0 %v6330_v14 }
 0x270   : > { %6604 = vmatprep.subr.mxu0 %v6704_v26 }
 0x271   : > { %6605 = vmatpush3.msra.mxu0 %v6329_v29 }
 0x272   : > { %6606 = vmatprep.subr.mxu0 %v6704_v26 }
 0x273   : > { %6607 = vmatpush3.msra.mxu0 %v6328_v61 }
 0x274   : > { %6608 = vmatprep.subr.mxu0 %v6704_v26 }
 0x275   : > { %6609 = vmatpush3.msra.mxu0 %v6327_v27 }
 0x276   : > { %6610 = vmatprep.subr.mxu0 %v6704_v26 }
 0x277   : > { %6611 = vmatpush3.msra.mxu0 %v6326_v47 }
 0x317   : > { %v6184_v6 = vpop.f32.mrf.mxu0 }
 0x318   : > { %v6185_v12 = vadd.f32 %v6491_v16, %v6184_v6 }
 0x319   : > { %v6544_v17 = vpop.f32.mrf.mxu0 }
 0x31a   : > { %6578 = vmatmul.mubr.f32.vlgmr.msra.gmra.mxu1 %v6185_v12 }
 0x3da   : > { %v6277_v11 = vpop.f32.mrf.mxu1 }
 0x3db   : > { %v6278_v34 = vadd.f32 %v6494_v2, %v6277_v11 }
 0x3dc   : > { %v6579_v13 = vpop.f32.mrf.mxu1 }
 0x3dd   : > { %v6286_v23 = vmul.f32 %v6495_v18, %v6278_v34 }
 0x3df   : > { %v6287_v20 = vrot.slane %v6286_v23, 4  ;;  %v6294_v55 = vmul.f32 %v6286_v23, %v6278_v34 }
 0x3e1   : > { %v6288_v62 = vadd.f32 %v6287_v20, %v6286_v23  ;;  %v6295_v0 = vrot.slane %v6294_v55, 4 }
 0x3e3   : > { %v6289_v42 = vrot.slane %v6288_v62, 2  ;;  %v6296_v25 = vadd.f32 %v6295_v0, %v6294_v55 }
 0x3e5   : > { %v6290_v59 = vadd.f32 %v6289_v42, %v6288_v62  ;;  %v6297_v19 = vrot.slane %v6296_v25, 2 }
 0x3e7   : > { %v6291_v57 = vrot.slane %v6290_v59, 1  ;;  %v6298_v30 = vadd.f32 %v6297_v19, %v6296_v25 }
 0x3e9   : > { %v6292_v4 = vadd.f32 %v6291_v57, %v6290_v59  ;;  %v6299_v41 = vrot.slane %v6298_v30, 1 }
 0x3eb   : > { %v6293_v40 = vmul.f32 0.5, %v6292_v4  ;;  %v6300_v5 = vadd.f32 %v6299_v41, %v6298_v30 }
 0x3ed   : > { %v6301_v46 = vmul.f32 0.5, %v6300_v5  ;;  %v6302_v36 = vmul.f32 %v6293_v40, %v6293_v40  ;;  %v6305_v15 = vsub.f32 %v6278_v34, %v6293_v40 }
 0x3ef   : > { %v6303_v49 = vsub.f32 %v6301_v46, %v6302_v36 }
 0x3f1   : > { %v6304_v35 = vmax.f32 %v6303_v49, 0.0 }
 0x3f3   : > { %v6306_v26 = vadd.f32 1e-05, %v6304_v35 }
 0x3f5   : > { %6649 = vrsqrt.f32 %v6306_v26 }
 0x402   : > { %v6650_v54 = vpop.eup %6649 }
 0x403   : > { %v6308_v52 = vmul.f32 %v6650_v54, %v6305_v15 }
 0x405   : > { %v6316_v31 = vmul.f32 %v6496_v43, %v6308_v52 }
 0x407   : > { %v6324_v39 = vadd.f32 %v6497_v60, %v6316_v31 }
 0x409   : > { %v6325_v8 = vmax.f32 %v6324_v39, 0.0 }
 0x40b   : > { %6613 = vmatmul.mubr.f32.vlgmr.msra.gmra.mxu0 %v6325_v8 }
 0x4cb   : > { %v6415_v33 = vpop.f32.mrf.mxu0 }
 0x4cc   : > { %v6416_v28 = vadd.f32 %v6498_v24, %v6415_v33 }
 0x4cd   : > { %v6614_v1 = vpop.f32.mrf.mxu0 }
 0x4ce   : > { %6419 = vst [vmem:[#allocation4] sm:$0xff] %v6416_v28 }
 0x4cf PF: > { %p6619_p10 = scmp.eq.s32.totalorder %s6773_s12, 1  ;;  %s6706_s18 = smov [#allocation4]  }
 0x4d0   : > { %s6427_s19 = sshll.u32 %s6706_s18, 4  ;;  %s6428_s19 = int_to_ptr.vmem [resolvable:$true] %s6427_s19 }
 0x4d1   : > { %s6651_s20 = scalar_lea.vmem %s6428_s19, 128  ;;  %p6658_p0 = scmp.lt.s32.totalorder %s6428_s19, %s6428_s19 }
 0x4d2   : > { %p6652_p11 = scmp.ne.s32.totalorder %s6428_s19, %s6651_s20  ;;  %p6659_p1 = scmp.lt.s32.totalorder %s6651_s20, %s6651_s20 }
 0x4d4   : > { %p6653_p12 = pnand %p6652_p11, %p6619_p10  ;;  %p6660_p2 = por %p6659_p1, %p6658_p0 }
 0x4d6   : > { %p6654_p13 = pneg %p6653_p12 }
 0x4d8   : > { %p6661_p3 = pnand %p6660_p2, %p6654_p13 }
 0x4da   : > { %6664 = shalt.err (!%p6661_p3)
}
 0x4db   : > { %6616 = dma.vmem_to_hbm [thread:$0]  (%p6619_p10), %s6428_s19, 128, %s9402_s9, [#allocation5]  }
 0x4dc   : > { %6688 = dma.done.wait (%p6619_p10), [#allocation5], 128  }
 0x4dd   : > { %6690 = vsyncadd (%p6619_p10), [#allocation5], 4294967168 }
 0x4de PF: > { %p17_p4 = scmp.ge.s32.totalorder %s6776_s13, 4   ;;  %s9467_s30 = smov %s6697_s10 }
 0x4df   : > { %s9468_s10 = smov %s6785_s16  ;;  %s9469_s11 = smov %s6776_s13 }
 0x4e0   :  { %19 = sbr.rel (!%p17_p4) target bundleno = 2 (0x2), region = 154 }
 0x4e5   :  { %6440 = vsyncpa [#allocation5], 1 }
 0x4e6   :  { %6442 = vsyncpa [#allocation5 + $0x1], 1 }

</bundles_post_ra>
